<compile_context>
chip_gen: v6e
topology: v6e:2x2x1
jax: 0.10.0
libtpu: 0.0.40
codegen_flags: <defaults>
</compile_context>

<pallas_src>
import math
import functools

import jax
import jax.numpy as jnp
from jax import lax
from jax.experimental import pallas as pl
from jax.experimental.pallas import tpu as pltpu


def _attend(q, k, v, o_ref, *, scale_sq, exp_bf16):
    """Core attention on VMEM tiles. q: (G, ch, Tq), k/v: (G, ch, T)."""
    # Fold both softmax scales (1/ch**0.25 each) into the small q tile.
    qs = q * jnp.asarray(scale_sq, q.dtype)

    # w[g, t, s] = sum_c qs[g, c, t] * k[g, c, s]   (f32 accumulation on MXU)
    w = lax.dot_general(
        qs, k, (((1,), (1,)), ((0,), (0,))),
        preferred_element_type=jnp.float32)              # (G, Tq, T)

    # Numerically stable softmax over the key (lane) axis, matching torch's
    # "softmax in f32 then cast to the input dtype" ordering.
    m = jnp.max(w, axis=-1, keepdims=True)               # (G, Tq, 1)
    x = w - m
    if exp_bf16:
        # v6e/v7x + bf16 inputs: bf16 exp doubles EUP throughput; the probs are
        # cast to bf16 for the value matmul anyway.
        e = jnp.exp(x.astype(jnp.bfloat16)).astype(jnp.float32)
    else:
        e = jnp.exp(x)                                   # (G, Tq, T) f32
    s = jnp.sum(e, axis=-1, keepdims=True)               # (G, Tq, 1)
    inv = pl.reciprocal(s, approx=False)
    p = (e * inv).astype(v.dtype)                        # normalised probs

    # a[g, c, t] = sum_s v[g, c, s] * p[g, t, s]
    a = lax.dot_general(
        v, p, (((2,), (2,)), ((0,), (0,))),
        preferred_element_type=jnp.float32)              # (G, ch, Tq)
    o_ref[...] = a.astype(o_ref.dtype)


def _qkv_attn_kernel(q_ref, k_ref, v_ref, o_ref, *, scale_sq, exp_bf16):
    _attend(q_ref[...], k_ref[...], v_ref[...], o_ref,
            scale_sq=scale_sq, exp_bf16=exp_bf16)


def _qkv_attn_fused_kernel(qkv_ref, o_ref, *, ch, scale_sq, exp_bf16):
    # ch not sublane-aligned: load the fused block once and slice the q/k/v
    # bands on-chip (cheap relayout) instead of HBM-copying in the wrapper.
    full = qkv_ref[...]                                   # (G, 3*ch, T)
    q = full[:, 0 * ch:1 * ch, :]
    k = full[:, 1 * ch:2 * ch, :]
    v = full[:, 2 * ch:3 * ch, :]
    _attend(q, k, v, o_ref, scale_sq=scale_sq, exp_bf16=exp_bf16)


def _device_kind():
    try:
        return jax.devices()[0].device_kind.lower()
    except Exception:
        return ""


def _pick_query_tile(T, prefer_256):
    tiles = (256, 128) if prefer_256 else (128,)
    for tq in tiles:
        if T % tq == 0:
            return tq
    return T  # full-T block (always legal), lane-masked stores if T % 128 != 0


def qkv_attention_legacy(qkv, n_heads):
    """qkv: [B, 3*C, T] -> [B, C, T], matching QKVAttentionLegacy.forward."""
    B, width, T = qkv.shape
    assert width % (3 * n_heads) == 0
    ch = width // (3 * n_heads)
    BH = B * n_heads

    qkv_r = qkv.reshape(BH, 3 * ch, T)       # same (free) reshape as torch
    scale_sq = 1.0 / math.sqrt(ch)           # (1 / ch**0.25)**2, applied once to q
    itemsize = jnp.dtype(qkv.dtype).itemsize

    kind = _device_kind()
    old_gen = any(v in kind for v in ("v2", "v3", "v4", "v5"))
    prefer_256 = not old_gen                 # 256-wide MXU on v6e/v7x
    exp_bf16 = (qkv_r.dtype == jnp.bfloat16) and not old_gen

    aligned = (ch % 8 == 0)
    Tq = _pick_query_tile(T, prefer_256) if aligned else T
    nq = max(T // Tq, 1)
    # Deeper K/V buffering so the next head's K/V lands before the head switch.
    kv_bufs = 3 if (aligned and nq >= 2) else 2

    # VMEM budgeting: physical capacity differs per generation (v7x: 64 MiB).
    try:
        vmem_cap = int(pltpu.get_tpu_info().vmem_capacity_bytes)
    except Exception:
        vmem_cap = 64 * 1024 * 1024
    budget = int(vmem_cap * 0.6)

    def working_set(g):
        qo = 2 * 2 * g * ch * Tq * itemsize           # q + out, double-buffered
        kv = 2 * kv_bufs * g * ch * T * itemsize      # k + v blocks
        tmp = g * Tq * T * (4 + 4 + itemsize)         # w, e (f32) + p
        return qo + kv + tmp + (2 << 20)

    # Batch G heads per grid step when per-head work is small (HBM-bound regime).
    G = 1
    for cand in (16, 8, 4, 2):
        if BH % cand == 0 and working_set(cand) <= budget:
            G = cand
            break

    vmem_limit = min(max(working_set(G) + (8 << 20), 32 << 20),
                     (vmem_cap * 3) // 4)

    def kv_spec(block_shape, index_map):
        if kv_bufs > 2:
            try:
                return pl.BlockSpec(block_shape, index_map,
                                    pipeline_mode=pl.Buffered(kv_bufs))
            except TypeError:   # pipeline_mode unsupported on this JAX version
                pass
        return pl.BlockSpec(block_shape, index_map)

    if aligned:
        # q/k/v addressed as row-bands 0/1/2 of the fused HBM buffer: one buffer,
        # no wrapper slices, K/V blocks stay VMEM-resident across query tiles.
        kernel = functools.partial(_qkv_attn_kernel, scale_sq=scale_sq,
                                   exp_bf16=exp_bf16)
        in_specs = [
            pl.BlockSpec((G, ch, Tq), lambda b, qi: (b, 0, qi)),
            kv_spec((G, ch, T), lambda b, qi: (b, 1, 0)),
            kv_spec((G, ch, T), lambda b, qi: (b, 2, 0)),
        ]
        inputs = (qkv_r, qkv_r, qkv_r)
    else:
        # ch not a multiple of 8: keep the fused buffer whole (full dims are
        # always legal block dims) and slice the bands inside the kernel.
        kernel = functools.partial(_qkv_attn_fused_kernel, ch=ch,
                                   scale_sq=scale_sq, exp_bf16=exp_bf16)
        in_specs = [pl.BlockSpec((G, 3 * ch, T), lambda b, qi: (b, 0, 0))]
        inputs = (qkv_r,)

    out = pl.pallas_call(
        kernel,
        out_shape=jax.ShapeDtypeStruct((BH, ch, T), qkv.dtype),
        grid=(BH // G, nq),
        in_specs=in_specs,
        out_specs=pl.BlockSpec((G, ch, Tq), lambda b, qi: (b, 0, qi)),
        compiler_params=pltpu.CompilerParams(
            # Only the head axis is megacore-sharded; sharding the query-tile
            # axis would duplicate each head's K/V fetch across cores (v7x).
            dimension_semantics=("parallel", "arbitrary"),
            vmem_limit_bytes=int(vmem_limit),
        ),
    )(*inputs)

    return out.reshape(B, n_heads * ch, T)


def qkv_attention_legacy_ref(qkv, n_heads):
    """Pure-JAX reference mirroring the PyTorch forward."""
    B, width, T = qkv.shape
    ch = width // (3 * n_heads)
    qkv_r = qkv.reshape(B * n_heads, 3 * ch, T)
    q, k, v = qkv_r[:, :ch], qkv_r[:, ch:2 * ch], qkv_r[:, 2 * ch:]
    scale = 1.0 / math.sqrt(math.sqrt(ch))
    w = jnp.einsum('bct,bcs->bts',
                   (q * scale).astype(jnp.float32),
                   (k * scale).astype(jnp.float32),
                   precision=lax.Precision.HIGHEST)
    w = jax.nn.softmax(w, axis=-1).astype(qkv.dtype)
    a = jnp.einsum('bts,bcs->bct', w.astype(jnp.float32), v.astype(jnp.float32),
                   precision=lax.Precision.HIGHEST)
    return a.astype(qkv.dtype).reshape(B, -1, T)


def _check(qkv, n_heads, atol, rtol, name):
    out = jax.block_until_ready(qkv_attention_legacy(qkv, n_heads))
    ref = qkv_attention_legacy_ref(qkv, n_heads)
    assert out.shape == ref.shape, (name, out.shape, ref.shape)
    err = float(jnp.max(jnp.abs(out.astype(jnp.float32) - ref.astype(jnp.float32))))
    assert jnp.allclose(out.astype(jnp.float32), ref.astype(jnp.float32),
                        atol=atol, rtol=rtol), (name, err)
    return err


if __name__ == "__main__":
    key = jax.random.PRNGKey(0)
    k1, k2, k3, k4, k5 = jax.random.split(key, 5)

    # 1) Main: B=2, H=2, ch=16 (C=32, width=96), T=256, f32.
    #    Exercises fused-qkv row-band addressing, head batching (G=4) and the
    #    single 256-wide query tile on v6e/v7x (2x128 tiles on v5-class).
    qkv = jax.random.normal(k1, (2, 96, 256), dtype=jnp.float32)
    _check(qkv, 2, atol=2e-3, rtol=2e-3, name="main_f32")

    # 2) Tiny shape: T=16 (single full-T tile), ch=8, f32.
    qkv2 = jax.random.normal(k2, (1, 24, 16), dtype=jnp.float32)
    _check(qkv2, 1, atol=2e-3, rtol=2e-3, name="tiny_f32")

    # 3) Non-128-multiple T (lane-masked full-T blocks): T=80, H=2, ch=16.
    qkv3 = jax.random.normal(k3, (1, 96, 80), dtype=jnp.float32)
    _check(qkv3, 2, atol=2e-3, rtol=2e-3, name="oddT_f32")

    # 4) bf16 inputs: exercises the bf16-exp / bf16-prob MXU path.
    qkv4 = jax.random.normal(k4, (2, 192, 256), dtype=jnp.float32).astype(jnp.bfloat16)
    _check(qkv4, 2, atol=5e-2, rtol=5e-2, name="main_bf16")

    # 5) ch % 8 != 0 fallback (in-kernel band slicing of the fused block).
    qkv5 = jax.random.normal(k5, (1, 12, 128), dtype=jnp.float32)
    _check(qkv5, 1, atol=2e-3, rtol=2e-3, name="fallback_ch4")

    print("KERNEL_OK")
</pallas_src>

<mosaic_0001>
module attributes {stable_mosaic.version = 11 : i64} {
  func.func @_qkv_attn_kernel(%arg0: i32, %arg1: i32, %arg2: memref<4x16x256xf32, #tpu.memory_space<vmem>>, %arg3: memref<4x16x256xf32, #tpu.memory_space<vmem>>, %arg4: memref<4x16x256xf32, #tpu.memory_space<vmem>>, %arg5: memref<4x16x256xf32, #tpu.memory_space<vmem>>) attributes {dimension_semantics = [#tpu.dimension_semantics<parallel>, #tpu.dimension_semantics<arbitrary>], iteration_bounds = array<i64: 1, 1>, scalar_prefetch = 0 : i64, scratch_operands = 0 : i64, tpu.core_type = #tpu.core_type<tc>, window_params = [{transform_indices = @transform_0, window_bounds = array<i64: 4, 16, 256>}, {transform_indices = @transform_1, window_bounds = array<i64: 4, 16, 256>}, {transform_indices = @transform_2, window_bounds = array<i64: 4, 16, 256>}, {transform_indices = @transform_3, window_bounds = array<i64: 4, 16, 256>}]} {
    %c0 = arith.constant 0 : index
    %c0_0 = arith.constant 0 : index
    %c0_1 = arith.constant 0 : index
    %0 = vector.load %arg2[%c0, %c0_0, %c0_1] : memref<4x16x256xf32, #tpu.memory_space<vmem>>, vector<4x16x256xf32>
    %c0_2 = arith.constant 0 : index
    %c0_3 = arith.constant 0 : index
    %c0_4 = arith.constant 0 : index
    %1 = vector.load %arg3[%c0_2, %c0_3, %c0_4] : memref<4x16x256xf32, #tpu.memory_space<vmem>>, vector<4x16x256xf32>
    %c0_5 = arith.constant 0 : index
    %c0_6 = arith.constant 0 : index
    %c0_7 = arith.constant 0 : index
    %2 = vector.load %arg4[%c0_5, %c0_6, %c0_7] : memref<4x16x256xf32, #tpu.memory_space<vmem>>, vector<4x16x256xf32>
    %cst = arith.constant 2.500000e-01 : f32
    %3 = vector.broadcast %cst : f32 to vector<4x16x256xf32>
    %4 = arith.mulf %0, %3 : vector<4x16x256xf32>
    %cst_8 = arith.constant dense<0.000000e+00> : vector<4x256x256xf32>
    %5 = tpu.matmul %4, %1, %cst_8 {dimension_numbers = #tpu.dot_dimension_numbers<[1], [1], [2], [2], [0, 0, 0, 2, 1, 2], [0], [0]>} : vector<4x16x256xf32>, vector<4x16x256xf32>, vector<4x256x256xf32> -> vector<4x256x256xf32>
    %cst_9 = arith.constant dense<0xFF800000> : vector<4x256xf32>
    %6 = vector.multi_reduction <maximumf>, %5, %cst_9 [2] : vector<4x256x256xf32> to vector<4x256xf32>
    %7 = vector.shape_cast %6 : vector<4x256xf32> to vector<4x256x1xf32>
    %8 = vector.broadcast %7 : vector<4x256x1xf32> to vector<4x256x256xf32>
    %9 = arith.subf %5, %8 : vector<4x256x256xf32>
    %10 = math.exp %9 : vector<4x256x256xf32>
    %cst_10 = arith.constant dense<0.000000e+00> : vector<4x256xf32>
    %11 = vector.multi_reduction <add>, %10, %cst_10 [2] : vector<4x256x256xf32> to vector<4x256xf32>
    %12 = vector.shape_cast %11 : vector<4x256xf32> to vector<4x256x1xf32>
    %13 = tpu.reciprocal %12 : vector<4x256x1xf32> -> vector<4x256x1xf32>
    %14 = vector.broadcast %13 : vector<4x256x1xf32> to vector<4x256x256xf32>
    %15 = arith.mulf %10, %14 : vector<4x256x256xf32>
    %cst_11 = arith.constant dense<0.000000e+00> : vector<4x16x256xf32>
    %16 = tpu.matmul %2, %15, %cst_11 {dimension_numbers = #tpu.dot_dimension_numbers<[2], [2], [1], [1], [0, 0, 0, 1, 1, 1], [0], [0]>} : vector<4x16x256xf32>, vector<4x256x256xf32>, vector<4x16x256xf32> -> vector<4x16x256xf32>
    %c0_12 = arith.constant 0 : index
    %c0_13 = arith.constant 0 : index
    %c0_14 = arith.constant 0 : index
    %17 = vector.load %arg5[%c0_12, %c0_13, %c0_14] : memref<4x16x256xf32, #tpu.memory_space<vmem>>, vector<4x16x256xf32>
    tpu.vector_store %arg5[%c0_12, %c0_13, %c0_14], %16 {strides = array<i32>} : memref<4x16x256xf32, #tpu.memory_space<vmem>>, vector<4x16x256xf32>,
    return
  }
  func.func @transform_0(%arg0: i32, %arg1: i32) -> (i32, i32, i32) {
    %c0_i32 = arith.constant 0 : i32
    %c0_i32_0 = arith.constant 0 : i32
    return %arg0, %c0_i32, %arg1 : i32, i32, i32
  }
  func.func @transform_1(%arg0: i32, %arg1: i32) -> (i32, i32, i32) {
    %c1_i32 = arith.constant 1 : i32
    %c0_i32 = arith.constant 0 : i32
    %c0_i32_0 = arith.constant 0 : i32
    return %arg0, %c1_i32, %c0_i32 : i32, i32, i32
  }
  func.func @transform_2(%arg0: i32, %arg1: i32) -> (i32, i32, i32) {
    %c2_i32 = arith.constant 2 : i32
    %c0_i32 = arith.constant 0 : i32
    %c0_i32_0 = arith.constant 0 : i32
    return %arg0, %c2_i32, %c0_i32 : i32, i32, i32
  }
  func.func @transform_3(%arg0: i32, %arg1: i32) -> (i32, i32, i32) {
    %c0_i32 = arith.constant 0 : i32
    %c0_i32_0 = arith.constant 0 : i32
    return %arg0, %c0_i32, %arg1 : i32, i32, i32
  }
}

</mosaic_0001>

<bundles_post_ra>
// kernel: tpu_custom_call.1
= control target key start
LH: loop header
LB: loop body
LE: loop exit
PB: predicated region body
PF: predicated region fallthrough
CT: control target
= control target key end

     0   :  { %8 = vsyncpa [#allocation3], 0  ;;  %s7998_s0 = inlined_call_operand.hbm [shape: f32[4,48,256], index: 0, kind: input, shape index: {}]   ;;  %s7999_s1 = inlined_call_operand.hbm [shape: f32[4,48,256], index: 1, kind: input, shape index: {}]   ;;  %s8000_s2 = inlined_call_operand.hbm [shape: f32[4,48,256], index: 2, kind: input, shape index: {}]   ;;  %s8001_s3 = inlined_call_operand.hbm [shape: f32[4,16,256], index: 3, kind: output, shape index: {}]  }
   0x1   :  { %9 = vsyncpa [#allocation6], 0 }
   0x2   :  { %10 = vsyncpa [#allocation4], 0 }
   0x3   :  { %s20_s12 = sld [smem:[#allocation0]]   ;;  %s5084_s13 = smov [#allocation2]  }
   0x4   :  { %s28_s14 = sshll.u32 %s5084_s13, 4  ;;  %s5085_s15 = smov 1536   ;;  %s29_s14 = int_to_ptr.vmem [resolvable:$true] %s28_s14 }
   0x5   :  { %35 = sst [smem:[#allocation10]] %s5085_s15  ;;  %s5086_s16 = smov 512  }
   0x6   :  { %37 = sst [smem:[#allocation10 + $0x1]] %s5086_s16  ;;  %s5087_s17 = smov 2  }
   0x7   :  { %39 = sst [smem:[#allocation10 + $0x2]] %s5087_s17  ;;  %s5088_s19 = smov 256  }
   0x8   :  { %41 = sst [smem:[#allocation10 + $0x3]] %s5088_s19  ;;  %s5089_s21 = smov 16  }
   0x9   :  { %s4128_s18 = sshll.u32 %s20_s12, 26  ;;  %43 = sst [smem:[#allocation10 + $0x4]] %s5088_s19 }
   0xa   :  { %s4129_s20 = sadd.s32 134217728, %s4128_s18  ;;  %45 = sst [smem:[#allocation10 + $0x5]] %s5089_s21 }
   0xb   :  { %s5090_s22 = smov [#allocation3]   ;;  %s5091_s23 = smov 131072  }
   0xc   :  { %47 = dma.general %s7998_s0, 2048, %s29_s14, %s5090_s22, %s5091_s23, [#allocation10], %s4129_s20, 0  }
   0xd   :  { %s53_s28 = scalar_lea.hbm %s7999_s1, 512  ;;  %s58_s29 = sld [smem:[#allocation0]]  }
   0xe   :  { %s5092_s30 = smov [#allocation5]   ;;  %s5093_s5 = smov 1536  }
   0xf   :  { %s66_s4 = sshll.u32 %s5092_s30, 4  ;;  %73 = sst [smem:[#allocation12]] %s5093_s5  ;;  %s67_s4 = int_to_ptr.vmem [resolvable:$true] %s66_s4 }
  0x10   :  { %s5094_s6 = smov 512   ;;  %s5095_s7 = smov 2  }
  0x11   :  { %75 = sst [smem:[#allocation12 + $0x1]] %s5094_s6  ;;  %s5096_s9 = smov 256  }
  0x12   :  { %77 = sst [smem:[#allocation12 + $0x2]] %s5095_s7  ;;  %s5097_s0 = smov 16  }
  0x13   :  { %s4130_s8 = sshll.u32 %s58_s29, 26  ;;  %79 = sst [smem:[#allocation12 + $0x3]] %s5096_s9 }
  0x14   :  { %s4131_s10 = sadd.s32 134217728, %s4130_s8  ;;  %81 = sst [smem:[#allocation12 + $0x4]] %s5096_s9 }
  0x15   :  { %83 = sst [smem:[#allocation12 + $0x5]] %s5097_s0  ;;  %s5098_s11 = smov [#allocation6]  }
  0x16   :  { %s5099_s12 = smov 131072  }
  0x17   :  { %85 = dma.general %s53_s28, 2048, %s67_s4, %s5098_s11, %s5099_s12, [#allocation12], %s4131_s10, 0  }
  0x18   :  { %s91_s14 = scalar_lea.hbm %s8000_s2, 1024  ;;  %s96_s15 = sld [smem:[#allocation0]]  }
  0x19   :  { %s5100_s16 = smov [#allocation7]   ;;  %s5101_s18 = smov 1536  }
  0x1a   :  { %s104_s17 = sshll.u32 %s5100_s16, 4  ;;  %111 = sst [smem:[#allocation14]] %s5101_s18  ;;  %s105_s17 = int_to_ptr.vmem [resolvable:$true] %s104_s17 }
  0x1b   :  { %s5102_s19 = smov 512   ;;  %s5103_s20 = smov 2  }
  0x1c   :  { %113 = sst [smem:[#allocation14 + $0x1]] %s5102_s19  ;;  %s5104_s22 = smov 256  }
  0x1d   :  { %115 = sst [smem:[#allocation14 + $0x2]] %s5103_s20  ;;  %s5105_s24 = smov 16  }
  0x1e   :  { %s4132_s21 = sshll.u32 %s96_s15, 26  ;;  %117 = sst [smem:[#allocation14 + $0x3]] %s5104_s22 }
  0x1f   :  { %s4133_s23 = sadd.s32 134217728, %s4132_s21  ;;  %119 = sst [smem:[#allocation14 + $0x4]] %s5104_s22 }
  0x20   :  { %121 = sst [smem:[#allocation14 + $0x5]] %s5105_s24  ;;  %s5106_s25 = smov [#allocation6]  }
  0x21   :  { %s5107_s26 = smov 131072  }
  0x22   :  { %123 = dma.general %s91_s14, 2048, %s105_s17, %s5106_s25, %s5107_s26, [#allocation14], %s4133_s23, 0  }
  0x23   :  { %5078 = dma.done.wait [#allocation3], 2048  }
  0x24   :  { %5079 = vsyncadd [#allocation3], 4294965248 }
  0x25   :  { %5080 = dma.done.wait [#allocation6], 4096  }
  0x26   :  { %5081 = vsyncadd [#allocation6], 4294963200  ;;  %v5108_v0 = vmov 0.0   ;;  %v137_v1 = vld [vmem:[#allocation2 + $0x20] sm:$0xff]  ;;  %v139_v3 = vld [vmem:[#allocation2 + $0x30] sm:$0xff]  ;;  %vm261_vm0 = vcmask 130048  }
  0x27   :  { %422 = vmatprep.mubr.f32.mxu0 %v5108_v0  ;;  %839 = vmatprep.mubr.f32.mxu1 %v5108_v0  ;;  %v133_v2 = vld [vmem:[#allocation2] sm:$0xff]  ;;  %v185_v4 = vmul.f32 0.25, %v137_v1  ;;  %v135_v6 = vld [vmem:[#allocation2 + $0x10] sm:$0xff]  ;;  %v152_v7 = vld [vmem:[#allocation5 + $0x18] sm:$0xff]  ;;  %v187_v8 = vmul.f32 0.25, %v139_v3  ;;  %s5109_s2 = smov [#allocation8]  }
  0x28   :  { %v181_v5 = vmul.f32 0.25, %v133_v2  ;;  %v183_v9 = vmul.f32 0.25, %v135_v6  ;;  %v156_v10 = vld [vmem:[#allocation5 + $0x38] sm:$0xff]  ;;  %v151_v11 = vld [vmem:[#allocation5 + $0x10] sm:$0xff]  ;;  %386 = vmatprep.subr.mxu0 %v152_v7  ;;  %v150_v13 = vld [vmem:[#allocation5 + $0x8] sm:$0xff]  ;;  %s4115_s27 = sshll.u32 %s5109_s2, 4  ;;  %s4116_s27 = int_to_ptr.vmem [resolvable:$true] %s4115_s27 }
  0x29   :  { %615 = vxpose.xlu1.b32.start [1/2] (short) %v185_v4, 128  ;;  %v155_v12 = vld [vmem:[#allocation5 + $0x30] sm:$0xff]  ;;  %803 = vmatprep.subr.mxu1 %v156_v10  ;;  %v154_v14 = vld [vmem:[#allocation5 + $0x28] sm:$0xff]  ;;  %v149_v15 = vld [vmem:[#allocation5] sm:$0xff]  ;;  %s5058_s28 = scalar_lea.vmem %s4116_s27, 2048  ;;  %p5063_p1 = scmp.lt.s32.totalorder %s4116_s27, %s4116_s27 }
  0x2a   :  { %197 = vxpose.xlu0.b32.start [1/2] (short) %v181_v5, 128  ;;  %387 = vmatpush1.msra.mxu0 %v151_v11  ;;  %v153_v16 = vld [vmem:[#allocation5 + $0x20] sm:$0xff]  ;;  %v134_v17 = vld [vmem:[#allocation2 + $0x8] sm:$0xff]  ;;  %v136_v21 = vld [vmem:[#allocation2 + $0x18] sm:$0xff]  ;;  %p5059_p0 = scmp.ne.s32.totalorder %s4116_s27, %s5058_s28  ;;  %p5064_p2 = scmp.lt.s32.totalorder %s5058_s28, %s5058_s28 }
  0x2b   :  { %804 = vmatpush1.msra.mxu1 %v155_v12  ;;  %388 = vmatprep.subr.mxu0 %v150_v13  ;;  %v138_v18 = vld [vmem:[#allocation2 + $0x28] sm:$0xff]  ;;  %v182_v19 = vmul.f32 0.25, %v134_v17  ;;  %v140_v22 = vld [vmem:[#allocation2 + $0x38] sm:$0xff]  ;;  %v184_v23 = vmul.f32 0.25, %v136_v21  ;;  %v141_v27 = vld [vmem:[#allocation2 + $0x40] sm:$0xff] }
  0x2c   :  { %805 = vmatprep.subr.mxu1 %v154_v14  ;;  %389 = vmatpush1.msra.mxu0 %v149_v15  ;;  %v186_v20 = vmul.f32 0.25, %v138_v18  ;;  %v188_v24 = vmul.f32 0.25, %v140_v22  ;;  %v160_v25 = vld [vmem:[#allocation5 + $0x58] sm:$0xff]  ;;  %v145_v28 = vld [vmem:[#allocation2 + $0x60] sm:$0xff]  ;;  %v189_v29 = vmul.f32 0.25, %v141_v27  ;;  %v143_v31 = vld [vmem:[#allocation2 + $0x50] sm:$0xff]  ;;  %p5065_p3 = por %p5064_p2, %p5063_p1 }
  0x2d   :  { %616 = vxpose.xlu1.b32.end [2/2] (short) %v187_v8, 128  ;;  %806 = vmatpush1.msra.mxu1 %v153_v16  ;;  %v164_v26 = vld [vmem:[#allocation5 + $0x78] sm:$0xff]  ;;  %v193_v30 = vmul.f32 0.25, %v145_v28  ;;  %v147_v32 = vld [vmem:[#allocation2 + $0x70] sm:$0xff]  ;;  %v191_v33 = vmul.f32 0.25, %v143_v31  ;;  %v158_v41 = vld [vmem:[#allocation5 + $0x48] sm:$0xff] }
  0x2e   :  { %198 = vxpose.xlu0.b32.end [2/2] (short) %v183_v9, 128  ;;  %1220 = vmatprep.subr.mxu0 %v160_v25  ;;  %v195_v34 = vmul.f32 0.25, %v147_v32  ;;  %v159_v37 = vld [vmem:[#allocation5 + $0x50] sm:$0xff]  ;;  %v162_v42 = vld [vmem:[#allocation5 + $0x68] sm:$0xff]  ;;  %v157_v43 = vld [vmem:[#allocation5 + $0x40] sm:$0xff]  ;;  %p5066_p4 = pnand %p5065_p3, %p5059_p0 }
  0x2f   :  { %1637 = vmatprep.subr.mxu1 %v164_v26  ;;  %v163_v38 = vld [vmem:[#allocation5 + $0x70] sm:$0xff]  ;;  %v161_v44 = vld [vmem:[#allocation5 + $0x60] sm:$0xff]  ;;  %v142_v6 = vld [vmem:[#allocation2 + $0x48] sm:$0xff] }
  0x30   :  { %v146_v7 = vld [vmem:[#allocation2 + $0x68] sm:$0xff]  ;;  %v190_v10 = vmul.f32 0.25, %v142_v6  ;;  %v144_v12 = vld [vmem:[#allocation2 + $0x58] sm:$0xff] }
  0x31   :  { %v194_v11 = vmul.f32 0.25, %v146_v7  ;;  %v148_v13 = vld [vmem:[#allocation2 + $0x78] sm:$0xff]  ;;  %v192_v16 = vmul.f32 0.25, %v144_v12 }
  0x32   :  { %v196_v17 = vmul.f32 0.25, %v148_v13 }
  0x66   :  { %647 = vxpose.xlu1.b32.start [1/2] (short) %v186_v20, 128 }
  0x67   :  { %229 = vxpose.xlu0.b32.start [1/2] (short) %v182_v19, 128 }
  0x6a   :  { %648 = vxpose.xlu1.b32.end [2/2] (short) %v188_v24, 128 }
  0x6b   :  { %230 = vxpose.xlu0.b32.end [2/2] (short) %v184_v23, 128 }
  0xa3   :  { %1449 = vxpose.xlu1.b32.start [1/2] (short) %v193_v30, 128 }
  0xa4   :  { %1032 = vxpose.xlu0.b32.start [1/2] (short) %v189_v29, 128 }
  0xa5   :  { %v631_v35 = vpop.trf.xlu1 }
  0xa6   :  { %v213_v36 = vpop.trf.xlu0  ;;  %4166 = vmatmul.mubr.msk.f32.vlgmr.msra.gmra.mxu1 %vm261_vm0, %v631_v35 }
  0xa7   :  { %4134 = vmatmul.mubr.msk.f32.vlgmr.msra.gmra.mxu0 %vm261_vm0, %v213_v36  ;;  %845 = vmatprep.mubr.f32.mxu1 %v5108_v0 }
  0xa8   :  { %428 = vmatprep.mubr.f32.mxu0 %v5108_v0  ;;  %1033 = vxpose.xlu0.b32.end [2/2] (short) %v191_v33, 128 }
  0xa9   :  { %1450 = vxpose.xlu1.b32.end [2/2] (short) %v195_v34, 128  ;;  %v632_v39 = vpop.trf.xlu1  ;;  %1221 = vmatpush1.msra.mxu0 %v159_v37 }
  0xaa   :  { %v214_v40 = vpop.trf.xlu0  ;;  %1638 = vmatpush1.msra.mxu1 %v163_v38  ;;  %1222 = vmatprep.subr.mxu0 %v158_v41 }
  0xab   :  { %4135 = vmatmul.mubr.msk.f32.gmra.mxu0 %vm261_vm0, %v214_v40  ;;  %4167 = vmatmul.mubr.msk.f32.gmra.mxu1 %vm261_vm0, %v632_v39 }
  0xac   :  { %851 = vmatprep.mubr.f32.mxu1 %v5108_v0  ;;  %434 = vmatprep.mubr.f32.mxu0 %v5108_v0 }
  0xad   :  { %1639 = vmatprep.subr.mxu1 %v162_v42  ;;  %v633_v45 = vpop.trf.xlu1  ;;  %1223 = vmatpush1.msra.mxu0 %v157_v43 }
  0xae   :  { %v215_v46 = vpop.trf.xlu0  ;;  %1640 = vmatpush1.msra.mxu1 %v161_v44 }
  0xaf   :  { %4136 = vmatmul.mubr.msk.f32.gmra.mxu0 %vm261_vm0, %v215_v46  ;;  %4168 = vmatmul.mubr.msk.f32.gmra.mxu1 %vm261_vm0, %v633_v45 }
  0xb0   :  { %857 = vmatprep.mubr.f32.mxu1 %v5108_v0  ;;  %440 = vmatprep.mubr.f32.mxu0 %v5108_v0 }
  0xb1   :  { %v634_v47 = vpop.trf.xlu1 }
  0xb2   :  { %v216_v48 = vpop.trf.xlu0 }
  0xb3   :  { %4137 = vmatmul.mubr.msk.f32.gmra.mxu0 %vm261_vm0, %v216_v48  ;;  %4169 = vmatmul.mubr.msk.f32.gmra.mxu1 %vm261_vm0, %v634_v47 }
  0xb4   :  { %863 = vmatprep.mubr.f32.mxu1 %v5108_v0  ;;  %446 = vmatprep.mubr.f32.mxu0 %v5108_v0 }
  0xb5   :  { %v635_v49 = vpop.trf.xlu1 }
  0xb6   :  { %v217_v50 = vpop.trf.xlu0 }
  0xb7   :  { %4138 = vmatmul.mubr.msk.f32.gmra.mxu0 %vm261_vm0, %v217_v50  ;;  %4170 = vmatmul.mubr.msk.f32.gmra.mxu1 %vm261_vm0, %v635_v49 }
  0xb8   :  { %869 = vmatprep.mubr.f32.mxu1 %v5108_v0  ;;  %452 = vmatprep.mubr.f32.mxu0 %v5108_v0 }
  0xb9   :  { %v636_v51 = vpop.trf.xlu1 }
  0xba   :  { %v218_v52 = vpop.trf.xlu0 }
  0xbb   :  { %4139 = vmatmul.mubr.msk.f32.gmra.mxu0 %vm261_vm0, %v218_v52  ;;  %4171 = vmatmul.mubr.msk.f32.gmra.mxu1 %vm261_vm0, %v636_v51 }
  0xbc   :  { %875 = vmatprep.mubr.f32.mxu1 %v5108_v0  ;;  %458 = vmatprep.mubr.f32.mxu0 %v5108_v0 }
  0xbd   :  { %v637_v53 = vpop.trf.xlu1 }
  0xbe   :  { %v219_v54 = vpop.trf.xlu0 }
  0xbf   :  { %4140 = vmatmul.mubr.msk.f32.gmra.mxu0 %vm261_vm0, %v219_v54  ;;  %4172 = vmatmul.mubr.msk.f32.gmra.mxu1 %vm261_vm0, %v637_v53 }
  0xc0   :  { %881 = vmatprep.mubr.f32.mxu1 %v5108_v0  ;;  %464 = vmatprep.mubr.f32.mxu0 %v5108_v0 }
  0xc1   :  { %v638_v55 = vpop.trf.xlu1 }
  0xc2   :  { %v220_v56 = vpop.trf.xlu0 }
  0xc3   :  { %4141 = vmatmul.mubr.msk.f32.gmra.mxu0 %vm261_vm0, %v220_v56  ;;  %4173 = vmatmul.mubr.msk.f32.gmra.mxu1 %vm261_vm0, %v638_v55 }
  0xc4   :  { %887 = vmatprep.mubr.f32.mxu1 %v5108_v0  ;;  %470 = vmatprep.mubr.f32.mxu0 %v5108_v0 }
  0xc5   :  { %v639_v57 = vpop.trf.xlu1 }
  0xc6   :  { %v221_v58 = vpop.trf.xlu0 }
  0xc7   :  { %4142 = vmatmul.mubr.msk.f32.gmra.mxu0 %vm261_vm0, %v221_v58  ;;  %4174 = vmatmul.mubr.msk.f32.gmra.mxu1 %vm261_vm0, %v639_v57 }
  0xc8   :  { %893 = vmatprep.mubr.f32.mxu1 %v5108_v0  ;;  %476 = vmatprep.mubr.f32.mxu0 %v5108_v0 }
  0xc9   :  { %v640_v59 = vpop.trf.xlu1 }
  0xca   :  { %v222_v60 = vpop.trf.xlu0 }
  0xcb   :  { %4143 = vmatmul.mubr.msk.f32.gmra.mxu0 %vm261_vm0, %v222_v60  ;;  %4175 = vmatmul.mubr.msk.f32.gmra.mxu1 %vm261_vm0, %v640_v59 }
  0xcc   :  { %899 = vmatprep.mubr.f32.mxu1 %v5108_v0  ;;  %482 = vmatprep.mubr.f32.mxu0 %v5108_v0 }
  0xcd   :  { %v641_v61 = vpop.trf.xlu1 }
  0xce   :  { %v223_v62 = vpop.trf.xlu0 }
  0xcf   :  { %4144 = vmatmul.mubr.msk.f32.gmra.mxu0 %vm261_vm0, %v223_v62  ;;  %4176 = vmatmul.mubr.msk.f32.gmra.mxu1 %vm261_vm0, %v641_v61 }
  0xd0   :  { %905 = vmatprep.mubr.f32.mxu1 %v5108_v0  ;;  %488 = vmatprep.mubr.f32.mxu0 %v5108_v0 }
  0xd1   :  { %v642_v63 = vpop.trf.xlu1 }
  0xd2   :  { %v224_v1 = vpop.trf.xlu0 }
  0xd3   :  { %4145 = vmatmul.mubr.msk.f32.gmra.mxu0 %vm261_vm0, %v224_v1  ;;  %4177 = vmatmul.mubr.msk.f32.gmra.mxu1 %vm261_vm0, %v642_v63 }
  0xd4   :  { %911 = vmatprep.mubr.f32.mxu1 %v5108_v0  ;;  %494 = vmatprep.mubr.f32.mxu0 %v5108_v0 }
  0xd5   :  { %v643_v2 = vpop.trf.xlu1 }
  0xd6   :  { %v225_v3 = vpop.trf.xlu0 }
  0xd7   :  { %4146 = vmatmul.mubr.msk.f32.gmra.mxu0 %vm261_vm0, %v225_v3  ;;  %4178 = vmatmul.mubr.msk.f32.gmra.mxu1 %vm261_vm0, %v643_v2 }
  0xd8   :  { %917 = vmatprep.mubr.f32.mxu1 %v5108_v0  ;;  %500 = vmatprep.mubr.f32.mxu0 %v5108_v0 }
  0xd9   :  { %v644_v4 = vpop.trf.xlu1 }
  0xda   :  { %v226_v5 = vpop.trf.xlu0 }
  0xdb   :  { %4147 = vmatmul.mubr.msk.f32.gmra.mxu0 %vm261_vm0, %v226_v5  ;;  %4179 = vmatmul.mubr.msk.f32.gmra.mxu1 %vm261_vm0, %v644_v4 }
  0xdc   :  { %506 = vmatprep.mubr.f32.mxu0 %v5108_v0  ;;  %923 = vmatprep.mubr.f32.mxu1 %v5108_v0 }
  0xdd   :  { %v645_v9 = vpop.trf.xlu1 }
  0xde   :  { %v227_v8 = vpop.trf.xlu0 }
  0xdf   :  { %4148 = vmatmul.mubr.msk.f32.gmra.mxu0 %vm261_vm0, %v227_v8  ;;  %4180 = vmatmul.mubr.msk.f32.gmra.mxu1 %vm261_vm0, %v645_v9 }
  0xe0   :  { %512 = vmatprep.mubr.f32.mxu0 %v5108_v0  ;;  %929 = vmatprep.mubr.f32.mxu1 %v5108_v0 }
  0xe1   :  { %v646_v15 = vpop.trf.xlu1  ;;  %1064 = vxpose.xlu0.b32.start [1/2] (short) %v190_v10, 128 }
  0xe2   :  { %v228_v14 = vpop.trf.xlu0  ;;  %1481 = vxpose.xlu1.b32.start [1/2] (short) %v194_v11, 128 }
  0xe3   :  { %4149 = vmatmul.mubr.msk.f32.gmra.mxu0 %vm261_vm0, %v228_v14  ;;  %4181 = vmatmul.mubr.msk.f32.gmra.mxu1 %vm261_vm0, %v646_v15 }
  0xe4   :  { %518 = vmatprep.mubr.f32.mxu0 %v5108_v0  ;;  %935 = vmatprep.mubr.f32.mxu1 %v5108_v0 }
  0xe5   :  { %v663_v19 = vpop.trf.xlu1  ;;  %1065 = vxpose.xlu0.b32.end [2/2] (short) %v192_v16, 128 }
  0xe6   :  { %v245_v18 = vpop.trf.xlu0  ;;  %1482 = vxpose.xlu1.b32.end [2/2] (short) %v196_v17, 128 }
  0xe7   :  { %4150 = vmatmul.mubr.msk.f32.gmra.mxu0 %vm261_vm0, %v245_v18  ;;  %4182 = vmatmul.mubr.msk.f32.gmra.mxu1 %vm261_vm0, %v663_v19 }
  0xe8   :  { %524 = vmatprep.mubr.f32.mxu0 %v5108_v0  ;;  %941 = vmatprep.mubr.f32.mxu1 %v5108_v0 }
  0xe9   :  { %v664_v21 = vpop.trf.xlu1 }
  0xea   :  { %v246_v20 = vpop.trf.xlu0 }
  0xeb   :  { %4151 = vmatmul.mubr.msk.f32.gmra.mxu0 %vm261_vm0, %v246_v20  ;;  %4183 = vmatmul.mubr.msk.f32.gmra.mxu1 %vm261_vm0, %v664_v21 }
  0xec   :  { %530 = vmatprep.mubr.f32.mxu0 %v5108_v0  ;;  %947 = vmatprep.mubr.f32.mxu1 %v5108_v0 }
  0xed   :  { %v665_v23 = vpop.trf.xlu1 }
  0xee   :  { %v247_v22 = vpop.trf.xlu0 }
  0xef   :  { %4152 = vmatmul.mubr.msk.f32.gmra.mxu0 %vm261_vm0, %v247_v22  ;;  %4184 = vmatmul.mubr.msk.f32.gmra.mxu1 %vm261_vm0, %v665_v23 }
  0xf0   :  { %536 = vmatprep.mubr.f32.mxu0 %v5108_v0  ;;  %953 = vmatprep.mubr.f32.mxu1 %v5108_v0 }
  0xf1   :  { %v666_v25 = vpop.trf.xlu1 }
  0xf2   :  { %v248_v24 = vpop.trf.xlu0 }
  0xf3   :  { %4153 = vmatmul.mubr.msk.f32.gmra.mxu0 %vm261_vm0, %v248_v24  ;;  %4185 = vmatmul.mubr.msk.f32.gmra.mxu1 %vm261_vm0, %v666_v25 }
  0xf4   :  { %542 = vmatprep.mubr.f32.mxu0 %v5108_v0  ;;  %959 = vmatprep.mubr.f32.mxu1 %v5108_v0 }
  0xf5   :  { %v667_v27 = vpop.trf.xlu1 }
  0xf6   :  { %v249_v26 = vpop.trf.xlu0 }
  0xf7   :  { %4154 = vmatmul.mubr.msk.f32.gmra.mxu0 %vm261_vm0, %v249_v26  ;;  %4186 = vmatmul.mubr.msk.f32.gmra.mxu1 %vm261_vm0, %v667_v27 }
  0xf8   :  { %548 = vmatprep.mubr.f32.mxu0 %v5108_v0  ;;  %965 = vmatprep.mubr.f32.mxu1 %v5108_v0 }
  0xf9   :  { %v668_v29 = vpop.trf.xlu1 }
  0xfa   :  { %v250_v28 = vpop.trf.xlu0 }
  0xfb   :  { %4155 = vmatmul.mubr.msk.f32.gmra.mxu0 %vm261_vm0, %v250_v28  ;;  %4187 = vmatmul.mubr.msk.f32.gmra.mxu1 %vm261_vm0, %v668_v29 }
  0xfc   :  { %554 = vmatprep.mubr.f32.mxu0 %v5108_v0  ;;  %971 = vmatprep.mubr.f32.mxu1 %v5108_v0 }
  0xfd   :  { %v669_v31 = vpop.trf.xlu1 }
  0xfe   :  { %v251_v30 = vpop.trf.xlu0 }
  0xff   :  { %4156 = vmatmul.mubr.msk.f32.gmra.mxu0 %vm261_vm0, %v251_v30  ;;  %4188 = vmatmul.mubr.msk.f32.gmra.mxu1 %vm261_vm0, %v669_v31 }
 0x100   :  { %560 = vmatprep.mubr.f32.mxu0 %v5108_v0  ;;  %977 = vmatprep.mubr.f32.mxu1 %v5108_v0 }
 0x101   :  { %v670_v33 = vpop.trf.xlu1 }
 0x102   :  { %v252_v32 = vpop.trf.xlu0 }
 0x103   :  { %4157 = vmatmul.mubr.msk.f32.gmra.mxu0 %vm261_vm0, %v252_v32  ;;  %4189 = vmatmul.mubr.msk.f32.gmra.mxu1 %vm261_vm0, %v670_v33 }
 0x104   :  { %566 = vmatprep.mubr.f32.mxu0 %v5108_v0  ;;  %983 = vmatprep.mubr.f32.mxu1 %v5108_v0 }
 0x105   :  { %v671_v35 = vpop.trf.xlu1 }
 0x106   :  { %v253_v34 = vpop.trf.xlu0 }
 0x107   :  { %4158 = vmatmul.mubr.msk.f32.gmra.mxu0 %vm261_vm0, %v253_v34  ;;  %4190 = vmatmul.mubr.msk.f32.gmra.mxu1 %vm261_vm0, %v671_v35 }
 0x108   :  { %572 = vmatprep.mubr.f32.mxu0 %v5108_v0  ;;  %989 = vmatprep.mubr.f32.mxu1 %v5108_v0 }
 0x109   :  { %v672_v37 = vpop.trf.xlu1 }
 0x10a   :  { %v254_v36 = vpop.trf.xlu0 }
 0x10b   :  { %4159 = vmatmul.mubr.msk.f32.gmra.mxu0 %vm261_vm0, %v254_v36  ;;  %4191 = vmatmul.mubr.msk.f32.gmra.mxu1 %vm261_vm0, %v672_v37 }
 0x10c   :  { %578 = vmatprep.mubr.f32.mxu0 %v5108_v0  ;;  %995 = vmatprep.mubr.f32.mxu1 %v5108_v0 }
 0x10d   :  { %v673_v39 = vpop.trf.xlu1 }
 0x10e   :  { %v255_v38 = vpop.trf.xlu0 }
 0x10f   :  { %4160 = vmatmul.mubr.msk.f32.gmra.mxu0 %vm261_vm0, %v255_v38  ;;  %4192 = vmatmul.mubr.msk.f32.gmra.mxu1 %vm261_vm0, %v673_v39 }
 0x110   :  { %584 = vmatprep.mubr.f32.mxu0 %v5108_v0  ;;  %1001 = vmatprep.mubr.f32.mxu1 %v5108_v0 }
 0x111   :  { %v674_v41 = vpop.trf.xlu1 }
 0x112   :  { %v256_v40 = vpop.trf.xlu0 }
 0x113   :  { %4161 = vmatmul.mubr.msk.f32.gmra.mxu0 %vm261_vm0, %v256_v40  ;;  %4193 = vmatmul.mubr.msk.f32.gmra.mxu1 %vm261_vm0, %v674_v41 }
 0x114   :  { %590 = vmatprep.mubr.f32.mxu0 %v5108_v0  ;;  %1007 = vmatprep.mubr.f32.mxu1 %v5108_v0 }
 0x115   :  { %v675_v43 = vpop.trf.xlu1 }
 0x116   :  { %v257_v42 = vpop.trf.xlu0 }
 0x117   :  { %4162 = vmatmul.mubr.msk.f32.gmra.mxu0 %vm261_vm0, %v257_v42  ;;  %4194 = vmatmul.mubr.msk.f32.gmra.mxu1 %vm261_vm0, %v675_v43 }
 0x118   :  { %596 = vmatprep.mubr.f32.mxu0 %v5108_v0  ;;  %1013 = vmatprep.mubr.f32.mxu1 %v5108_v0 }
 0x119   :  { %v676_v45 = vpop.trf.xlu1 }
 0x11a   :  { %v258_v44 = vpop.trf.xlu0 }
 0x11b   :  { %4163 = vmatmul.mubr.msk.f32.gmra.mxu0 %vm261_vm0, %v258_v44  ;;  %4195 = vmatmul.mubr.msk.f32.gmra.mxu1 %vm261_vm0, %v676_v45 }
 0x11c   :  { %602 = vmatprep.mubr.f32.mxu0 %v5108_v0  ;;  %1019 = vmatprep.mubr.f32.mxu1 %v5108_v0 }
 0x11d   :  { %v677_v47 = vpop.trf.xlu1 }
 0x11e   :  { %v259_v46 = vpop.trf.xlu0 }
 0x11f   :  { %4164 = vmatmul.mubr.msk.f32.gmra.mxu0 %vm261_vm0, %v259_v46  ;;  %4196 = vmatmul.mubr.msk.f32.gmra.mxu1 %vm261_vm0, %v677_v47 }
 0x120   :  { %608 = vmatprep.mubr.f32.mxu0 %v5108_v0  ;;  %1025 = vmatprep.mubr.f32.mxu1 %v5108_v0 }
 0x121   :  { %v678_v49 = vpop.trf.xlu1 }
 0x122   :  { %v260_v48 = vpop.trf.xlu0 }
 0x123   :  { %4165 = vmatmul.mubr.msk.f32.gmra.mxu0 %vm261_vm0, %v260_v48  ;;  %4197 = vmatmul.mubr.msk.f32.gmra.mxu1 %vm261_vm0, %v678_v49 }
 0x124   :  { %1256 = vmatprep.mubr.f32.mxu0 %v5108_v0  ;;  %1673 = vmatprep.mubr.f32.mxu1 %v5108_v0 }
 0x125   :  { %v1465_v51 = vpop.trf.xlu1 }
 0x126   :  { %v1048_v50 = vpop.trf.xlu0 }
 0x127   :  { %4198 = vmatmul.mubr.msk.f32.vlgmr.msra.gmra.mxu0 %vm261_vm0, %v1048_v50  ;;  %4230 = vmatmul.mubr.msk.f32.vlgmr.msra.gmra.mxu1 %vm261_vm0, %v1465_v51 }
 0x128   :  { %1262 = vmatprep.mubr.f32.mxu0 %v5108_v0  ;;  %1679 = vmatprep.mubr.f32.mxu1 %v5108_v0 }
 0x129   :  { %v1466_v53 = vpop.trf.xlu1 }
 0x12a   :  { %v1049_v52 = vpop.trf.xlu0 }
 0x12b   :  { %4199 = vmatmul.mubr.msk.f32.gmra.mxu0 %vm261_vm0, %v1049_v52  ;;  %4231 = vmatmul.mubr.msk.f32.gmra.mxu1 %vm261_vm0, %v1466_v53 }
 0x12c   :  { %1268 = vmatprep.mubr.f32.mxu0 %v5108_v0  ;;  %1685 = vmatprep.mubr.f32.mxu1 %v5108_v0 }
 0x12d   :  { %v1467_v55 = vpop.trf.xlu1 }
 0x12e   :  { %v1050_v54 = vpop.trf.xlu0 }
 0x12f   :  { %4200 = vmatmul.mubr.msk.f32.gmra.mxu0 %vm261_vm0, %v1050_v54  ;;  %4232 = vmatmul.mubr.msk.f32.gmra.mxu1 %vm261_vm0, %v1467_v55 }
 0x130   :  { %1274 = vmatprep.mubr.f32.mxu0 %v5108_v0  ;;  %1691 = vmatprep.mubr.f32.mxu1 %v5108_v0 }
 0x131   :  { %v1468_v57 = vpop.trf.xlu1 }
 0x132   :  { %v1051_v56 = vpop.trf.xlu0 }
 0x133   :  { %4201 = vmatmul.mubr.msk.f32.gmra.mxu0 %vm261_vm0, %v1051_v56  ;;  %4233 = vmatmul.mubr.msk.f32.gmra.mxu1 %vm261_vm0, %v1468_v57 }
 0x134   :  { %1280 = vmatprep.mubr.f32.mxu0 %v5108_v0  ;;  %1697 = vmatprep.mubr.f32.mxu1 %v5108_v0 }
 0x135   :  { %v1469_v59 = vpop.trf.xlu1 }
 0x136   :  { %v1052_v58 = vpop.trf.xlu0 }
 0x137   :  { %4202 = vmatmul.mubr.msk.f32.gmra.mxu0 %vm261_vm0, %v1052_v58  ;;  %4234 = vmatmul.mubr.msk.f32.gmra.mxu1 %vm261_vm0, %v1469_v59 }
 0x138   :  { %1286 = vmatprep.mubr.f32.mxu0 %v5108_v0  ;;  %1703 = vmatprep.mubr.f32.mxu1 %v5108_v0 }
 0x139   :  { %v1470_v61 = vpop.trf.xlu1 }
 0x13a   :  { %v1053_v60 = vpop.trf.xlu0 }
 0x13b   :  { %4203 = vmatmul.mubr.msk.f32.gmra.mxu0 %vm261_vm0, %v1053_v60  ;;  %4235 = vmatmul.mubr.msk.f32.gmra.mxu1 %vm261_vm0, %v1470_v61 }
 0x13c   :  { %1292 = vmatprep.mubr.f32.mxu0 %v5108_v0  ;;  %1709 = vmatprep.mubr.f32.mxu1 %v5108_v0 }
 0x13d   :  { %v1471_v63 = vpop.trf.xlu1 }
 0x13e   :  { %v1054_v62 = vpop.trf.xlu0 }
 0x13f   :  { %4204 = vmatmul.mubr.msk.f32.gmra.mxu0 %vm261_vm0, %v1054_v62  ;;  %4236 = vmatmul.mubr.msk.f32.gmra.mxu1 %vm261_vm0, %v1471_v63 }
 0x140   :  { %1298 = vmatprep.mubr.f32.mxu0 %v5108_v0  ;;  %1715 = vmatprep.mubr.f32.mxu1 %v5108_v0 }
 0x141   :  { %v1472_v2 = vpop.trf.xlu1 }
 0x142   :  { %v1055_v1 = vpop.trf.xlu0 }
 0x143   :  { %4205 = vmatmul.mubr.msk.f32.gmra.mxu0 %vm261_vm0, %v1055_v1  ;;  %4237 = vmatmul.mubr.msk.f32.gmra.mxu1 %vm261_vm0, %v1472_v2 }
 0x144   :  { %1304 = vmatprep.mubr.f32.mxu0 %v5108_v0  ;;  %1721 = vmatprep.mubr.f32.mxu1 %v5108_v0 }
 0x145   :  { %v1473_v4 = vpop.trf.xlu1 }
 0x146   :  { %v1056_v3 = vpop.trf.xlu0 }
 0x147   :  { %4206 = vmatmul.mubr.msk.f32.gmra.mxu0 %vm261_vm0, %v1056_v3  ;;  %4238 = vmatmul.mubr.msk.f32.gmra.mxu1 %vm261_vm0, %v1473_v4 }
 0x148   :  { %1310 = vmatprep.mubr.f32.mxu0 %v5108_v0  ;;  %1727 = vmatprep.mubr.f32.mxu1 %v5108_v0 }
 0x149   :  { %v1474_v6 = vpop.trf.xlu1 }
 0x14a   :  { %v1057_v5 = vpop.trf.xlu0 }
 0x14b   :  { %4207 = vmatmul.mubr.msk.f32.gmra.mxu0 %vm261_vm0, %v1057_v5  ;;  %4239 = vmatmul.mubr.msk.f32.gmra.mxu1 %vm261_vm0, %v1474_v6 }
 0x14c   :  { %1316 = vmatprep.mubr.f32.mxu0 %v5108_v0  ;;  %1733 = vmatprep.mubr.f32.mxu1 %v5108_v0 }
 0x14d   :  { %v1475_v8 = vpop.trf.xlu1 }
 0x14e   :  { %v1058_v7 = vpop.trf.xlu0 }
 0x14f   :  { %4208 = vmatmul.mubr.msk.f32.gmra.mxu0 %vm261_vm0, %v1058_v7  ;;  %4240 = vmatmul.mubr.msk.f32.gmra.mxu1 %vm261_vm0, %v1475_v8 }
 0x150   :  { %1322 = vmatprep.mubr.f32.mxu0 %v5108_v0  ;;  %1739 = vmatprep.mubr.f32.mxu1 %v5108_v0 }
 0x151   :  { %v1476_v10 = vpop.trf.xlu1 }
 0x152   :  { %v1059_v9 = vpop.trf.xlu0 }
 0x153   :  { %4209 = vmatmul.mubr.msk.f32.gmra.mxu0 %vm261_vm0, %v1059_v9  ;;  %4241 = vmatmul.mubr.msk.f32.gmra.mxu1 %vm261_vm0, %v1476_v10 }
 0x154   :  { %1328 = vmatprep.mubr.f32.mxu0 %v5108_v0  ;;  %1745 = vmatprep.mubr.f32.mxu1 %v5108_v0 }
 0x155   :  { %v1477_v12 = vpop.trf.xlu1 }
 0x156   :  { %v1060_v11 = vpop.trf.xlu0 }
 0x157   :  { %4210 = vmatmul.mubr.msk.f32.gmra.mxu0 %vm261_vm0, %v1060_v11  ;;  %4242 = vmatmul.mubr.msk.f32.gmra.mxu1 %vm261_vm0, %v1477_v12 }
 0x158   :  { %1334 = vmatprep.mubr.f32.mxu0 %v5108_v0  ;;  %1751 = vmatprep.mubr.f32.mxu1 %v5108_v0 }
 0x159   :  { %v1478_v14 = vpop.trf.xlu1 }
 0x15a   :  { %v1061_v13 = vpop.trf.xlu0 }
 0x15b   :  { %4211 = vmatmul.mubr.msk.f32.gmra.mxu0 %vm261_vm0, %v1061_v13  ;;  %4243 = vmatmul.mubr.msk.f32.gmra.mxu1 %vm261_vm0, %v1478_v14 }
 0x15c   :  { %1340 = vmatprep.mubr.f32.mxu0 %v5108_v0  ;;  %1757 = vmatprep.mubr.f32.mxu1 %v5108_v0 }
 0x15d   :  { %v1479_v16 = vpop.trf.xlu1 }
 0x15e   :  { %v1062_v15 = vpop.trf.xlu0 }
 0x15f   :  { %4212 = vmatmul.mubr.msk.f32.gmra.mxu0 %vm261_vm0, %v1062_v15  ;;  %4244 = vmatmul.mubr.msk.f32.gmra.mxu1 %vm261_vm0, %v1479_v16 }
 0x160   :  { %1346 = vmatprep.mubr.f32.mxu0 %v5108_v0  ;;  %1763 = vmatprep.mubr.f32.mxu1 %v5108_v0 }
 0x161   :  { %v1480_v18 = vpop.trf.xlu1 }
 0x162   :  { %v1063_v17 = vpop.trf.xlu0 }
 0x163   :  { %4213 = vmatmul.mubr.msk.f32.gmra.mxu0 %vm261_vm0, %v1063_v17  ;;  %4245 = vmatmul.mubr.msk.f32.gmra.mxu1 %vm261_vm0, %v1480_v18 }
 0x164   :  { %1769 = vmatprep.mubr.f32.mxu1 %v5108_v0  ;;  %1352 = vmatprep.mubr.f32.mxu0 %v5108_v0 }
 0x165   :  { %v1497_v20 = vpop.trf.xlu1 }
 0x166   :  { %v1080_v19 = vpop.trf.xlu0  ;;  %v5337_v22 = vpop.f32.mrf.mxu1 }
 0x167   :  { %v5335_v21 = vpop.f32.mrf.mxu0  ;;  %8435 = vst [vmem:[#allocation19_spill] sm:$0xff] %v5337_v22  ;;  %4246 = vmatmul.mubr.msk.f32.gmra.mxu1 %vm261_vm0, %v1497_v20  ;;  %4214 = vmatmul.mubr.msk.f32.gmra.mxu0 %vm261_vm0, %v1080_v19 }
 0x168   :  { %8434 = vst [vmem:[#allocation18_spill] sm:$0xff] %v5335_v21  ;;  %1775 = vmatprep.mubr.f32.mxu1 %v5108_v0  ;;  %1358 = vmatprep.mubr.f32.mxu0 %v5108_v0  ;;  %v5345_v24 = vpop.f32.mrf.mxu1 }
 0x169   :  { %v5343_v23 = vpop.f32.mrf.mxu0  ;;  %8437 = vst [vmem:[#allocation21_spill] sm:$0xff] %v5345_v24  ;;  %v1498_v26 = vpop.trf.xlu1 }
 0x16a   :  { %8436 = vst [vmem:[#allocation20_spill] sm:$0xff] %v5343_v23  ;;  %v1081_v25 = vpop.trf.xlu0 }
 0x16b   :  { %v5347_v27 = vpop.f32.mrf.mxu0  ;;  %v5349_v28 = vpop.f32.mrf.mxu1  ;;  %4247 = vmatmul.mubr.msk.f32.gmra.mxu1 %vm261_vm0, %v1498_v26  ;;  %4215 = vmatmul.mubr.msk.f32.gmra.mxu0 %vm261_vm0, %v1081_v25 }
 0x16c   :  { %1781 = vmatprep.mubr.f32.mxu1 %v5108_v0  ;;  %1364 = vmatprep.mubr.f32.mxu0 %v5108_v0 }
 0x16d   :  { %v5355_v29 = vpop.f32.mrf.mxu0  ;;  %v5357_v30 = vpop.f32.mrf.mxu1 }
 0x16e   :  { %v1082_v31 = vpop.trf.xlu0  ;;  %v1499_v32 = vpop.trf.xlu1 }
 0x16f   :  { %v5359_v33 = vpop.f32.mrf.mxu0  ;;  %v5361_v34 = vpop.f32.mrf.mxu1  ;;  %4248 = vmatmul.mubr.msk.f32.gmra.mxu1 %vm261_vm0, %v1499_v32  ;;  %4216 = vmatmul.mubr.msk.f32.gmra.mxu0 %vm261_vm0, %v1082_v31 }
 0x170   :  { %1787 = vmatprep.mubr.f32.mxu1 %v5108_v0  ;;  %1370 = vmatprep.mubr.f32.mxu0 %v5108_v0 }
 0x171   :  { %v5367_v35 = vpop.f32.mrf.mxu0  ;;  %v5369_v36 = vpop.f32.mrf.mxu1 }
 0x172   :  { %v1872_v37 = vmax.f32 %v5359_v33, %v5367_v35  ;;  %v1083_v38 = vpop.trf.xlu0  ;;  %v1500_v39 = vpop.trf.xlu1 }
 0x173   :  { %v5373_v40 = vpop.f32.mrf.mxu0  ;;  %v5375_v41 = vpop.f32.mrf.mxu1  ;;  %4249 = vmatmul.mubr.msk.f32.gmra.mxu1 %vm261_vm0, %v1500_v39  ;;  %4217 = vmatmul.mubr.msk.f32.gmra.mxu0 %vm261_vm0, %v1083_v38 }
 0x174   :  { %1873 = vmax.xlane.f32.xlu0 %v1872_v37  ;;  %1793 = vmatprep.mubr.f32.mxu1 %v5108_v0 }
 0x175   :  { %v5380_v42 = vpop.f32.mrf.mxu0  ;;  %v5382_v43 = vpop.f32.mrf.mxu1  ;;  %1376 = vmatprep.mubr.f32.mxu0 %v5108_v0 }
 0x176   :  { %v1875_v44 = vmax.f32 %v5373_v40, %v5380_v42  ;;  %v1971_v45 = vmax.f32 %v5375_v41, %v5382_v43  ;;  %v1084_v46 = vpop.trf.xlu0  ;;  %v1501_v47 = vpop.trf.xlu1 }
 0x177   :  { %v5389_v48 = vpop.f32.mrf.mxu0  ;;  %v5391_v49 = vpop.f32.mrf.mxu1  ;;  %4250 = vmatmul.mubr.msk.f32.gmra.mxu1 %vm261_vm0, %v1501_v47  ;;  %4218 = vmatmul.mubr.msk.f32.gmra.mxu0 %vm261_vm0, %v1084_v46 }
 0x178   :  { %1972 = vmax.xlane.f32.xlu1 %v1971_v45  ;;  %1876 = vmax.xlane.f32.xlu0 %v1875_v44 }
 0x179   :  { %v5395_v50 = vpop.f32.mrf.mxu0  ;;  %v5397_v51 = vpop.f32.mrf.mxu1  ;;  %1799 = vmatprep.mubr.f32.mxu1 %v5108_v0  ;;  %1382 = vmatprep.mubr.f32.mxu0 %v5108_v0 }
 0x17a   :  { %v1878_v52 = vmax.f32 %v5389_v48, %v5395_v50  ;;  %v1974_v53 = vmax.f32 %v5391_v49, %v5397_v51  ;;  %v1085_v54 = vpop.trf.xlu0  ;;  %v1502_v55 = vpop.trf.xlu1 }
 0x17b   :  { %v5405_v56 = vpop.f32.mrf.mxu0  ;;  %v5407_v57 = vpop.f32.mrf.mxu1  ;;  %4251 = vmatmul.mubr.msk.f32.gmra.mxu1 %vm261_vm0, %v1502_v55  ;;  %4219 = vmatmul.mubr.msk.f32.gmra.mxu0 %vm261_vm0, %v1085_v54 }
 0x17c   :  { %1975 = vmax.xlane.f32.xlu1 %v1974_v53  ;;  %1879 = vmax.xlane.f32.xlu0 %v1878_v52 }
 0x17d   :  { %v5411_v58 = vpop.f32.mrf.mxu0  ;;  %v5413_v59 = vpop.f32.mrf.mxu1  ;;  %1805 = vmatprep.mubr.f32.mxu1 %v5108_v0  ;;  %1388 = vmatprep.mubr.f32.mxu0 %v5108_v0 }
 0x17e   :  { %v1881_v60 = vmax.f32 %v5405_v56, %v5411_v58  ;;  %v1977_v61 = vmax.f32 %v5407_v57, %v5413_v59  ;;  %v1086_v62 = vpop.trf.xlu0  ;;  %v1503_v63 = vpop.trf.xlu1 }
 0x17f   :  { %v5421_v1 = vpop.f32.mrf.mxu0  ;;  %v5423_v2 = vpop.f32.mrf.mxu1  ;;  %4252 = vmatmul.mubr.msk.f32.gmra.mxu1 %vm261_vm0, %v1503_v63  ;;  %4220 = vmatmul.mubr.msk.f32.gmra.mxu0 %vm261_vm0, %v1086_v62 }
 0x180   :  { %1978 = vmax.xlane.f32.xlu1 %v1977_v61  ;;  %1882 = vmax.xlane.f32.xlu0 %v1881_v60 }
 0x181   :  { %v5427_v3 = vpop.f32.mrf.mxu0  ;;  %v5429_v4 = vpop.f32.mrf.mxu1  ;;  %1811 = vmatprep.mubr.f32.mxu1 %v5108_v0  ;;  %1394 = vmatprep.mubr.f32.mxu0 %v5108_v0 }
 0x182   :  { %v1884_v5 = vmax.f32 %v5421_v1, %v5427_v3  ;;  %v1980_v6 = vmax.f32 %v5423_v2, %v5429_v4  ;;  %v1087_v7 = vpop.trf.xlu0  ;;  %v1504_v8 = vpop.trf.xlu1 }
 0x183   :  { %v5437_v9 = vpop.f32.mrf.mxu0  ;;  %v5439_v10 = vpop.f32.mrf.mxu1  ;;  %4253 = vmatmul.mubr.msk.f32.gmra.mxu1 %vm261_vm0, %v1504_v8  ;;  %4221 = vmatmul.mubr.msk.f32.gmra.mxu0 %vm261_vm0, %v1087_v7 }
 0x184   :  { %1981 = vmax.xlane.f32.xlu1 %v1980_v6  ;;  %1885 = vmax.xlane.f32.xlu0 %v1884_v5 }
 0x185   :  { %v5443_v11 = vpop.f32.mrf.mxu0  ;;  %v5445_v12 = vpop.f32.mrf.mxu1  ;;  %1817 = vmatprep.mubr.f32.mxu1 %v5108_v0  ;;  %1400 = vmatprep.mubr.f32.mxu0 %v5108_v0 }
 0x186   :  { %v1887_v13 = vmax.f32 %v5437_v9, %v5443_v11  ;;  %v1983_v14 = vmax.f32 %v5439_v10, %v5445_v12  ;;  %v1088_v15 = vpop.trf.xlu0  ;;  %v1505_v16 = vpop.trf.xlu1 }
 0x187   :  { %v5453_v17 = vpop.f32.mrf.mxu0  ;;  %v5455_v18 = vpop.f32.mrf.mxu1  ;;  %4254 = vmatmul.mubr.msk.f32.gmra.mxu1 %vm261_vm0, %v1505_v16  ;;  %4222 = vmatmul.mubr.msk.f32.gmra.mxu0 %vm261_vm0, %v1088_v15 }
 0x188   :  { %1984 = vmax.xlane.f32.xlu1 %v1983_v14  ;;  %1888 = vmax.xlane.f32.xlu0 %v1887_v13 }
 0x189   :  { %v5459_v19 = vpop.f32.mrf.mxu0  ;;  %v5461_v20 = vpop.f32.mrf.mxu1  ;;  %1823 = vmatprep.mubr.f32.mxu1 %v5108_v0  ;;  %1406 = vmatprep.mubr.f32.mxu0 %v5108_v0 }
 0x18a   :  { %v1890_v25 = vmax.f32 %v5453_v17, %v5459_v19  ;;  %v1986_v26 = vmax.f32 %v5455_v18, %v5461_v20  ;;  %v1089_v31 = vpop.trf.xlu0  ;;  %v1506_v32 = vpop.trf.xlu1 }
 0x18b   :  { %v5469_v37 = vpop.f32.mrf.mxu0  ;;  %v5471_v38 = vpop.f32.mrf.mxu1  ;;  %4255 = vmatmul.mubr.msk.f32.gmra.mxu1 %vm261_vm0, %v1506_v32  ;;  %4223 = vmatmul.mubr.msk.f32.gmra.mxu0 %vm261_vm0, %v1089_v31 }
 0x18c   :  { %1987 = vmax.xlane.f32.xlu1 %v1986_v26  ;;  %1891 = vmax.xlane.f32.xlu0 %v1890_v25 }
 0x18d   :  { %v5475_v39 = vpop.f32.mrf.mxu0  ;;  %v5477_v44 = vpop.f32.mrf.mxu1  ;;  %1829 = vmatprep.mubr.f32.mxu1 %v5108_v0  ;;  %1412 = vmatprep.mubr.f32.mxu0 %v5108_v0 }
 0x18e   :  { %8438 = vst [vmem:[#allocation22_spill] sm:$0xff] %v5477_v44  ;;  %v1893_v45 = vmax.f32 %v5469_v37, %v5475_v39  ;;  %v1989_v46 = vmax.f32 %v5471_v38, %v5477_v44  ;;  %v1090_v47 = vpop.trf.xlu0  ;;  %v1507_v52 = vpop.trf.xlu1 }
 0x18f   :  { %v5485_v53 = vpop.f32.mrf.mxu0  ;;  %v5487_v54 = vpop.f32.mrf.mxu1  ;;  %4256 = vmatmul.mubr.msk.f32.gmra.mxu1 %vm261_vm0, %v1507_v52  ;;  %4224 = vmatmul.mubr.msk.f32.gmra.mxu0 %vm261_vm0, %v1090_v47 }
 0x190   :  { %8439 = vst [vmem:[#allocation23_spill] sm:$0xff] %v5485_v53  ;;  %8440 = vst [vmem:[#allocation24_spill] sm:$0xff] %v5487_v54  ;;  %1990 = vmax.xlane.f32.xlu1 %v1989_v46  ;;  %1894 = vmax.xlane.f32.xlu0 %v1893_v45 }
 0x191   :  { %v5491_v55 = vpop.f32.mrf.mxu0  ;;  %v5493_v60 = vpop.f32.mrf.mxu1  ;;  %1835 = vmatprep.mubr.f32.mxu1 %v5108_v0  ;;  %1418 = vmatprep.mubr.f32.mxu0 %v5108_v0 }
 0x192   :  { %8441 = vst [vmem:[#allocation25_spill] sm:$0xff] %v5491_v55  ;;  %8442 = vst [vmem:[#allocation26_spill] sm:$0xff] %v5493_v60  ;;  %v1896_v61 = vmax.f32 %v5485_v53, %v5491_v55  ;;  %v1992_v62 = vmax.f32 %v5487_v54, %v5493_v60  ;;  %v1091_v63 = vpop.trf.xlu0  ;;  %v1508_v5 = vpop.trf.xlu1 }
 0x193   :  { %v5501_v6 = vpop.f32.mrf.mxu0  ;;  %v5503_v7 = vpop.f32.mrf.mxu1  ;;  %4257 = vmatmul.mubr.msk.f32.gmra.mxu1 %vm261_vm0, %v1508_v5  ;;  %4225 = vmatmul.mubr.msk.f32.gmra.mxu0 %vm261_vm0, %v1091_v63 }
 0x194   :  { %8443 = vst [vmem:[#allocation27_spill] sm:$0xff] %v5501_v6  ;;  %8444 = vst [vmem:[#allocation28_spill] sm:$0xff] %v5503_v7  ;;  %1993 = vmax.xlane.f32.xlu1 %v1992_v62  ;;  %1897 = vmax.xlane.f32.xlu0 %v1896_v61 }
 0x195   :  { %v5507_v8 = vpop.f32.mrf.mxu0  ;;  %v5509_v13 = vpop.f32.mrf.mxu1  ;;  %1841 = vmatprep.mubr.f32.mxu1 %v5108_v0  ;;  %1424 = vmatprep.mubr.f32.mxu0 %v5108_v0 }
 0x196   :  { %8445 = vst [vmem:[#allocation29_spill] sm:$0xff] %v5507_v8  ;;  %8446 = vst [vmem:[#allocation30_spill] sm:$0xff] %v5509_v13  ;;  %v1899_v14 = vmax.f32 %v5501_v6, %v5507_v8  ;;  %v1995_v15 = vmax.f32 %v5503_v7, %v5509_v13  ;;  %v1092_v16 = vpop.trf.xlu0  ;;  %v1509_v25 = vpop.trf.xlu1 }
 0x197   :  { %v5517_v26 = vpop.f32.mrf.mxu0  ;;  %v5519_v31 = vpop.f32.mrf.mxu1  ;;  %4258 = vmatmul.mubr.msk.f32.gmra.mxu1 %vm261_vm0, %v1509_v25  ;;  %4226 = vmatmul.mubr.msk.f32.gmra.mxu0 %vm261_vm0, %v1092_v16 }
 0x198   :  { %8447 = vst [vmem:[#allocation31_spill] sm:$0xff] %v5517_v26  ;;  %8448 = vst [vmem:[#allocation32_spill] sm:$0xff] %v5519_v31  ;;  %1996 = vmax.xlane.f32.xlu1 %v1995_v15  ;;  %1900 = vmax.xlane.f32.xlu0 %v1899_v14 }
 0x199   :  { %v5523_v32 = vpop.f32.mrf.mxu0  ;;  %v5525_v45 = vpop.f32.mrf.mxu1  ;;  %1847 = vmatprep.mubr.f32.mxu1 %v5108_v0  ;;  %1430 = vmatprep.mubr.f32.mxu0 %v5108_v0 }
 0x19a   :  { %8449 = vst [vmem:[#allocation33_spill] sm:$0xff] %v5523_v32  ;;  %8450 = vst [vmem:[#allocation34_spill] sm:$0xff] %v5525_v45  ;;  %v1902_v46 = vmax.f32 %v5517_v26, %v5523_v32  ;;  %v1998_v47 = vmax.f32 %v5519_v31, %v5525_v45  ;;  %v1093_v52 = vpop.trf.xlu0  ;;  %v1510_v61 = vpop.trf.xlu1 }
 0x19b   :  { %v5533_v62 = vpop.f32.mrf.mxu0  ;;  %v5535_v63 = vpop.f32.mrf.mxu1  ;;  %4259 = vmatmul.mubr.msk.f32.gmra.mxu1 %vm261_vm0, %v1510_v61  ;;  %4227 = vmatmul.mubr.msk.f32.gmra.mxu0 %vm261_vm0, %v1093_v52 }
 0x19c   :  { %8451 = vst [vmem:[#allocation35_spill] sm:$0xff] %v5533_v62  ;;  %8452 = vst [vmem:[#allocation36_spill] sm:$0xff] %v5535_v63  ;;  %1999 = vmax.xlane.f32.xlu1 %v1998_v47  ;;  %1903 = vmax.xlane.f32.xlu0 %v1902_v46 }
 0x19d   :  { %v5539_v5 = vpop.f32.mrf.mxu0  ;;  %v5541_v14 = vpop.f32.mrf.mxu1  ;;  %1853 = vmatprep.mubr.f32.mxu1 %v5108_v0  ;;  %1436 = vmatprep.mubr.f32.mxu0 %v5108_v0 }
 0x19e   :  { %8453 = vst [vmem:[#allocation37_spill] sm:$0xff] %v5539_v5  ;;  %8454 = vst [vmem:[#allocation38_spill] sm:$0xff] %v5541_v14  ;;  %v1905_v15 = vmax.f32 %v5533_v62, %v5539_v5  ;;  %v2001_v16 = vmax.f32 %v5535_v63, %v5541_v14  ;;  %v1094_v25 = vpop.trf.xlu0  ;;  %v1511_v61 = vpop.trf.xlu1 }
 0x19f   :  { %v5549_v45 = vpop.f32.mrf.mxu0  ;;  %v5551_v47 = vpop.f32.mrf.mxu1  ;;  %4260 = vmatmul.mubr.msk.f32.gmra.mxu1 %vm261_vm0, %v1511_v61  ;;  %4228 = vmatmul.mubr.msk.f32.gmra.mxu0 %vm261_vm0, %v1094_v25 }
 0x1a0   :  { %8455 = vst [vmem:[#allocation39_spill] sm:$0xff] %v5549_v45  ;;  %8456 = vst [vmem:[#allocation40_spill] sm:$0xff] %v5551_v47  ;;  %2002 = vmax.xlane.f32.xlu1 %v2001_v16  ;;  %1906 = vmax.xlane.f32.xlu0 %v1905_v15 }
 0x1a1   :  { %v5555_v46 = vpop.f32.mrf.mxu0  ;;  %v5557_v52 = vpop.f32.mrf.mxu1  ;;  %1859 = vmatprep.mubr.f32.mxu1 %v5108_v0  ;;  %1442 = vmatprep.mubr.f32.mxu0 %v5108_v0 }
 0x1a2   :  { %8457 = vst [vmem:[#allocation41_spill] sm:$0xff] %v5555_v46  ;;  %8458 = vst [vmem:[#allocation42_spill] sm:$0xff] %v5557_v52  ;;  %v1908_v14 = vmax.f32 %v5549_v45, %v5555_v46  ;;  %v1095_v63 = vpop.trf.xlu0  ;;  %v1512_v31 = vpop.trf.xlu1  ;;  %v2004_v0 = vmax.f32 %v5551_v47, %v5557_v52 }
 0x1a3   :  { %v5563_v5 = vpop.f32.mrf.mxu0  ;;  %v5565_v61 = vpop.f32.mrf.mxu1  ;;  %4261 = vmatmul.mubr.msk.f32.gmra.mxu1 %vm261_vm0, %v1512_v31  ;;  %4229 = vmatmul.mubr.msk.f32.gmra.mxu0 %vm261_vm0, %v1095_v63 }
 0x1a4   :  { %8459 = vst [vmem:[#allocation43_spill] sm:$0xff] %v5563_v5  ;;  %8460 = vst [vmem:[#allocation44_spill] sm:$0xff] %v5565_v61  ;;  %1909 = vmax.xlane.f32.xlu1 %v1908_v14  ;;  %v1869_v14 = vmax.f32 %v5347_v27, %v5355_v29 }
 0x1a5   :  { %v5569_v15 = vpop.f32.mrf.mxu0  ;;  %v5571_v16 = vpop.f32.mrf.mxu1 }
 0x1a6   :  { %8461 = vst [vmem:[#allocation45_spill] sm:$0xff] %v5569_v15  ;;  %8462 = vst [vmem:[#allocation46_spill] sm:$0xff] %v5571_v16  ;;  %v1911_v25 = vmax.f32 %v5563_v5, %v5569_v15  ;;  %v2007_v62 = vmax.f32 %v5565_v61, %v5571_v16  ;;  %v1968_v5 = vmax.f32 %v5361_v34, %v5369_v36 }
 0x1a7   :  { %v5577_v46 = vpop.f32.mrf.mxu0  ;;  %v5579_v45 = vpop.f32.mrf.mxu1 }
 0x1a8   :  { %8463 = vst [vmem:[#allocation47_spill] sm:$0xff] %v5577_v46  ;;  %8464 = vst [vmem:[#allocation48_spill] sm:$0xff] %v5579_v45  ;;  %2005 = vmax.xlane.f32.xlu1 %v2004_v0  ;;  %1912 = vmax.xlane.f32.xlu0 %v1911_v25  ;;  %v1866_v25 = vmax.f32 %v5335_v21, %v5343_v23 }
 0x1a9   :  { %v5581_v31 = vpop.f32.mrf.mxu0  ;;  %v5583_v63 = vpop.f32.mrf.mxu1 }
 0x1aa   :  { %8465 = vst [vmem:[#allocation49_spill] sm:$0xff] %v5581_v31  ;;  %8466 = vst [vmem:[#allocation50_spill] sm:$0xff] %v5583_v63 }
 0x1ab   :  { %v5589_v52 = vpop.f32.mrf.mxu0  ;;  %v5591_v47 = vpop.f32.mrf.mxu1 }
 0x1ac   :  { %8467 = vst [vmem:[#allocation51_spill] sm:$0xff] %v5589_v52  ;;  %8468 = vst [vmem:[#allocation52_spill] sm:$0xff] %v5591_v47  ;;  %2008 = vmax.xlane.f32.xlu1 %v2007_v62  ;;  %1870 = vmax.xlane.f32.xlu0 %v1869_v14  ;;  %v1965_v14 = vmax.f32 %v5349_v28, %v5357_v30 }
 0x1ad   :  { %v5593_v15 = vpop.f32.mrf.mxu0  ;;  %v5595_v0 = vpop.f32.mrf.mxu1 }
 0x1ae   :  { %8469 = vst [vmem:[#allocation53_spill] sm:$0xff] %v5593_v15  ;;  %8470 = vst [vmem:[#allocation54_spill] sm:$0xff] %v5595_v0 }
 0x1af   :  { %v5601_v13 = vpop.f32.mrf.mxu0  ;;  %v5603_v7 = vpop.f32.mrf.mxu1 }
 0x1b0   :  { %8471 = vst [vmem:[#allocation55_spill] sm:$0xff] %v5601_v13  ;;  %8472 = vst [vmem:[#allocation56_spill] sm:$0xff] %v5603_v7  ;;  %1969 = vmax.xlane.f32.xlu1 %v1968_v5  ;;  %1867 = vmax.xlane.f32.xlu0 %v1866_v25  ;;  %v1962_v25 = vmax.f32 %v5337_v22, %v5345_v24 }
 0x1b1   :  { %v5605_v16 = vpop.f32.mrf.mxu0  ;;  %v5607_v62 = vpop.f32.mrf.mxu1 }
 0x1b2   :  { %8473 = vst [vmem:[#allocation57_spill] sm:$0xff] %v5605_v16  ;;  %8474 = vst [vmem:[#allocation58_spill] sm:$0xff] %v5607_v62  ;;  %v1920_v61 = vmax.f32 %v5601_v13, %v5605_v16 }
 0x1b3   :  { %v5613_v23 = vpop.f32.mrf.mxu0  ;;  %v5615_v21 = vpop.f32.mrf.mxu1 }
 0x1b4   :  { %8475 = vst [vmem:[#allocation59_spill] sm:$0xff] %v5613_v23  ;;  %8476 = vst [vmem:[#allocation60_spill] sm:$0xff] %v5615_v21  ;;  %1966 = vmax.xlane.f32.xlu1 %v1965_v14  ;;  %1921 = vmax.xlane.f32.xlu0 %v1920_v61 }
 0x1b5   :  { %v5617_v32 = vpop.f32.mrf.mxu0  ;;  %v5619_v5 = vpop.f32.mrf.mxu1 }
 0x1b6   :  { %8477 = vst [vmem:[#allocation61_spill] sm:$0xff] %v5617_v32  ;;  %8478 = vst [vmem:[#allocation62_spill] sm:$0xff] %v5619_v5  ;;  %v1923_v26 = vmax.f32 %v5613_v23, %v5617_v32  ;;  %v2019_v14 = vmax.f32 %v5615_v21, %v5619_v5 }
 0x1b7   :  { %v5625_v60 = vpop.f32.mrf.mxu0  ;;  %v5627_v54 = vpop.f32.mrf.mxu1 }
 0x1b8   :  { %8479 = vst [vmem:[#allocation63_spill] sm:$0xff] %v5625_v60  ;;  %8480 = vst [vmem:[#allocation64_spill] sm:$0xff] %v5627_v54  ;;  %1963 = vmax.xlane.f32.xlu1 %v1962_v25  ;;  %1924 = vmax.xlane.f32.xlu0 %v1923_v26 }
 0x1b9   :  { %v5631_v61 = vpop.f32.mrf.mxu0  ;;  %v5633_v16 = vpop.f32.mrf.mxu1 }
 0x1ba   :  { %8481 = vst [vmem:[#allocation65_spill] sm:$0xff] %v5631_v61  ;;  %8482 = vst [vmem:[#allocation66_spill] sm:$0xff] %v5633_v16  ;;  %v1926_v13 = vmax.f32 %v5625_v60, %v5631_v61  ;;  %v2022_v25 = vmax.f32 %v5627_v54, %v5633_v16 }
 0x1bb   :  { %v5637_v24 = vpop.f32.mrf.mxu0  ;;  %v5639_v22 = vpop.f32.mrf.mxu1 }
 0x1bc   :  { %8483 = vst [vmem:[#allocation67_spill] sm:$0xff] %v5637_v24  ;;  %8484 = vst [vmem:[#allocation68_spill] sm:$0xff] %v5639_v22  ;;  %2020 = vmax.xlane.f32.xlu1 %v2019_v14  ;;  %1927 = vmax.xlane.f32.xlu0 %v1926_v13 }
 0x1bd   :  { %v5643_v26 = vpop.f32.mrf.mxu0  ;;  %v5645_v32 = vpop.f32.mrf.mxu1 }
 0x1be   :  { %8485 = vst [vmem:[#allocation69_spill] sm:$0xff] %v5643_v26  ;;  %8486 = vst [vmem:[#allocation70_spill] sm:$0xff] %v5645_v32  ;;  %v1929_v5 = vmax.f32 %v5637_v24, %v5643_v26  ;;  %v2025_v14 = vmax.f32 %v5639_v22, %v5645_v32 }
 0x1bf   :  { %v5649_v21 = vpop.f32.mrf.mxu0  ;;  %v5651_v23 = vpop.f32.mrf.mxu1 }
 0x1c0   :  { %8487 = vst [vmem:[#allocation71_spill] sm:$0xff] %v5649_v21  ;;  %8488 = vst [vmem:[#allocation72_spill] sm:$0xff] %v5651_v23  ;;  %2023 = vmax.xlane.f32.xlu1 %v2022_v25  ;;  %1930 = vmax.xlane.f32.xlu0 %v1929_v5 }
 0x1c1   :  { %v5655_v13 = vpop.f32.mrf.mxu0  ;;  %v5657_v61 = vpop.f32.mrf.mxu1 }
 0x1c2   :  { %8489 = vst [vmem:[#allocation73_spill] sm:$0xff] %v5655_v13  ;;  %8490 = vst [vmem:[#allocation74_spill] sm:$0xff] %v5657_v61  ;;  %v1932_v16 = vmax.f32 %v5649_v21, %v5655_v13  ;;  %v2028_v25 = vmax.f32 %v5651_v23, %v5657_v61 }
 0x1c3   :  { %v5661_v54 = vpop.f32.mrf.mxu0  ;;  %v5663_v60 = vpop.f32.mrf.mxu1 }
 0x1c4   :  { %8491 = vst [vmem:[#allocation75_spill] sm:$0xff] %v5661_v54  ;;  %8492 = vst [vmem:[#allocation76_spill] sm:$0xff] %v5663_v60  ;;  %2026 = vmax.xlane.f32.xlu1 %v2025_v14  ;;  %1933 = vmax.xlane.f32.xlu0 %v1932_v16 }
 0x1c5   :  { %v5667_v5 = vpop.f32.mrf.mxu0  ;;  %v5669_v26 = vpop.f32.mrf.mxu1 }
 0x1c6   :  { %8493 = vst [vmem:[#allocation77_spill] sm:$0xff] %v5667_v5  ;;  %8494 = vst [vmem:[#allocation78_spill] sm:$0xff] %v5669_v26  ;;  %v1935_v32 = vmax.f32 %v5661_v54, %v5667_v5  ;;  %v2031_v14 = vmax.f32 %v5663_v60, %v5669_v26 }
 0x1c7   :  { %v5673_v22 = vpop.f32.mrf.mxu0  ;;  %v5675_v24 = vpop.f32.mrf.mxu1 }
 0x1c8   :  { %8495 = vst [vmem:[#allocation79_spill] sm:$0xff] %v5673_v22  ;;  %8496 = vst [vmem:[#allocation80_spill] sm:$0xff] %v5675_v24  ;;  %2029 = vmax.xlane.f32.xlu1 %v2028_v25  ;;  %1936 = vmax.xlane.f32.xlu0 %v1935_v32 }
 0x1c9   :  { %v5679_v16 = vpop.f32.mrf.mxu0  ;;  %v5681_v13 = vpop.f32.mrf.mxu1 }
 0x1ca   :  { %8497 = vst [vmem:[#allocation81_spill] sm:$0xff] %v5679_v16  ;;  %8498 = vst [vmem:[#allocation82_spill] sm:$0xff] %v5681_v13  ;;  %v1938_v61 = vmax.f32 %v5673_v22, %v5679_v16  ;;  %v2034_v25 = vmax.f32 %v5675_v24, %v5681_v13 }
 0x1cb   :  { %v5685_v23 = vpop.f32.mrf.mxu0  ;;  %v5687_v21 = vpop.f32.mrf.mxu1 }
 0x1cc   :  { %8499 = vst [vmem:[#allocation83_spill] sm:$0xff] %v5685_v23  ;;  %8500 = vst [vmem:[#allocation84_spill] sm:$0xff] %v5687_v21  ;;  %2032 = vmax.xlane.f32.xlu1 %v2031_v14  ;;  %1939 = vmax.xlane.f32.xlu0 %v1938_v61 }
 0x1cd   :  { %v5691_v32 = vpop.f32.mrf.mxu0  ;;  %v5693_v5 = vpop.f32.mrf.mxu1 }
 0x1ce   :  { %8501 = vst [vmem:[#allocation85_spill] sm:$0xff] %v5691_v32  ;;  %8502 = vst [vmem:[#allocation86_spill] sm:$0xff] %v5693_v5  ;;  %v1941_v26 = vmax.f32 %v5685_v23, %v5691_v32  ;;  %v2037_v14 = vmax.f32 %v5687_v21, %v5693_v5 }
 0x1cf   :  { %v5697_v60 = vpop.f32.mrf.mxu0  ;;  %v5699_v54 = vpop.f32.mrf.mxu1 }
 0x1d0   :  { %8503 = vst [vmem:[#allocation87_spill] sm:$0xff] %v5697_v60  ;;  %8504 = vst [vmem:[#allocation88_spill] sm:$0xff] %v5699_v54  ;;  %2035 = vmax.xlane.f32.xlu1 %v2034_v25  ;;  %1942 = vmax.xlane.f32.xlu0 %v1941_v26 }
 0x1d1   :  { %v5703_v61 = vpop.f32.mrf.mxu0  ;;  %v5705_v16 = vpop.f32.mrf.mxu1 }
 0x1d2   :  { %8505 = vst [vmem:[#allocation89_spill] sm:$0xff] %v5703_v61  ;;  %8506 = vst [vmem:[#allocation90_spill] sm:$0xff] %v5705_v16  ;;  %v1944_v13 = vmax.f32 %v5697_v60, %v5703_v61  ;;  %v2040_v25 = vmax.f32 %v5699_v54, %v5705_v16 }
 0x1d3   :  { %v5709_v24 = vpop.f32.mrf.mxu0  ;;  %v5711_v22 = vpop.f32.mrf.mxu1 }
 0x1d4   :  { %8507 = vst [vmem:[#allocation91_spill] sm:$0xff] %v5709_v24  ;;  %8508 = vst [vmem:[#allocation92_spill] sm:$0xff] %v5711_v22  ;;  %2038 = vmax.xlane.f32.xlu1 %v2037_v14  ;;  %1945 = vmax.xlane.f32.xlu0 %v1944_v13 }
 0x1d5   :  { %v5715_v26 = vpop.f32.mrf.mxu0  ;;  %v5717_v32 = vpop.f32.mrf.mxu1 }
 0x1d6   :  { %8509 = vst [vmem:[#allocation93_spill] sm:$0xff] %v5715_v26  ;;  %8510 = vst [vmem:[#allocation94_spill] sm:$0xff] %v5717_v32  ;;  %v1947_v5 = vmax.f32 %v5709_v24, %v5715_v26  ;;  %v2043_v14 = vmax.f32 %v5711_v22, %v5717_v32 }
 0x1d7   :  { %v5721_v21 = vpop.f32.mrf.mxu0  ;;  %v5723_v23 = vpop.f32.mrf.mxu1 }
 0x1d8   :  { %8511 = vst [vmem:[#allocation95_spill] sm:$0xff] %v5721_v21  ;;  %8512 = vst [vmem:[#allocation96_spill] sm:$0xff] %v5723_v23  ;;  %2041 = vmax.xlane.f32.xlu1 %v2040_v25  ;;  %1948 = vmax.xlane.f32.xlu0 %v1947_v5 }
 0x1d9   :  { %v5727_v13 = vpop.f32.mrf.mxu0  ;;  %v5729_v61 = vpop.f32.mrf.mxu1 }
 0x1da   :  { %8513 = vst [vmem:[#allocation97_spill] sm:$0xff] %v5727_v13  ;;  %8514 = vst [vmem:[#allocation98_spill] sm:$0xff] %v5729_v61  ;;  %v1950_v16 = vmax.f32 %v5721_v21, %v5727_v13  ;;  %v2046_v25 = vmax.f32 %v5723_v23, %v5729_v61 }
 0x1db   :  { %v5733_v54 = vpop.f32.mrf.mxu0  ;;  %v5735_v60 = vpop.f32.mrf.mxu1 }
 0x1dc   :  { %8515 = vst [vmem:[#allocation99_spill] sm:$0xff] %v5733_v54  ;;  %8516 = vst [vmem:[#allocation100_spill] sm:$0xff] %v5735_v60  ;;  %2044 = vmax.xlane.f32.xlu1 %v2043_v14  ;;  %1951 = vmax.xlane.f32.xlu0 %v1950_v16 }
 0x1dd   :  { %v5739_v5 = vpop.f32.mrf.mxu0  ;;  %v5741_v26 = vpop.f32.mrf.mxu1 }
 0x1de   :  { %8517 = vst [vmem:[#allocation101_spill] sm:$0xff] %v5739_v5  ;;  %8518 = vst [vmem:[#allocation102_spill] sm:$0xff] %v5741_v26  ;;  %v1953_v32 = vmax.f32 %v5733_v54, %v5739_v5  ;;  %v2049_v14 = vmax.f32 %v5735_v60, %v5741_v26  ;;  %v1917_v60 = vmax.f32 %v5589_v52, %v5593_v15 }
 0x1df   :  { %v5745_v22 = vpop.f32.mrf.mxu0  ;;  %v5747_v24 = vpop.f32.mrf.mxu1 }
 0x1e0   :  { %8519 = vst [vmem:[#allocation103_spill] sm:$0xff] %v5745_v22  ;;  %8520 = vst [vmem:[#allocation104_spill] sm:$0xff] %v5747_v24  ;;  %2047 = vmax.xlane.f32.xlu1 %v2046_v25  ;;  %1954 = vmax.xlane.f32.xlu0 %v1953_v32 }
 0x1e1   :  { %v5751_v16 = vpop.f32.mrf.mxu0  ;;  %v5753_v13 = vpop.f32.mrf.mxu1 }
 0x1e2   :  { %8521 = vst [vmem:[#allocation105_spill] sm:$0xff] %v5751_v16  ;;  %8522 = vst [vmem:[#allocation106_spill] sm:$0xff] %v5753_v13  ;;  %v1956_v61 = vmax.f32 %v5745_v22, %v5751_v16  ;;  %v2052_v25 = vmax.f32 %v5747_v24, %v5753_v13  ;;  %v2013_v13 = vmax.f32 %v5591_v47, %v5595_v0 }
 0x1e3   :  { %v5757_v23 = vpop.f32.mrf.mxu0  ;;  %v5759_v21 = vpop.f32.mrf.mxu1 }
 0x1e4   :  { %8523 = vst [vmem:[#allocation107_spill] sm:$0xff] %v5757_v23  ;;  %8524 = vst [vmem:[#allocation108_spill] sm:$0xff] %v5759_v21  ;;  %2050 = vmax.xlane.f32.xlu1 %v2049_v14  ;;  %1957 = vmax.xlane.f32.xlu0 %v1956_v61  ;;  %v1914_v61 = vmax.f32 %v5577_v46, %v5581_v31  ;;  %v2016_v14 = vmax.f32 %v5603_v7, %v5607_v62 }
 0x1e5   :  { %v5763_v32 = vpop.f32.mrf.mxu0  ;;  %v5765_v5 = vpop.f32.mrf.mxu1 }
 0x1e6   :  { %8525 = vst [vmem:[#allocation109_spill] sm:$0xff] %v5763_v32  ;;  %8526 = vst [vmem:[#allocation110_spill] sm:$0xff] %v5765_v5  ;;  %v1959_v26 = vmax.f32 %v5757_v23, %v5763_v32  ;;  %v2055_v16 = vmax.f32 %v5759_v21, %v5765_v5 }
 0x1e7   :  { %v5793_v0 = vpop.f32.mrf.mxu1 }
 0x1e8   :  { %2053 = vmax.xlane.f32.xlu1 %v2052_v25  ;;  %1960 = vmax.xlane.f32.xlu0 %v1959_v26  ;;  %v2010_v26 = vmax.f32 %v5579_v45, %v5583_v63  ;;  %v5781_v25 = vpop.f32.mrf.mxu0  ;;  %8530 = vst [vmem:[#allocation114_spill] sm:$0xff] %v5793_v0 }
 0x1e9   :  { %8527 = vst [vmem:[#allocation111_spill] sm:$0xff] %v5781_v25 }
 0x1ea   :  { %v5785_v31 = vpop.f32.mrf.mxu0 }
 0x1eb   :  { %8528 = vst [vmem:[#allocation112_spill] sm:$0xff] %v5785_v31 }
 0x1ec   :  { %2056 = vmax.xlane.f32.xlu1 %v2055_v16  ;;  %1918 = vmax.xlane.f32.xlu0 %v1917_v60  ;;  %v5791_v60 = vpop.f32.mrf.mxu0 }
 0x1ed   :  { %8529 = vst [vmem:[#allocation113_spill] sm:$0xff] %v5791_v60 }
 0x1f0   :  { %2017 = vmax.xlane.f32.xlu1 %v2016_v14  ;;  %1915 = vmax.xlane.f32.xlu0 %v1914_v61  ;;  %v5799_v14 = vpop.f32.mrf.mxu0 }
 0x1f1   :  { %8531 = vst [vmem:[#allocation115_spill] sm:$0xff] %v5799_v14 }
 0x1f2   :  { %v5807_v47 = vpop.f32.mrf.mxu0 }
 0x1f3   :  { %8533 = vst [vmem:[#allocation117_spill] sm:$0xff] %v5807_v47 }
 0x1f4   :  { %2014 = vmax.xlane.f32.xlu1 %v2013_v13  ;;  %v5815_v0 = vpop.f32.mrf.mxu0 }
 0x1f5   :  { %8535 = vst [vmem:[#allocation119_spill] sm:$0xff] %v5815_v0 }
 0x1f8   :  { %2011 = vmax.xlane.f32.xlu1 %v2010_v26  ;;  %v5801_v26 = vpop.f32.mrf.mxu1 }
 0x1f9   :  { %8532 = vst [vmem:[#allocation116_spill] sm:$0xff] %v5801_v26  ;;  %v5823_v26 = vpop.f32.mrf.mxu0 }
 0x1fa   :  { %v5809_v52 = vpop.f32.mrf.mxu1  ;;  %8537 = vst [vmem:[#allocation121_spill] sm:$0xff] %v5823_v26 }
 0x1fb   :  { %8534 = vst [vmem:[#allocation118_spill] sm:$0xff] %v5809_v52  ;;  %v5831_v52 = vpop.f32.mrf.mxu0 }
 0x1fc   :  { %v5817_v25 = vpop.f32.mrf.mxu1  ;;  %8539 = vst [vmem:[#allocation123_spill] sm:$0xff] %v5831_v52 }
 0x1fd   :  { %v5783_v15 = vpop.xlane.xlu0 %1873  ;;  %8536 = vst [vmem:[#allocation120_spill] sm:$0xff] %v5817_v25  ;;  %v5839_v25 = vpop.f32.mrf.mxu0 }
 0x1fe   :  { %v5825_v14 = vpop.f32.mrf.mxu1  ;;  %8541 = vst [vmem:[#allocation125_spill] sm:$0xff] %v5839_v25 }
 0x1ff   :  { %8538 = vst [vmem:[#allocation122_spill] sm:$0xff] %v5825_v14  ;;  %v5847_v14 = vpop.f32.mrf.mxu0 }
 0x200   :  { %v5833_v24 = vpop.f32.mrf.mxu1  ;;  %8544 = vst [vmem:[#allocation128_spill] sm:$0xff] %v5847_v14 }
 0x201   :  { %v5787_v46 = vpop.xlane.xlu1 %1972  ;;  %v5789_v16 = vpop.xlane.xlu0 %1876  ;;  %8540 = vst [vmem:[#allocation124_spill] sm:$0xff] %v5833_v24 }
 0x202   :  { %v5841_v47 = vpop.f32.mrf.mxu1  ;;  %v5855_v24 = vpop.f32.mrf.mxu0 }
 0x203   :  { %8542 = vst [vmem:[#allocation126_spill] sm:$0xff] %v5841_v47  ;;  %8548 = vst [vmem:[#allocation132_spill] sm:$0xff] %v5855_v24 }
 0x204   :  { %v5849_v26 = vpop.f32.mrf.mxu1  ;;  %v5861_v25 = vpop.f32.mrf.mxu0 }
 0x205   :  { %v5795_v61 = vpop.xlane.xlu1 %1975  ;;  %v5797_v13 = vpop.xlane.xlu0 %1879  ;;  %8545 = vst [vmem:[#allocation129_spill] sm:$0xff] %v5849_v26  ;;  %8551 = vst [vmem:[#allocation135_spill] sm:$0xff] %v5861_v25 }
 0x206   :  { %v5857_v8 = vpop.f32.mrf.mxu1  ;;  %v5869_v14 = vpop.f32.mrf.mxu0 }
 0x207   :  { %8549 = vst [vmem:[#allocation133_spill] sm:$0xff] %v5857_v8  ;;  %8555 = vst [vmem:[#allocation139_spill] sm:$0xff] %v5869_v14 }
 0x208   :  { %v5863_v47 = vpop.f32.mrf.mxu1  ;;  %v5877_v24 = vpop.f32.mrf.mxu0 }
 0x209   :  { %v5803_v63 = vpop.xlane.xlu1 %1978  ;;  %v5805_v45 = vpop.xlane.xlu0 %1882  ;;  %8552 = vst [vmem:[#allocation136_spill] sm:$0xff] %v5863_v47  ;;  %8559 = vst [vmem:[#allocation143_spill] sm:$0xff] %v5877_v24 }
 0x20a   :  { %v5871_v26 = vpop.f32.mrf.mxu1  ;;  %v5885_v47 = vpop.f32.mrf.mxu0 }
 0x20b   :  { %8556 = vst [vmem:[#allocation140_spill] sm:$0xff] %v5871_v26  ;;  %8563 = vst [vmem:[#allocation147_spill] sm:$0xff] %v5885_v47  ;;  %v2254_v26 = vsub.f32 %v5359_v33, %v5783_v15 }
 0x20c   :  { %v5879_v8 = vpop.f32.mrf.mxu1 }
 0x20d   :  { %v5811_v62 = vpop.xlane.xlu1 %1981  ;;  %v5813_v7 = vpop.xlane.xlu0 %1885  ;;  %8560 = vst [vmem:[#allocation144_spill] sm:$0xff] %v5879_v8  ;;  %v2255_v8 = vsub.f32 %v5367_v35, %v5783_v15  ;;  %v2514_v55 = vmul.f32 1.442695, %v2254_v26 }
 0x20f   :  { %v2516_v33 = vmul.f32 1.442695, %v2255_v8 }
 0x211   :  { %v5819_v31 = vpop.xlane.xlu1 %1984  ;;  %v5821_v60 = vpop.xlane.xlu0 %1888 }
 0x215   :  { %v5827_v5 = vpop.xlane.xlu1 %1987  ;;  %v5829_v21 = vpop.xlane.xlu0 %1891 }
 0x219   :  { %v5835_v32 = vpop.xlane.xlu1 %1990  ;;  %v5837_v23 = vpop.xlane.xlu0 %1894 }
 0x21d   :  { %v5843_v0 = vpop.xlane.xlu1 %1993  ;;  %v5845_v22 = vpop.xlane.xlu0 %1897 }
 0x21e   :  { %8543 = vst [vmem:[#allocation127_spill] sm:$0xff] %v5843_v0 }
 0x221   :  { %v5851_v54 = vpop.xlane.xlu1 %1996  ;;  %v5853_v52 = vpop.xlane.xlu0 %1900 }
 0x222   :  { %8546 = vst [vmem:[#allocation130_spill] sm:$0xff] %v5851_v54  ;;  %8547 = vst [vmem:[#allocation131_spill] sm:$0xff] %v5853_v52 }
 0x225   :  { %v5859_v6 = vpop.xlane.xlu1 %1999  ;;  %v5865_v0 = vpop.xlane.xlu0 %1903 }
 0x226   :  { %8550 = vst [vmem:[#allocation134_spill] sm:$0xff] %v5859_v6  ;;  %8553 = vst [vmem:[#allocation137_spill] sm:$0xff] %v5865_v0  ;;  %v5887_v0 = vpop.f32.mrf.mxu1 }
 0x227   :  { %8564 = vst [vmem:[#allocation148_spill] sm:$0xff] %v5887_v0 }
 0x228   :  { %v5896_v24 = vpop.f32.mrf.mxu1 }
 0x229   :  { %v5867_v44 = vpop.xlane.xlu1 %2002  ;;  %v5873_v54 = vpop.xlane.xlu0 %1906  ;;  %8567 = vst [vmem:[#allocation151_spill] sm:$0xff] %v5896_v24 }
 0x22a   :  { %8554 = vst [vmem:[#allocation138_spill] sm:$0xff] %v5867_v44  ;;  %8557 = vst [vmem:[#allocation141_spill] sm:$0xff] %v5873_v54  ;;  %v5894_v54 = vpop.f32.mrf.mxu0  ;;  %v5903_v53 = vpop.f32.mrf.mxu1 }
 0x22b   :  { %8566 = vst [vmem:[#allocation150_spill] sm:$0xff] %v5894_v54  ;;  %8569 = vst [vmem:[#allocation153_spill] sm:$0xff] %v5903_v53 }
 0x22c   :  { %v5913_v15 = vpop.f32.mrf.mxu1 }
 0x22d   :  { %v5875_v52 = vpop.xlane.xlu1 %1909  ;;  %8571 = vst [vmem:[#allocation155_spill] sm:$0xff] %v5913_v15 }
 0x22e   :  { %8558 = vst [vmem:[#allocation142_spill] sm:$0xff] %v5875_v52 }
 0x231   :  { %v5881_v6 = vpop.xlane.xlu1 %2005  ;;  %v5883_v25 = vpop.xlane.xlu0 %1912 }
 0x232   :  { %8561 = vst [vmem:[#allocation145_spill] sm:$0xff] %v5881_v6  ;;  %8562 = vst [vmem:[#allocation146_spill] sm:$0xff] %v5883_v25 }
 0x235   :  { %v5889_v44 = vpop.xlane.xlu1 %2008  ;;  %v1871_v14 = vpop.xlane.xlu0 %1870 }
 0x236   :  { %8565 = vst [vmem:[#allocation149_spill] sm:$0xff] %v5889_v44  ;;  %v2252_v52 = vsub.f32 %v5347_v27, %v1871_v14  ;;  %v2253_v6 = vsub.f32 %v5355_v29, %v1871_v14  ;;  %v5901_v44 = vpop.f32.mrf.mxu0  ;;  %v2256_v29 = vsub.f32 %v5373_v40, %v5789_v16  ;;  %v5919_v40 = vpop.f32.mrf.mxu1  ;;  %v2259_v14 = vsub.f32 %v5395_v50, %v5797_v13 }
 0x237   :  { %8568 = vst [vmem:[#allocation152_spill] sm:$0xff] %v5901_v44  ;;  %8573 = vst [vmem:[#allocation157_spill] sm:$0xff] %v5919_v40  ;;  %v2322_v50 = vsub.f32 %v5391_v49, %v5795_v61 }
 0x238   :  { %v2510_v47 = vmul.f32 1.442695, %v2252_v52  ;;  %v2512_v25 = vmul.f32 1.442695, %v2253_v6  ;;  %v5911_v52 = vpop.f32.mrf.mxu0 }
 0x239   :  { %v1970_v0 = vpop.xlane.xlu1 %1969  ;;  %8570 = vst [vmem:[#allocation154_spill] sm:$0xff] %v5911_v52 }
 0x23a   :  { %4290 = vpow2.f32 %v2510_v47  ;;  %v2318_v27 = vsub.f32 %v5361_v34, %v1970_v0  ;;  %v2319_v24 = vsub.f32 %v5369_v36, %v1970_v0  ;;  %v2257_v34 = vsub.f32 %v5380_v42, %v5789_v16  ;;  %v5929_v16 = vpop.f32.mrf.mxu1 }
 0x23b   :  { %4292 = vpow2.f32 %v2512_v25  ;;  %v5917_v25 = vpop.f32.mrf.mxu0  ;;  %8575 = vst [vmem:[#allocation159_spill] sm:$0xff] %v5929_v16 }
 0x23c   :  { %4294 = vpow2.f32 %v2514_v55  ;;  %v2642_v8 = vmul.f32 1.442695, %v2318_v27  ;;  %v2644_v0 = vmul.f32 1.442695, %v2319_v24  ;;  %v2518_v55 = vmul.f32 1.442695, %v2256_v29  ;;  %v5939_v29 = vpop.f32.mrf.mxu1 }
 0x23d   :  { %v1967_v54 = vpop.xlane.xlu1 %1966  ;;  %4296 = vpow2.f32 %v2516_v33  ;;  %8572 = vst [vmem:[#allocation156_spill] sm:$0xff] %v5917_v25  ;;  %v2258_v24 = vsub.f32 %v5389_v48, %v5797_v13  ;;  %v5927_v42 = vpop.f32.mrf.mxu0  ;;  %8578 = vst [vmem:[#allocation162_spill] sm:$0xff] %v5939_v29  ;;  %v2323_v13 = vsub.f32 %v5397_v51, %v5795_v61  ;;  %v2650_v51 = vmul.f32 1.442695, %v2322_v50 }
 0x23e   :  { %v2316_v35 = vsub.f32 %v5349_v28, %v1967_v54  ;;  %v2317_v6 = vsub.f32 %v5357_v30, %v1967_v54  ;;  %v2520_v28 = vmul.f32 1.442695, %v2257_v34  ;;  %v2320_v30 = vsub.f32 %v5375_v41, %v5787_v46  ;;  %8574 = vst [vmem:[#allocation158_spill] sm:$0xff] %v5927_v42 }
 0x23f   :  { %v2321_v54 = vsub.f32 %v5382_v43, %v5787_v46  ;;  %v2522_v43 = vmul.f32 1.442695, %v2258_v24  ;;  %v5937_v46 = vpop.f32.mrf.mxu0 }
 0x240   :  { %v2638_v47 = vmul.f32 1.442695, %v2316_v35  ;;  %v2640_v36 = vmul.f32 1.442695, %v2317_v6  ;;  %v2646_v26 = vmul.f32 1.442695, %v2320_v30 }
 0x241   :  { %v2648_v41 = vmul.f32 1.442695, %v2321_v54  ;;  %v2524_v35 = vmul.f32 1.442695, %v2259_v14  ;;  %v2652_v30 = vmul.f32 1.442695, %v2323_v13  ;;  %v2262_v13 = vsub.f32 %v5421_v1, %v5813_v7 }
 0x242   :  { %4298 = vpow2.f32 %v2638_v47  ;;  %v5953_v47 = vpop.f32.mrf.mxu0 }
 0x243   :  { %4300 = vpow2.f32 %v2640_v36  ;;  %v5955_v36 = vpop.f32.mrf.mxu1 }
 0x244   :  { %4302 = vpow2.f32 %v2642_v8  ;;  %v2260_v8 = vsub.f32 %v5405_v56, %v5805_v45  ;;  %8581 = vst [vmem:[#allocation165_spill] sm:$0xff] %v5955_v36  ;;  %v2088_v56 = vmax.f32 %v5937_v46, %v5953_v47 }
 0x245   :  { %4304 = vpow2.f32 %v2644_v0 }
 0x246   :  { %4306 = vpow2.f32 %v2518_v55  ;;  %v2261_v55 = vsub.f32 %v5411_v58, %v5805_v45  ;;  %v2526_v14 = vmul.f32 1.442695, %v2260_v8  ;;  %v5973_v58 = vpop.f32.mrf.mxu1  ;;  %v5975_v45 = vpop.f32.mrf.mxu0 }
 0x247   :  { %4308 = vpow2.f32 %v2520_v28  ;;  %v5933_v33 = vpop.eup %4290 }
 0x248   :  { %8576 = vst [vmem:[#allocation160_spill] sm:$0xff] %v5933_v33  ;;  %v5935_v27 = vpop.eup %4292  ;;  %4310 = vpow2.f32 %v2646_v26  ;;  %v5989_v8 = vpop.f32.mrf.mxu1 }
 0x249   :  { %8577 = vst [vmem:[#allocation161_spill] sm:$0xff] %v5935_v27  ;;  %v5941_v48 = vpop.eup %4294  ;;  %v3021_v6 = vadd.f32 %v5935_v27, %v5933_v33  ;;  %4312 = vpow2.f32 %v2648_v41  ;;  %v2528_v41 = vmul.f32 1.442695, %v2261_v55  ;;  %v5991_v55 = vpop.f32.mrf.mxu0  ;;  %v2184_v1 = vmax.f32 %v5973_v58, %v5989_v8 }
 0x24a   :  { %8579 = vst [vmem:[#allocation163_spill] sm:$0xff] %v5941_v48  ;;  %v5945_v34 = vpop.eup %4296  ;;  %4314 = vpow2.f32 %v2522_v43 }
 0x24b   :  { %8580 = vst [vmem:[#allocation164_spill] sm:$0xff] %v5945_v34  ;;  %3022 = vadd.xlane.f32.xlu0 %v3021_v6  ;;  %4316 = vpow2.f32 %v2524_v35  ;;  %v3024_v49 = vadd.f32 %v5945_v34, %v5941_v48  ;;  %v2324_v35 = vsub.f32 %v5407_v57, %v5803_v63  ;;  %v2325_v6 = vsub.f32 %v5413_v59, %v5803_v63 }
 0x24c   :  { %4318 = vpow2.f32 %v2650_v51  ;;  %v2263_v57 = vsub.f32 %v5427_v3, %v5813_v7  ;;  %v2530_v3 = vmul.f32 1.442695, %v2262_v13  ;;  %v6007_v7 = vpop.f32.mrf.mxu0 }
 0x24d   :  { %4320 = vpow2.f32 %v2652_v30  ;;  %v2654_v63 = vmul.f32 1.442695, %v2324_v35  ;;  %v2656_v30 = vmul.f32 1.442695, %v2325_v6  ;;  %8590 = vst [vmem:[#allocation174_spill] sm:$0xff] %v6007_v7  ;;  %v2326_v6 = vsub.f32 %v5423_v2, %v5811_v62 }
 0x24e   :  { %4322 = vpow2.f32 %v2526_v14  ;;  %v2265_v2 = vsub.f32 %v5443_v11, %v5821_v60 }
 0x24f   :  { %v5957_v0 = vpop.eup %4298  ;;  %3025 = vadd.xlane.f32.xlu0 %v3024_v49  ;;  %4324 = vpow2.f32 %v2528_v41  ;;  %v5997_v49 = vpop.f32.mrf.mxu1  ;;  %v2532_v41 = vmul.f32 1.442695, %v2263_v57  ;;  %v2264_v57 = vsub.f32 %v5437_v9, %v5821_v60 }
 0x250   :  { %8582 = vst [vmem:[#allocation166_spill] sm:$0xff] %v5957_v0  ;;  %v5963_v28 = vpop.eup %4300  ;;  %4326 = vpow2.f32 %v2654_v63 }
 0x251   :  { %8583 = vst [vmem:[#allocation167_spill] sm:$0xff] %v5963_v28  ;;  %v5965_v61 = vpop.eup %4302  ;;  %v3117_v54 = vadd.f32 %v5963_v28, %v5957_v0  ;;  %4328 = vpow2.f32 %v2656_v30  ;;  %v2534_v11 = vmul.f32 1.442695, %v2264_v57  ;;  %v2329_v57 = vsub.f32 %v5445_v12, %v5819_v31 }
 0x252   :  { %8584 = vst [vmem:[#allocation168_spill] sm:$0xff] %v5965_v61  ;;  %v5971_v24 = vpop.eup %4304  ;;  %4330 = vpow2.f32 %v2530_v3 }
 0x253   :  { %8585 = vst [vmem:[#allocation169_spill] sm:$0xff] %v5971_v24  ;;  %v5977_v26 = vpop.eup %4306  ;;  %3118 = vadd.xlane.f32.xlu1 %v3117_v54  ;;  %2089 = vmax.xlane.f32.xlu0 %v2088_v56  ;;  %v3120_v50 = vadd.f32 %v5971_v24, %v5965_v61  ;;  %v2091_v56 = vmax.f32 %v5975_v45, %v5991_v55  ;;  %4332 = vpow2.f32 %v2532_v41 }
 0x254   :  { %8586 = vst [vmem:[#allocation170_spill] sm:$0xff] %v5977_v26  ;;  %v5979_v43 = vpop.eup %4308 }
 0x255   :  { %8587 = vst [vmem:[#allocation171_spill] sm:$0xff] %v5979_v43  ;;  %v3027_v59 = vadd.f32 %v5979_v43, %v5977_v26  ;;  %v5999_v51 = vpop.eup %4310 }
 0x256   :  { %8588 = vst [vmem:[#allocation172_spill] sm:$0xff] %v5999_v51  ;;  %v6005_v54 = vpop.eup %4312 }
 0x257   :  { %3121 = vadd.xlane.f32.xlu1 %v3120_v50  ;;  %3028 = vadd.xlane.f32.xlu0 %v3027_v59  ;;  %8589 = vst [vmem:[#allocation173_spill] sm:$0xff] %v6005_v54  ;;  %v6009_v14 = vpop.eup %4314  ;;  %v6015_v50 = vpop.f32.mrf.mxu1  ;;  %v2327_v59 = vsub.f32 %v5429_v4, %v5811_v62  ;;  %v3123_v13 = vadd.f32 %v6005_v54, %v5999_v51  ;;  %v2658_v62 = vmul.f32 1.442695, %v2326_v6  ;;  %v2536_v6 = vmul.f32 1.442695, %v2265_v2 }
 0x258   :  { %8591 = vst [vmem:[#allocation175_spill] sm:$0xff] %v6009_v14  ;;  %v6011_v35 = vpop.eup %4316  ;;  %8593 = vst [vmem:[#allocation177_spill] sm:$0xff] %v6015_v50  ;;  %v2187_v9 = vmax.f32 %v5997_v49, %v6015_v50  ;;  %v2266_v2 = vsub.f32 %v5453_v17, %v5829_v21  ;;  %v2269_v51 = vsub.f32 %v5475_v39, %v5837_v23 }
 0x259   :  { %8592 = vst [vmem:[#allocation176_spill] sm:$0xff] %v6011_v35  ;;  %v6025_v63 = vpop.f32.mrf.mxu1  ;;  %v3030_v4 = vadd.f32 %v6011_v35, %v6009_v14  ;;  %v2660_v3 = vmul.f32 1.442695, %v2327_v59  ;;  %4334 = vpow2.f32 %v2658_v62  ;;  %v2328_v59 = vsub.f32 %v5439_v10, %v5819_v31  ;;  %v8622_v14 = vld [vmem:[#allocation127_spill] sm:$0xff] }
 0x25a   :  { %8595 = vst [vmem:[#allocation179_spill] sm:$0xff] %v6025_v63  ;;  %v2267_v10 = vsub.f32 %v5459_v19, %v5829_v21  ;;  %v2332_v54 = vsub.f32 %v5471_v38, %v5835_v32 }
 0x25b   :  { %2185 = vmax.xlane.f32.xlu1 %v2184_v1  ;;  %2092 = vmax.xlane.f32.xlu0 %v2091_v56  ;;  %v6023_v1 = vpop.f32.mrf.mxu0  ;;  %v6033_v56 = vpop.eup %4318  ;;  %4336 = vpow2.f32 %v2660_v3 }
 0x25c   :  { %8594 = vst [vmem:[#allocation178_spill] sm:$0xff] %v6023_v1  ;;  %8597 = vst [vmem:[#allocation181_spill] sm:$0xff] %v6033_v56  ;;  %v2094_v41 = vmax.f32 %v6007_v7, %v6023_v1  ;;  %v6039_v0 = vpop.eup %4320  ;;  %v6041_v60 = vpop.f32.mrf.mxu1  ;;  %4338 = vpow2.f32 %v2534_v11  ;;  %v2330_v11 = vsub.f32 %v5455_v18, %v5827_v5  ;;  %v2540_v18 = vmul.f32 1.442695, %v2267_v10  ;;  %v8610_v10 = vld [vmem:[#allocation23_spill] sm:$0xff]  ;;  %v8835_v1 = vld [vmem:[#allocation74_spill] sm:$0xff] }
 0x25d   :  { %v6031_v30 = vpop.f32.mrf.mxu0  ;;  %8598 = vst [vmem:[#allocation182_spill] sm:$0xff] %v6039_v0  ;;  %8599 = vst [vmem:[#allocation183_spill] sm:$0xff] %v6041_v60  ;;  %v3126_v24 = vadd.f32 %v6039_v0, %v6033_v56  ;;  %4340 = vpow2.f32 %v2536_v6  ;;  %v2190_v17 = vmax.f32 %v6025_v63, %v6041_v60  ;;  %v2268_v6 = vsub.f32 %v5469_v37, %v5837_v23  ;;  %v8620_v0 = vld [vmem:[#allocation29_spill] sm:$0xff] }
 0x25e   :  { %8596 = vst [vmem:[#allocation180_spill] sm:$0xff] %v6031_v30  ;;  %v2666_v48 = vmul.f32 1.442695, %v2330_v11 }
 0x25f   :  { %3124 = vadd.xlane.f32.xlu1 %v3123_v13  ;;  %3031 = vadd.xlane.f32.xlu0 %v3030_v4  ;;  %v6043_v13 = vpop.eup %4322  ;;  %v6049_v61 = vpop.f32.mrf.mxu0  ;;  %v2542_v39 = vmul.f32 1.442695, %v2268_v6 }
 0x260   :  { %8600 = vst [vmem:[#allocation184_spill] sm:$0xff] %v6043_v13  ;;  %v6045_v28 = vpop.eup %4324  ;;  %8602 = vst [vmem:[#allocation186_spill] sm:$0xff] %v6049_v61  ;;  %v6051_v4 = vpop.f32.mrf.mxu1  ;;  %v2097_v21 = vmax.f32 %v6031_v30, %v6049_v61 }
 0x261   :  { %8601 = vst [vmem:[#allocation185_spill] sm:$0xff] %v6045_v28  ;;  %8603 = vst [vmem:[#allocation187_spill] sm:$0xff] %v6051_v4  ;;  %v6059_v62 = vpop.f32.mrf.mxu0  ;;  %v3033_v3 = vadd.f32 %v6045_v28, %v6043_v13  ;;  %v6067_v31 = vpop.eup %4326 }
 0x262   :  { %v6065_v12 = vpop.f32.mrf.mxu1  ;;  %8605 = vst [vmem:[#allocation189_spill] sm:$0xff] %v6067_v31  ;;  %v6075_v19 = vpop.eup %4328 }
 0x263   :  { %2188 = vmax.xlane.f32.xlu1 %v2187_v9  ;;  %2095 = vmax.xlane.f32.xlu0 %v2094_v41  ;;  %v2662_v9 = vmul.f32 1.442695, %v2328_v59  ;;  %8604 = vst [vmem:[#allocation188_spill] sm:$0xff] %v6065_v12  ;;  %v2664_v41 = vmul.f32 1.442695, %v2329_v57  ;;  %8606 = vst [vmem:[#allocation190_spill] sm:$0xff] %v6075_v19  ;;  %v6079_v59 = vpop.f32.mrf.mxu0  ;;  %v6083_v57 = vpop.eup %4330  ;;  %v3129_v23 = vadd.f32 %v6075_v19, %v6067_v31 }
 0x264   :  { %v6081_v33 = vpop.f32.mrf.mxu1  ;;  %8608 = vst [vmem:[#allocation192_spill] sm:$0xff] %v6083_v57  ;;  %v6089_v27 = vpop.eup %4332 }
 0x265   :  { %8607 = vst [vmem:[#allocation191_spill] sm:$0xff] %v6081_v33  ;;  %8609 = vst [vmem:[#allocation193_spill] sm:$0xff] %v6089_v27  ;;  %4342 = vpow2.f32 %v2662_v9  ;;  %v6093_v37 = vpop.f32.mrf.mxu0  ;;  %v3036_v38 = vadd.f32 %v6089_v27, %v6083_v57 }
 0x266   :  { %4344 = vpow2.f32 %v2664_v41  ;;  %v6101_v9 = vpop.f32.mrf.mxu1 }
 0x267   :  { %3127 = vadd.xlane.f32.xlu1 %v3126_v24  ;;  %3034 = vadd.xlane.f32.xlu0 %v3033_v3  ;;  %v2538_v24 = vmul.f32 1.442695, %v2266_v2  ;;  %v6087_v3 = vpop.xlane.xlu0 %1867  ;;  %v2331_v2 = vsub.f32 %v5461_v20, %v5827_v5  ;;  %8611 = vst [vmem:[#allocation23_spill] sm:$0xff] %v6101_v9  ;;  %v2544_v20 = vmul.f32 1.442695, %v2269_v51  ;;  %v8612_v5 = vld [vmem:[#allocation25_spill] sm:$0xff] }
 0x268   :  { %v2271_v41 = vsub.f32 %v8612_v5, %v5845_v22  ;;  %v6111_v6 = vpop.f32.mrf.mxu1  ;;  %v8616_v5 = vld [vmem:[#allocation131_spill] sm:$0xff] }
 0x269   :  { %4346 = vpow2.f32 %v2538_v24  ;;  %v2668_v11 = vmul.f32 1.442695, %v2331_v2  ;;  %v6109_v24 = vpop.f32.mrf.mxu0  ;;  %v2100_v2 = vmax.f32 %v6059_v62, %v6079_v59  ;;  %v2273_v31 = vsub.f32 %v8620_v0, %v8616_v5 }
 0x26a   :  { %4348 = vpow2.f32 %v2540_v18  ;;  %v2670_v18 = vmul.f32 1.442695, %v2332_v54  ;;  %v2548_v54 = vmul.f32 1.442695, %v2271_v41  ;;  %v6135_v19 = vpop.f32.mrf.mxu1  ;;  %v8625_v41 = vld [vmem:[#allocation137_spill] sm:$0xff] }
 0x26b   :  { %2191 = vmax.xlane.f32.xlu1 %v2190_v17  ;;  %2098 = vmax.xlane.f32.xlu0 %v2097_v21  ;;  %v2270_v17 = vsub.f32 %v8610_v10, %v5845_v22  ;;  %v8613_v21 = vld [vmem:[#allocation22_spill] sm:$0xff]  ;;  %v6113_v10 = vpop.eup %4334  ;;  %4350 = vpow2.f32 %v2666_v48  ;;  %v6115_v51 = vpop.xlane.xlu0 %1921  ;;  %v2193_v22 = vmax.f32 %v6051_v4, %v6065_v12 }
 0x26c   :  { %v2333_v56 = vsub.f32 %v8613_v21, %v5835_v32  ;;  %8614 = vst [vmem:[#allocation25_spill] sm:$0xff] %v6113_v10  ;;  %4352 = vpow2.f32 %v2542_v39  ;;  %v8617_v21 = vld [vmem:[#allocation27_spill] sm:$0xff]  ;;  %v6125_v26 = vpop.f32.mrf.mxu0  ;;  %v8623_v39 = vld [vmem:[#allocation24_spill] sm:$0xff] }
 0x26d   :  { %v2546_v32 = vmul.f32 1.442695, %v2270_v17  ;;  %v2272_v34 = vsub.f32 %v8617_v21, %v8616_v5  ;;  %8618 = vst [vmem:[#allocation131_spill] sm:$0xff] %v6125_v26  ;;  %4354 = vpow2.f32 %v2544_v20  ;;  %v2334_v17 = vsub.f32 %v8623_v39, %v8622_v14  ;;  %v8624_v21 = vld [vmem:[#allocation26_spill] sm:$0xff]  ;;  %v8628_v39 = vld [vmem:[#allocation33_spill] sm:$0xff] }
 0x26e   :  { %4356 = vpow2.f32 %v2668_v11  ;;  %v2672_v43 = vmul.f32 1.442695, %v2333_v56  ;;  %v2335_v26 = vsub.f32 %v8624_v21, %v8622_v14  ;;  %v6143_v11 = vpop.f32.mrf.mxu0  ;;  %v2552_v56 = vmul.f32 1.442695, %v2273_v31 }
 0x26f   :  { %3130 = vadd.xlane.f32.xlu1 %v3129_v23  ;;  %3037 = vadd.xlane.f32.xlu0 %v3036_v38  ;;  %v6121_v23 = vpop.eup %4336  ;;  %4358 = vpow2.f32 %v2670_v18  ;;  %v2550_v0 = vmul.f32 1.442695, %v2272_v34  ;;  %8627 = vst [vmem:[#allocation127_spill] sm:$0xff] %v6143_v11  ;;  %v2275_v35 = vsub.f32 %v8628_v39, %v8625_v41  ;;  %v6147_v18 = vpop.xlane.xlu1 %1963  ;;  %v2674_v34 = vmul.f32 1.442695, %v2334_v17 }
 0x270   :  { %8615 = vst [vmem:[#allocation22_spill] sm:$0xff] %v6121_v23  ;;  %v6127_v48 = vpop.eup %4338  ;;  %v3132_v20 = vadd.f32 %v6121_v23, %v6113_v10  ;;  %4360 = vpow2.f32 %v2546_v32  ;;  %v6149_v13 = vpop.xlane.xlu0 %1924  ;;  %v8630_v32 = vld [vmem:[#allocation28_spill] sm:$0xff]  ;;  %v2676_v31 = vmul.f32 1.442695, %v2335_v26  ;;  %v2196_v11 = vmax.f32 %v6081_v33, %v6101_v9  ;;  %v8636_v10 = vld [vmem:[#allocation35_spill] sm:$0xff] }
 0x271   :  { %8619 = vst [vmem:[#allocation27_spill] sm:$0xff] %v6127_v48  ;;  %v6131_v38 = vpop.eup %4340  ;;  %4362 = vpow2.f32 %v2548_v54  ;;  %v6169_v23 = vpop.f32.mrf.mxu0 }
 0x272   :  { %8621 = vst [vmem:[#allocation29_spill] sm:$0xff] %v6131_v38  ;;  %v3039_v14 = vadd.f32 %v6131_v38, %v6127_v48  ;;  %4364 = vpow2.f32 %v2672_v43  ;;  %v6157_v54 = vpop.eup %4342  ;;  %v8641_v48 = vld [vmem:[#allocation134_spill] sm:$0xff] }
 0x273   :  { %2194 = vmax.xlane.f32.xlu1 %v2193_v22  ;;  %2101 = vmax.xlane.f32.xlu0 %v2100_v2  ;;  %v8626_v22 = vld [vmem:[#allocation31_spill] sm:$0xff]  ;;  %v8629_v2 = vld [vmem:[#allocation130_spill] sm:$0xff]  ;;  %8632 = vst [vmem:[#allocation26_spill] sm:$0xff] %v6157_v54  ;;  %v6165_v43 = vpop.eup %4344  ;;  %4366 = vpow2.f32 %v2550_v0  ;;  %v8642_v0 = vld [vmem:[#allocation32_spill] sm:$0xff] }
 0x274   :  { %v2274_v5 = vsub.f32 %v8626_v22, %v8625_v41  ;;  %v2336_v21 = vsub.f32 %v8630_v32, %v8629_v2  ;;  %v6155_v22 = vpop.f32.mrf.mxu1  ;;  %v8633_v41 = vld [vmem:[#allocation30_spill] sm:$0xff]  ;;  %8634 = vst [vmem:[#allocation137_spill] sm:$0xff] %v6165_v43  ;;  %v8635_v32 = vld [vmem:[#allocation141_spill] sm:$0xff]  ;;  %8637 = vst [vmem:[#allocation31_spill] sm:$0xff] %v6169_v23  ;;  %4368 = vpow2.f32 %v2552_v56  ;;  %v6183_v56 = vpop.xlane.xlu1 %2020 }
 0x275   :  { %8631 = vst [vmem:[#allocation24_spill] sm:$0xff] %v6155_v22  ;;  %v2337_v39 = vsub.f32 %v8633_v41, %v8629_v2  ;;  %v2276_v22 = vsub.f32 %v8636_v10, %v8635_v32  ;;  %v2556_v2 = vmul.f32 1.442695, %v2275_v35  ;;  %v8639_v41 = vld [vmem:[#allocation37_spill] sm:$0xff]  ;;  %4370 = vpow2.f32 %v2674_v34  ;;  %v8644_v23 = vld [vmem:[#allocation34_spill] sm:$0xff]  ;;  %v6185_v35 = vpop.xlane.xlu0 %1927 }
 0x276   :  { %v2554_v17 = vmul.f32 1.442695, %v2274_v5  ;;  %v6171_v26 = vpop.eup %4346  ;;  %v2277_v57 = vsub.f32 %v8639_v41, %v8635_v32  ;;  %v2678_v27 = vmul.f32 1.442695, %v2336_v21  ;;  %v2338_v5 = vsub.f32 %v8642_v0, %v8641_v48  ;;  %v6179_v38 = vpop.f32.mrf.mxu1  ;;  %v8646_v32 = vld [vmem:[#allocation142_spill] sm:$0xff]  ;;  %v8647_v41 = vld [vmem:[#allocation39_spill] sm:$0xff] }
 0x277   :  { %3133 = vadd.xlane.f32.xlu1 %v3132_v20  ;;  %3040 = vadd.xlane.f32.xlu0 %v3039_v14  ;;  %v2103_v20 = vmax.f32 %v6093_v37, %v6109_v24  ;;  %8638 = vst [vmem:[#allocation33_spill] sm:$0xff] %v6171_v26  ;;  %v6175_v14 = vpop.eup %4348  ;;  %8643 = vst [vmem:[#allocation28_spill] sm:$0xff] %v6179_v38  ;;  %4372 = vpow2.f32 %v2676_v31  ;;  %v2680_v10 = vmul.f32 1.442695, %v2337_v39  ;;  %v2558_v21 = vmul.f32 1.442695, %v2276_v22  ;;  %v6193_v31 = vpop.f32.mrf.mxu0 }
 0x278   :  { %8640 = vst [vmem:[#allocation130_spill] sm:$0xff] %v6175_v14  ;;  %v2339_v28 = vsub.f32 %v8644_v23, %v8641_v48  ;;  %v6189_v34 = vpop.eup %4350  ;;  %4374 = vpow2.f32 %v2554_v17  ;;  %v2278_v0 = vsub.f32 %v8647_v41, %v8646_v32  ;;  %8648 = vst [vmem:[#allocation141_spill] sm:$0xff] %v6193_v31  ;;  %v2560_v23 = vmul.f32 1.442695, %v2277_v57  ;;  %v8650_v48 = vld [vmem:[#allocation41_spill] sm:$0xff]  ;;  %v8652_v17 = vld [vmem:[#allocation138_spill] sm:$0xff]  ;;  %v6205_v60 = vpop.f32.mrf.mxu1 }
 0x279   :  { %8645 = vst [vmem:[#allocation30_spill] sm:$0xff] %v6189_v34  ;;  %v6195_v39 = vpop.eup %4352  ;;  %4376 = vpow2.f32 %v2556_v2  ;;  %v2279_v38 = vsub.f32 %v8650_v48, %v8646_v32  ;;  %v2682_v22 = vmul.f32 1.442695, %v2338_v5  ;;  %8654 = vst [vmem:[#allocation134_spill] sm:$0xff] %v6205_v60  ;;  %v8656_v2 = vld [vmem:[#allocation38_spill] sm:$0xff]  ;;  %v6225_v63 = vpop.xlane.xlu0 %1930 }
 0x27a   :  { %8649 = vst [vmem:[#allocation35_spill] sm:$0xff] %v6195_v39  ;;  %4378 = vpow2.f32 %v2678_v27  ;;  %v2684_v57 = vmul.f32 1.442695, %v2339_v28  ;;  %v2341_v32 = vsub.f32 %v8656_v2, %v8652_v17  ;;  %v2562_v27 = vmul.f32 1.442695, %v2278_v0  ;;  %v8658_v5 = vld [vmem:[#allocation146_spill] sm:$0xff]  ;;  %v6223_v2 = vpop.xlane.xlu1 %2023 }
 0x27b   :  { %2197 = vmax.xlane.f32.xlu1 %v2196_v11  ;;  %2104 = vmax.xlane.f32.xlu0 %v2103_v20  ;;  %v3135_v11 = vadd.f32 %v6165_v43, %v6157_v54  ;;  %v3042_v20 = vadd.f32 %v6175_v14, %v6171_v26  ;;  %v6201_v54 = vpop.eup %4354  ;;  %v8653_v43 = vld [vmem:[#allocation36_spill] sm:$0xff]  ;;  %4380 = vpow2.f32 %v2680_v10  ;;  %v8659_v26 = vld [vmem:[#allocation43_spill] sm:$0xff]  ;;  %v6217_v14 = vpop.f32.mrf.mxu0  ;;  %v2564_v28 = vmul.f32 1.442695, %v2279_v38  ;;  %v8662_v10 = vld [vmem:[#allocation45_spill] sm:$0xff] }
 0x27c   :  { %8651 = vst [vmem:[#allocation37_spill] sm:$0xff] %v6201_v54  ;;  %v2340_v41 = vsub.f32 %v8653_v43, %v8652_v17  ;;  %v6207_v31 = vpop.eup %4356  ;;  %4382 = vpow2.f32 %v2558_v21  ;;  %v2280_v43 = vsub.f32 %v8659_v26, %v8658_v5  ;;  %8660 = vst [vmem:[#allocation142_spill] sm:$0xff] %v6217_v14  ;;  %v2281_v17 = vsub.f32 %v8662_v10, %v8658_v5  ;;  %v8665_v14 = vld [vmem:[#allocation40_spill] sm:$0xff]  ;;  %v8668_v10 = vld [vmem:[#allocation42_spill] sm:$0xff] }
 0x27d   :  { %8655 = vst [vmem:[#allocation32_spill] sm:$0xff] %v6207_v31  ;;  %v6213_v48 = vpop.eup %4358  ;;  %4384 = vpow2.f32 %v2560_v23  ;;  %v3045_v21 = vadd.f32 %v6201_v54, %v6195_v39  ;;  %v6233_v23 = vpop.f32.mrf.mxu1  ;;  %v2688_v5 = vmul.f32 1.442695, %v2341_v32 }
 0x27e   :  { %8657 = vst [vmem:[#allocation34_spill] sm:$0xff] %v6213_v48  ;;  %v6219_v60 = vpop.eup %4360  ;;  %4386 = vpow2.f32 %v2682_v22  ;;  %v2686_v26 = vmul.f32 1.442695, %v2340_v41  ;;  %8666 = vst [vmem:[#allocation138_spill] sm:$0xff] %v6233_v23  ;;  %v2566_v39 = vmul.f32 1.442695, %v2280_v43  ;;  %v6243_v54 = vpop.f32.mrf.mxu0 }
 0x27f   :  { %3136 = vadd.xlane.f32.xlu1 %v3135_v11  ;;  %v2199_v11 = vmax.f32 %v6111_v6, %v6135_v19  ;;  %3043 = vadd.xlane.f32.xlu0 %v3042_v20  ;;  %8661 = vst [vmem:[#allocation39_spill] sm:$0xff] %v6219_v60  ;;  %v6229_v0 = vpop.eup %4362  ;;  %v8664_v20 = vld [vmem:[#allocation145_spill] sm:$0xff]  ;;  %4388 = vpow2.f32 %v2684_v57  ;;  %v8669_v22 = vld [vmem:[#allocation18_spill] sm:$0xff]  ;;  %8670 = vst [vmem:[#allocation38_spill] sm:$0xff] %v6243_v54  ;;  %v2568_v23 = vmul.f32 1.442695, %v2281_v17 }
 0x280   :  { %8663 = vst [vmem:[#allocation41_spill] sm:$0xff] %v6229_v0  ;;  %v2342_v12 = vsub.f32 %v8665_v14, %v8664_v20  ;;  %v6235_v38 = vpop.eup %4364  ;;  %v2343_v4 = vsub.f32 %v8668_v10, %v8664_v20  ;;  %4390 = vpow2.f32 %v2562_v27  ;;  %v2250_v41 = vsub.f32 %v8669_v22, %v6087_v3  ;;  %v8672_v57 = vld [vmem:[#allocation20_spill] sm:$0xff]  ;;  %v8674_v43 = vld [vmem:[#allocation149_spill] sm:$0xff]  ;;  %v8678_v17 = vld [vmem:[#allocation46_spill] sm:$0xff] }
 0x281   :  { %8667 = vst [vmem:[#allocation36_spill] sm:$0xff] %v6235_v38  ;;  %v6245_v14 = vpop.eup %4366  ;;  %4392 = vpow2.f32 %v2564_v28  ;;  %v2251_v32 = vsub.f32 %v8672_v57, %v6087_v3  ;;  %v8675_v10 = vld [vmem:[#allocation44_spill] sm:$0xff]  ;;  %v2345_v3 = vsub.f32 %v8678_v17, %v8674_v43  ;;  %v6263_v57 = vpop.xlane.xlu0 %1933  ;;  %v8683_v17 = vld [vmem:[#allocation19_spill] sm:$0xff] }
 0x282   :  { %8671 = vst [vmem:[#allocation146_spill] sm:$0xff] %v6245_v14  ;;  %v6251_v20 = vpop.eup %4368  ;;  %4394 = vpow2.f32 %v2686_v26  ;;  %v2690_v27 = vmul.f32 1.442695, %v2342_v12  ;;  %v2344_v22 = vsub.f32 %v8675_v10, %v8674_v43  ;;  %v2692_v28 = vmul.f32 1.442695, %v2343_v4 }
 0x283   :  { %2200 = vmax.xlane.f32.xlu1 %v2199_v11  ;;  %3046 = vadd.xlane.f32.xlu0 %v3045_v21  ;;  %v3138_v11 = vadd.f32 %v6207_v31, %v6189_v34  ;;  %v3048_v21 = vadd.f32 %v6229_v0, %v6219_v60  ;;  %8673 = vst [vmem:[#allocation43_spill] sm:$0xff] %v6251_v20  ;;  %v6255_v34 = vpop.f32.mrf.mxu1  ;;  %v6257_v31 = vpop.eup %4370  ;;  %4396 = vpow2.f32 %v2688_v5  ;;  %v2506_v10 = vmul.f32 1.442695, %v2250_v41 }
 0x284   :  { %8676 = vst [vmem:[#allocation45_spill] sm:$0xff] %v6255_v34  ;;  %8677 = vst [vmem:[#allocation145_spill] sm:$0xff] %v6257_v31  ;;  %v3141_v12 = vadd.f32 %v6235_v38, %v6213_v48  ;;  %v6267_v26 = vpop.eup %4372  ;;  %4398 = vpow2.f32 %v2566_v39  ;;  %v6269_v34 = vpop.f32.mrf.mxu0  ;;  %v2508_v4 = vmul.f32 1.442695, %v2251_v32  ;;  %v3051_v5 = vadd.f32 %v6251_v20, %v6245_v14 }
 0x285   :  { %8679 = vst [vmem:[#allocation40_spill] sm:$0xff] %v6267_v26  ;;  %8680 = vst [vmem:[#allocation42_spill] sm:$0xff] %v6269_v34  ;;  %v6271_v60 = vpop.eup %4374  ;;  %4400 = vpow2.f32 %v2568_v23  ;;  %v2314_v48 = vsub.f32 %v8683_v17, %v6147_v18  ;;  %v6279_v38 = vpop.f32.mrf.mxu1  ;;  %v2696_v41 = vmul.f32 1.442695, %v2345_v3  ;;  %v8686_v23 = vld [vmem:[#allocation21_spill] sm:$0xff] }
 0x286   :  { %8681 = vst [vmem:[#allocation18_spill] sm:$0xff] %v6271_v60  ;;  %v6275_v43 = vpop.eup %4376  ;;  %4402 = vpow2.f32 %v2690_v27  ;;  %8684 = vst [vmem:[#allocation149_spill] sm:$0xff] %v6279_v38  ;;  %v2315_v32 = vsub.f32 %v8686_v23, %v6147_v18  ;;  %v6289_v27 = vpop.f32.mrf.mxu0 }
 0x287   :  { %3139 = vadd.xlane.f32.xlu1 %v3138_v11  ;;  %v6261_v11 = vpop.xlane.xlu1 %2026  ;;  %3049 = vadd.xlane.f32.xlu0 %v3048_v21  ;;  %8682 = vst [vmem:[#allocation20_spill] sm:$0xff] %v6275_v43  ;;  %v2694_v21 = vmul.f32 1.442695, %v2344_v22  ;;  %v6281_v39 = vpop.eup %4378  ;;  %4404 = vpow2.f32 %v2692_v28  ;;  %8688 = vst [vmem:[#allocation19_spill] sm:$0xff] %v6289_v27  ;;  %v3054_v18 = vadd.f32 %v6275_v43, %v6271_v60  ;;  %v2634_v3 = vmul.f32 1.442695, %v2314_v48 }
 0x288   :  { %8685 = vst [vmem:[#allocation44_spill] sm:$0xff] %v6281_v39  ;;  %v6287_v0 = vpop.eup %4380  ;;  %4406 = vpow2.f32 %v2506_v10  ;;  %v6295_v38 = vpop.xlane.xlu0 %1936  ;;  %v2636_v23 = vmul.f32 1.442695, %v2315_v32 }
 0x289   :  { %8687 = vst [vmem:[#allocation46_spill] sm:$0xff] %v6287_v0  ;;  %v6291_v22 = vpop.eup %4382  ;;  %4408 = vpow2.f32 %v2508_v4  ;;  %v3147_v4 = vadd.f32 %v6287_v0, %v6281_v39 }
 0x28a   :  { %8689 = vst [vmem:[#allocation21_spill] sm:$0xff] %v6291_v22  ;;  %v6299_v28 = vpop.eup %4384  ;;  %4410 = vpow2.f32 %v2694_v21 }
 0x28b   :  { %3142 = vadd.xlane.f32.xlu1 %v3141_v12  ;;  %3052 = vadd.xlane.f32.xlu0 %v3051_v5  ;;  %v3144_v12 = vadd.f32 %v6267_v26, %v6257_v31  ;;  %v6293_v17 = vpop.xlane.xlu1 %2029  ;;  %8690 = vst [vmem:[#allocation194_spill] sm:$0xff] %v6299_v28  ;;  %v6301_v5 = vpop.f32.mrf.mxu1  ;;  %4412 = vpow2.f32 %v2696_v41  ;;  %v3057_v48 = vadd.f32 %v6299_v28, %v6291_v22 }
 0x28c   :  { %8691 = vst [vmem:[#allocation195_spill] sm:$0xff] %v6301_v5  ;;  %v6303_v10 = vpop.eup %4386  ;;  %4414 = vpow2.f32 %v2634_v3  ;;  %v8729_v5 = vld [vmem:[#allocation139_spill] sm:$0xff] }
 0x28d   :  { %8692 = vst [vmem:[#allocation196_spill] sm:$0xff] %v6303_v10  ;;  %v6307_v31 = vpop.eup %4388  ;;  %v6317_v14 = vpop.f32.mrf.mxu1  ;;  %4416 = vpow2.f32 %v2636_v23 }
 0x28e   :  { %8693 = vst [vmem:[#allocation197_spill] sm:$0xff] %v6307_v31  ;;  %v6311_v26 = vpop.eup %4390  ;;  %8697 = vst [vmem:[#allocation201_spill] sm:$0xff] %v6317_v14  ;;  %v3150_v39 = vadd.f32 %v6307_v31, %v6303_v10 }
 0x28f   :  { %3145 = vadd.xlane.f32.xlu1 %v3144_v12  ;;  %3055 = vadd.xlane.f32.xlu0 %v3054_v18  ;;  %v6309_v12 = vpop.f32.mrf.mxu0  ;;  %8695 = vst [vmem:[#allocation199_spill] sm:$0xff] %v6311_v26  ;;  %v6315_v21 = vpop.eup %4392 }
 0x290   :  { %8694 = vst [vmem:[#allocation198_spill] sm:$0xff] %v6309_v12  ;;  %8696 = vst [vmem:[#allocation200_spill] sm:$0xff] %v6315_v21  ;;  %v6319_v41 = vpop.eup %4394  ;;  %v6321_v32 = vpop.xlane.xlu1 %2032  ;;  %v3060_v3 = vadd.f32 %v6315_v21, %v6311_v26 }
 0x291   :  { %8698 = vst [vmem:[#allocation202_spill] sm:$0xff] %v6319_v41  ;;  %v6323_v18 = vpop.xlane.xlu0 %1939  ;;  %v6329_v0 = vpop.f32.mrf.mxu0 }
 0x292   :  { %8700 = vst [vmem:[#allocation204_spill] sm:$0xff] %v6329_v0  ;;  %v6337_v23 = vpop.f32.mrf.mxu1 }
 0x293   :  { %3148 = vadd.xlane.f32.xlu1 %v3147_v4  ;;  %3058 = vadd.xlane.f32.xlu0 %v3057_v48  ;;  %v6327_v4 = vpop.eup %4396  ;;  %8703 = vst [vmem:[#allocation207_spill] sm:$0xff] %v6337_v23  ;;  %v6345_v31 = vpop.f32.mrf.mxu0 }
 0x294   :  { %8699 = vst [vmem:[#allocation203_spill] sm:$0xff] %v6327_v4  ;;  %v6331_v20 = vpop.eup %4398  ;;  %v3153_v48 = vadd.f32 %v6327_v4, %v6319_v41  ;;  %8706 = vst [vmem:[#allocation210_spill] sm:$0xff] %v6345_v31  ;;  %v6355_v0 = vpop.f32.mrf.mxu1 }
 0x295   :  { %8701 = vst [vmem:[#allocation205_spill] sm:$0xff] %v6331_v20  ;;  %v6335_v60 = vpop.eup %4400  ;;  %v1943_v28 = vpop.xlane.xlu0 %1942  ;;  %8709 = vst [vmem:[#allocation213_spill] sm:$0xff] %v6355_v0 }
 0x296   :  { %8702 = vst [vmem:[#allocation206_spill] sm:$0xff] %v6335_v60  ;;  %v6339_v43 = vpop.eup %4402  ;;  %v3063_v26 = vadd.f32 %v6335_v60, %v6331_v20  ;;  %v6363_v31 = vpop.f32.mrf.mxu0  ;;  %v8743_v60 = vld [vmem:[#allocation90_spill] sm:$0xff] }
 0x297   :  { %3151 = vadd.xlane.f32.xlu1 %v3150_v39  ;;  %8704 = vst [vmem:[#allocation208_spill] sm:$0xff] %v6339_v43  ;;  %3061 = vadd.xlane.f32.xlu0 %v3060_v3  ;;  %v6343_v10 = vpop.eup %4404  ;;  %v6349_v39 = vpop.xlane.xlu1 %2035  ;;  %8712 = vst [vmem:[#allocation216_spill] sm:$0xff] %v6363_v31 }
 0x298   :  { %8705 = vst [vmem:[#allocation209_spill] sm:$0xff] %v6343_v10  ;;  %v6347_v22 = vpop.eup %4406  ;;  %v3156_v41 = vadd.f32 %v6343_v10, %v6339_v43  ;;  %v6367_v34 = vpop.f32.mrf.mxu1 }
 0x299   :  { %8707 = vst [vmem:[#allocation211_spill] sm:$0xff] %v6347_v22  ;;  %v6353_v12 = vpop.eup %4408  ;;  %8713 = vst [vmem:[#allocation217_spill] sm:$0xff] %v6367_v34  ;;  %v1946_v0 = vpop.xlane.xlu0 %1945 }
 0x29a   :  { %8708 = vst [vmem:[#allocation212_spill] sm:$0xff] %v6353_v12  ;;  %v6357_v3 = vpop.eup %4410  ;;  %v6375_v43 = vpop.f32.mrf.mxu0 }
 0x29b   :  { %3154 = vadd.xlane.f32.xlu1 %v3153_v48  ;;  %8710 = vst [vmem:[#allocation214_spill] sm:$0xff] %v6357_v3  ;;  %3064 = vadd.xlane.f32.xlu0 %v3063_v26  ;;  %v6361_v4 = vpop.eup %4412  ;;  %v3018_v48 = vadd.f32 %v6353_v12, %v6347_v22  ;;  %v2039_v23 = vpop.xlane.xlu1 %2038  ;;  %8716 = vst [vmem:[#allocation220_spill] sm:$0xff] %v6375_v43  ;;  %v8722_v43 = vld [vmem:[#allocation150_spill] sm:$0xff] }
 0x29c   :  { %8711 = vst [vmem:[#allocation215_spill] sm:$0xff] %v6361_v4  ;;  %v6369_v27 = vpop.eup %4414  ;;  %v3159_v26 = vadd.f32 %v6361_v4, %v6357_v3  ;;  %v6379_v10 = vpop.f32.mrf.mxu1 }
 0x29d   :  { %8714 = vst [vmem:[#allocation218_spill] sm:$0xff] %v6369_v27  ;;  %v6373_v54 = vpop.eup %4416  ;;  %8717 = vst [vmem:[#allocation221_spill] sm:$0xff] %v6379_v10  ;;  %v6383_v12 = vpop.f32.mrf.mxu0  ;;  %v8728_v10 = vld [vmem:[#allocation143_spill] sm:$0xff] }
 0x29e   :  { %8715 = vst [vmem:[#allocation219_spill] sm:$0xff] %v6373_v54  ;;  %v3114_v22 = vadd.f32 %v6373_v54, %v6369_v27  ;;  %8718 = vst [vmem:[#allocation222_spill] sm:$0xff] %v6383_v12  ;;  %v1949_v3 = vpop.xlane.xlu0 %1948  ;;  %v6387_v4 = vpop.f32.mrf.mxu1  ;;  %v8723_v27 = vld [vmem:[#allocation147_spill] sm:$0xff]  ;;  %v8724_v12 = vld [vmem:[#allocation85_spill] sm:$0xff] }
 0x29f   :  { %3157 = vadd.xlane.f32.xlu1 %v3156_v41  ;;  %3019 = vadd.xlane.f32.xlu0 %v3018_v48  ;;  %v2085_v41 = vmax.f32 %v5917_v25, %v5927_v42  ;;  %v2082_v48 = vmax.f32 %v5901_v44, %v5911_v52  ;;  %v2042_v31 = vpop.xlane.xlu1 %2041  ;;  %8719 = vst [vmem:[#allocation223_spill] sm:$0xff] %v6387_v4 }
 0x2a0   :  { %v2181_v42 = vmax.f32 %v5939_v29, %v5955_v36  ;;  %v2079_v54 = vmax.f32 %v8723_v27, %v8722_v43  ;;  %v2301_v34 = vsub.f32 %v8724_v12, %v1943_v28  ;;  %v6397_v52 = vpop.f32.mrf.mxu1  ;;  %v8726_v36 = vld [vmem:[#allocation87_spill] sm:$0xff]  ;;  %v2076_v43 = vmax.f32 %v8729_v5, %v8728_v10  ;;  %v8731_v12 = vld [vmem:[#allocation84_spill] sm:$0xff] }
 0x2a1   :  { %8725 = vst [vmem:[#allocation85_spill] sm:$0xff] %v6397_v52  ;;  %v2364_v52 = vsub.f32 %v8731_v12, %v2039_v23  ;;  %v8737_v10 = vld [vmem:[#allocation132_spill] sm:$0xff] }
 0x2a2   :  { %v1952_v4 = vpop.xlane.xlu0 %1951  ;;  %v2608_v27 = vmul.f32 1.442695, %v2301_v34  ;;  %v6410_v14 = vpop.f32.mrf.mxu1  ;;  %v8736_v34 = vld [vmem:[#allocation135_spill] sm:$0xff] }
 0x2a3   :  { %3160 = vadd.xlane.f32.xlu1 %v3159_v26  ;;  %2086 = vmax.xlane.f32.xlu0 %v2085_v41  ;;  %v8720_v26 = vld [vmem:[#allocation83_spill] sm:$0xff]  ;;  %v6392_v41 = vpop.f32.mrf.mxu0  ;;  %v6401_v44 = vpop.xlane.xlu1 %2044 }
 0x2a4   :  { %v2300_v25 = vsub.f32 %v8720_v26, %v1943_v28  ;;  %8721 = vst [vmem:[#allocation83_spill] sm:$0xff] %v6392_v41  ;;  %v2302_v26 = vsub.f32 %v8726_v36, %v1946_v0  ;;  %v8730_v28 = vld [vmem:[#allocation89_spill] sm:$0xff]  ;;  %v2367_v41 = vsub.f32 %v8743_v60, %v2042_v31 }
 0x2a5   :  { %v6404_v29 = vpop.f32.mrf.mxu0  ;;  %8732 = vst [vmem:[#allocation89_spill] sm:$0xff] %v6410_v14 }
 0x2a6   :  { %8727 = vst [vmem:[#allocation87_spill] sm:$0xff] %v6404_v29  ;;  %v2610_v36 = vmul.f32 1.442695, %v2302_v26  ;;  %v1955_v14 = vpop.xlane.xlu0 %1954  ;;  %v8741_v26 = vld [vmem:[#allocation151_spill] sm:$0xff] }
 0x2a7   :  { %3115 = vadd.xlane.f32.xlu1 %v3114_v22  ;;  %2083 = vmax.xlane.f32.xlu0 %v2082_v48  ;;  %v2178_v22 = vmax.f32 %v5919_v40, %v5929_v16  ;;  %v2606_v48 = vmul.f32 1.442695, %v2300_v25  ;;  %v2175_v16 = vmax.f32 %v5903_v53, %v5913_v15  ;;  %v8734_v40 = vld [vmem:[#allocation91_spill] sm:$0xff]  ;;  %v6416_v20 = vpop.f32.mrf.mxu0  ;;  %v6421_v5 = vpop.xlane.xlu1 %2047  ;;  %v2734_v15 = vmul.f32 1.442695, %v2364_v52 }
 0x2a8   :  { %v2304_v21 = vsub.f32 %v8734_v40, %v1949_v3  ;;  %8735 = vst [vmem:[#allocation84_spill] sm:$0xff] %v6416_v20  ;;  %v8742_v40 = vld [vmem:[#allocation148_spill] sm:$0xff] }
 0x2a9   :  { %4418 = vpow2.f32 %v2606_v48  ;;  %v6424_v48 = vpop.f32.mrf.mxu1 }
 0x2aa   :  { %4420 = vpow2.f32 %v2608_v27  ;;  %v2614_v27 = vmul.f32 1.442695, %v2304_v21  ;;  %v8751_v21 = vld [vmem:[#allocation144_spill] sm:$0xff] }
 0x2ab   :  { %2182 = vmax.xlane.f32.xlu1 %v2181_v42  ;;  %2080 = vmax.xlane.f32.xlu0 %v2079_v54  ;;  %v2303_v42 = vsub.f32 %v8730_v28, %v1946_v0  ;;  %v8733_v54 = vld [vmem:[#allocation86_spill] sm:$0xff]  ;;  %v2073_v0 = vmax.f32 %v8737_v10, %v8736_v34  ;;  %v8738_v28 = vld [vmem:[#allocation93_spill] sm:$0xff]  ;;  %4422 = vpow2.f32 %v2610_v36  ;;  %v8746_v34 = vld [vmem:[#allocation128_spill] sm:$0xff] }
 0x2ac   :  { %v2365_v25 = vsub.f32 %v8733_v54, %v2039_v23  ;;  %v2305_v12 = vsub.f32 %v8738_v28, %v1949_v3  ;;  %v8739_v23 = vld [vmem:[#allocation88_spill] sm:$0xff]  ;;  %8740 = vst [vmem:[#allocation86_spill] sm:$0xff] %v6424_v48  ;;  %v2172_v54 = vmax.f32 %v8742_v40, %v8741_v26  ;;  %v6430_v28 = vpop.f32.mrf.mxu0  ;;  %v8748_v10 = vld [vmem:[#allocation97_spill] sm:$0xff]  ;;  %v8753_v40 = vld [vmem:[#allocation94_spill] sm:$0xff] }
 0x2ad   :  { %8745 = vst [vmem:[#allocation91_spill] sm:$0xff] %v6430_v28  ;;  %v2307_v48 = vsub.f32 %v8748_v10, %v1952_v4  ;;  %v8752_v36 = vld [vmem:[#allocation140_spill] sm:$0xff]  ;;  %v8774_v28 = vld [vmem:[#allocation102_spill] sm:$0xff] }
 0x2ae   :  { %v2736_v53 = vmul.f32 1.442695, %v2365_v25  ;;  %v8749_v25 = vld [vmem:[#allocation92_spill] sm:$0xff] }
 0x2af   :  { %2179 = vmax.xlane.f32.xlu1 %v2178_v22  ;;  %2077 = vmax.xlane.f32.xlu0 %v2076_v43  ;;  %v2612_v22 = vmul.f32 1.442695, %v2303_v42  ;;  %v2366_v43 = vsub.f32 %v8739_v23, %v2042_v31  ;;  %v8744_v42 = vld [vmem:[#allocation95_spill] sm:$0xff]  ;;  %v2616_v23 = vmul.f32 1.442695, %v2305_v12  ;;  %v2368_v60 = vsub.f32 %v8749_v25, %v6401_v44  ;;  %v6437_v31 = vpop.f32.mrf.mxu1  ;;  %v1958_v12 = vpop.xlane.xlu0 %1957  ;;  %v8757_v25 = vld [vmem:[#allocation121_spill] sm:$0xff] }
 0x2b0   :  { %v2306_v3 = vsub.f32 %v8744_v42, %v1952_v4  ;;  %8750 = vst [vmem:[#allocation93_spill] sm:$0xff] %v6437_v31  ;;  %v2740_v42 = vmul.f32 1.442695, %v2367_v41  ;;  %v2620_v29 = vmul.f32 1.442695, %v2307_v48 }
 0x2b1   :  { %4424 = vpow2.f32 %v2612_v22  ;;  %v2738_v26 = vmul.f32 1.442695, %v2366_v43  ;;  %v2051_v22 = vpop.xlane.xlu1 %2050  ;;  %v6444_v43 = vpop.f32.mrf.mxu0  ;;  %v2742_v41 = vmul.f32 1.442695, %v2368_v60 }
 0x2b2   :  { %4426 = vpow2.f32 %v2734_v15  ;;  %v2618_v10 = vmul.f32 1.442695, %v2306_v3  ;;  %v8754_v15 = vld [vmem:[#allocation99_spill] sm:$0xff]  ;;  %8755 = vst [vmem:[#allocation88_spill] sm:$0xff] %v6444_v43  ;;  %v6455_v20 = vpop.f32.mrf.mxu1 }
 0x2b3   :  { %2176 = vmax.xlane.f32.xlu1 %v2175_v16  ;;  %2074 = vmax.xlane.f32.xlu0 %v2073_v0  ;;  %v8747_v16 = vld [vmem:[#allocation125_spill] sm:$0xff]  ;;  %v2169_v0 = vmax.f32 %v8752_v36, %v8751_v21  ;;  %4428 = vpow2.f32 %v2736_v53  ;;  %v2308_v4 = vsub.f32 %v8754_v15, %v1955_v14  ;;  %v8762_v36 = vld [vmem:[#allocation98_spill] sm:$0xff]  ;;  %8763 = vst [vmem:[#allocation90_spill] sm:$0xff] %v6455_v20 }
 0x2b4   :  { %v2070_v52 = vmax.f32 %v8747_v16, %v8746_v34  ;;  %v2369_v34 = vsub.f32 %v8753_v40, %v6401_v44  ;;  %4430 = vpow2.f32 %v2614_v27  ;;  %v8758_v21 = vld [vmem:[#allocation101_spill] sm:$0xff]  ;;  %v8759_v44 = vld [vmem:[#allocation96_spill] sm:$0xff]  ;;  %v2371_v31 = vsub.f32 %v8762_v36, %v6421_v5 }
 0x2b5   :  { %4432 = vpow2.f32 %v2616_v23  ;;  %v2309_v53 = vsub.f32 %v8758_v21, %v1955_v14  ;;  %v2370_v40 = vsub.f32 %v8759_v44, %v6421_v5  ;;  %v8761_v27 = vld [vmem:[#allocation133_spill] sm:$0xff]  ;;  %v2622_v48 = vmul.f32 1.442695, %v2308_v4  ;;  %v8764_v14 = vld [vmem:[#allocation103_spill] sm:$0xff]  ;;  %v1961_v5 = vpop.xlane.xlu0 %1960 }
 0x2b6   :  { %4434 = vpow2.f32 %v2738_v26  ;;  %v2744_v15 = vmul.f32 1.442695, %v2369_v34  ;;  %v2310_v23 = vsub.f32 %v8764_v14, %v1958_v12  ;;  %v6458_v26 = vpop.f32.mrf.mxu0  ;;  %v6460_v60 = vpop.eup %4418  ;;  %v8767_v21 = vld [vmem:[#allocation119_spill] sm:$0xff]  ;;  %v8769_v34 = vld [vmem:[#allocation105_spill] sm:$0xff]  ;;  %v2748_v20 = vmul.f32 1.442695, %v2371_v31 }
 0x2b7   :  { %2173 = vmax.xlane.f32.xlu1 %v2172_v54  ;;  %2071 = vmax.xlane.f32.xlu0 %v2070_v52  ;;  %v8756_v54 = vld [vmem:[#allocation123_spill] sm:$0xff]  ;;  %v8760_v52 = vld [vmem:[#allocation136_spill] sm:$0xff]  ;;  %4436 = vpow2.f32 %v2740_v42  ;;  %8765 = vst [vmem:[#allocation95_spill] sm:$0xff] %v6458_v26  ;;  %8766 = vst [vmem:[#allocation97_spill] sm:$0xff] %v6460_v60  ;;  %v2624_v42 = vmul.f32 1.442695, %v2309_v53  ;;  %v6465_v36 = vpop.eup %4420 }
 0x2b8   :  { %v2067_v16 = vmax.f32 %v8757_v25, %v8756_v54  ;;  %v2166_v3 = vmax.f32 %v8761_v27, %v8760_v52  ;;  %4438 = vpow2.f32 %v2618_v10  ;;  %v2311_v52 = vsub.f32 %v8769_v34, %v1958_v12  ;;  %v2054_v27 = vpop.xlane.xlu1 %2053  ;;  %8770 = vst [vmem:[#allocation92_spill] sm:$0xff] %v6465_v36  ;;  %v8771_v10 = vld [vmem:[#allocation100_spill] sm:$0xff]  ;;  %v8772_v14 = vld [vmem:[#allocation129_spill] sm:$0xff]  ;;  %v8773_v54 = vld [vmem:[#allocation126_spill] sm:$0xff]  ;;  %v6474_v34 = vpop.eup %4422 }
 0x2b9   :  { %4440 = vpow2.f32 %v2620_v29  ;;  %v2372_v4 = vsub.f32 %v8771_v10, %v2051_v22  ;;  %v2163_v25 = vmax.f32 %v8773_v54, %v8772_v14  ;;  %v6471_v29 = vpop.f32.mrf.mxu1  ;;  %v2626_v12 = vmul.f32 1.442695, %v2310_v23  ;;  %v8776_v53 = vld [vmem:[#allocation107_spill] sm:$0xff]  ;;  %8777 = vst [vmem:[#allocation99_spill] sm:$0xff] %v6474_v34  ;;  %v8790_v54 = vld [vmem:[#allocation81_spill] sm:$0xff] }
 0x2ba   :  { %4442 = vpow2.f32 %v2742_v41  ;;  %8775 = vst [vmem:[#allocation94_spill] sm:$0xff] %v6471_v29  ;;  %v2628_v41 = vmul.f32 1.442695, %v2311_v52  ;;  %v3093_v31 = vadd.f32 %v6465_v36, %v6460_v60  ;;  %v8795_v29 = vld [vmem:[#allocation110_spill] sm:$0xff] }
 0x2bb   :  { %2170 = vmax.xlane.f32.xlu1 %v2169_v0  ;;  %2068 = vmax.xlane.f32.xlu0 %v2067_v16  ;;  %v8768_v0 = vld [vmem:[#allocation117_spill] sm:$0xff]  ;;  %v2746_v16 = vmul.f32 1.442695, %v2370_v40  ;;  %4444 = vpow2.f32 %v2744_v15  ;;  %v8781_v15 = vld [vmem:[#allocation104_spill] sm:$0xff] }
 0x2bc   :  { %v2064_v44 = vmax.f32 %v8768_v0, %v8767_v21  ;;  %v2373_v21 = vsub.f32 %v8774_v28, %v2051_v22  ;;  %4446 = vpow2.f32 %v2622_v48  ;;  %v8778_v40 = vld [vmem:[#allocation109_spill] sm:$0xff]  ;;  %v6477_v0 = vpop.f32.mrf.mxu0  ;;  %v2750_v22 = vmul.f32 1.442695, %v2372_v4  ;;  %v2057_v14 = vpop.xlane.xlu1 %2056 }
 0x2bd   :  { %4448 = vpow2.f32 %v2624_v42  ;;  %v2313_v10 = vsub.f32 %v8778_v40, %v1961_v5  ;;  %8779 = vst [vmem:[#allocation101_spill] sm:$0xff] %v6477_v0  ;;  %v2374_v48 = vsub.f32 %v8781_v15, %v2054_v27 }
 0x2be   :  { %v6481_v28 = vpop.eup %4424  ;;  %4450 = vpow2.f32 %v2746_v16  ;;  %v2752_v52 = vmul.f32 1.442695, %v2373_v21  ;;  %v8788_v16 = vld [vmem:[#allocation79_spill] sm:$0xff]  ;;  %v6499_v21 = vpop.f32.mrf.mxu0 }
 0x2bf   :  { %2167 = vmax.xlane.f32.xlu1 %v2166_v3  ;;  %2065 = vmax.xlane.f32.xlu0 %v2064_v44  ;;  %v2312_v3 = vsub.f32 %v8776_v53, %v1961_v5  ;;  %8780 = vst [vmem:[#allocation96_spill] sm:$0xff] %v6481_v28  ;;  %v6484_v23 = vpop.eup %4426  ;;  %v8783_v44 = vld [vmem:[#allocation124_spill] sm:$0xff]  ;;  %v8784_v53 = vld [vmem:[#allocation122_spill] sm:$0xff]  ;;  %4452 = vpow2.f32 %v2748_v20  ;;  %v2298_v4 = vsub.f32 %v8788_v16, %v6323_v18  ;;  %v2632_v20 = vmul.f32 1.442695, %v2313_v10 }
 0x2c0   :  { %8782 = vst [vmem:[#allocation98_spill] sm:$0xff] %v6484_v23  ;;  %v2160_v42 = vmax.f32 %v8784_v53, %v8783_v44  ;;  %v8785_v5 = vld [vmem:[#allocation106_spill] sm:$0xff]  ;;  %v6491_v60 = vpop.eup %4428  ;;  %4454 = vpow2.f32 %v2626_v12  ;;  %v2299_v44 = vsub.f32 %v8790_v54, %v6323_v18  ;;  %8791 = vst [vmem:[#allocation102_spill] sm:$0xff] %v6499_v21  ;;  %v8793_v16 = vld [vmem:[#allocation108_spill] sm:$0xff]  ;;  %v2377_v18 = vsub.f32 %v8795_v29, %v2057_v14 }
 0x2c1   :  { %v2375_v40 = vsub.f32 %v8785_v5, %v2054_v27  ;;  %8787 = vst [vmem:[#allocation105_spill] sm:$0xff] %v6491_v60  ;;  %v2630_v15 = vmul.f32 1.442695, %v2312_v3  ;;  %v6495_v36 = vpop.eup %4430  ;;  %4456 = vpow2.f32 %v2628_v41  ;;  %v3096_v27 = vadd.f32 %v6481_v28, %v6474_v34 }
 0x2c2   :  { %8789 = vst [vmem:[#allocation100_spill] sm:$0xff] %v6495_v36  ;;  %4458 = vpow2.f32 %v2750_v22  ;;  %v2754_v5 = vmul.f32 1.442695, %v2374_v48  ;;  %v2376_v12 = vsub.f32 %v8793_v16, %v2057_v14  ;;  %v3189_v41 = vadd.f32 %v6491_v60, %v6484_v23  ;;  %v6517_v16 = vpop.f32.mrf.mxu0  ;;  %v6525_v23 = vpop.xlane.xlu0 %1918 }
 0x2c3   :  { %2164 = vmax.xlane.f32.xlu1 %v2163_v25  ;;  %v6489_v25 = vpop.f32.mrf.mxu1  ;;  %3094 = vadd.xlane.f32.xlu0 %v3093_v31  ;;  %v6503_v31 = vpop.eup %4432  ;;  %4460 = vpow2.f32 %v2752_v52  ;;  %v2756_v53 = vmul.f32 1.442695, %v2375_v40  ;;  %v2604_v48 = vmul.f32 1.442695, %v2299_v44  ;;  %8799 = vst [vmem:[#allocation81_spill] sm:$0xff] %v6517_v16  ;;  %v8801_v52 = vld [vmem:[#allocation80_spill] sm:$0xff] }
 0x2c4   :  { %8786 = vst [vmem:[#allocation103_spill] sm:$0xff] %v6489_v25  ;;  %8792 = vst [vmem:[#allocation107_spill] sm:$0xff] %v6503_v31  ;;  %v6506_v3 = vpop.eup %4434  ;;  %4462 = vpow2.f32 %v2630_v15  ;;  %v3099_v14 = vadd.f32 %v6503_v31, %v6495_v36  ;;  %v2362_v40 = vsub.f32 %v8801_v52, %v6349_v39  ;;  %v8803_v44 = vld [vmem:[#allocation82_spill] sm:$0xff]  ;;  %v8808_v36 = vld [vmem:[#allocation77_spill] sm:$0xff] }
 0x2c5   :  { %8794 = vst [vmem:[#allocation109_spill] sm:$0xff] %v6506_v3  ;;  %v6509_v54 = vpop.f32.mrf.mxu1  ;;  %v6513_v10 = vpop.eup %4436  ;;  %4464 = vpow2.f32 %v2632_v20  ;;  %v2363_v20 = vsub.f32 %v8803_v44, %v6349_v39  ;;  %v2297_v31 = vsub.f32 %v8808_v36, %v6295_v38  ;;  %v8824_v25 = vld [vmem:[#allocation73_spill] sm:$0xff] }
 0x2c6   :  { %8796 = vst [vmem:[#allocation104_spill] sm:$0xff] %v6509_v54  ;;  %8797 = vst [vmem:[#allocation106_spill] sm:$0xff] %v6513_v10  ;;  %v6515_v22 = vpop.eup %4438  ;;  %4466 = vpow2.f32 %v2754_v5  ;;  %v3192_v34 = vadd.f32 %v6513_v10, %v6506_v3  ;;  %v8806_v5 = vld [vmem:[#allocation75_spill] sm:$0xff]  ;;  %v2359_v54 = vsub.f32 %v8835_v1, %v6293_v17 }
 0x2c7   :  { %2161 = vmax.xlane.f32.xlu1 %v2160_v42  ;;  %3097 = vadd.xlane.f32.xlu0 %v3096_v27  ;;  %v2602_v42 = vmul.f32 1.442695, %v2298_v4  ;;  %8798 = vst [vmem:[#allocation79_spill] sm:$0xff] %v6515_v22  ;;  %v6521_v29 = vpop.eup %4440  ;;  %v2758_v27 = vmul.f32 1.442695, %v2376_v12  ;;  %v6527_v4 = vpop.xlane.xlu1 %2017  ;;  %4468 = vpow2.f32 %v2756_v53  ;;  %v2296_v12 = vsub.f32 %v8806_v5, %v6295_v38 }
 0x2c8   :  { %8800 = vst [vmem:[#allocation108_spill] sm:$0xff] %v6521_v29  ;;  %v6529_v15 = vpop.eup %4442  ;;  %v6533_v60 = vpop.f32.mrf.mxu1  ;;  %v3102_v39 = vadd.f32 %v6521_v29, %v6515_v22  ;;  %v2732_v5 = vmul.f32 1.442695, %v2363_v20  ;;  %v8821_v29 = vld [vmem:[#allocation71_spill] sm:$0xff] }
 0x2c9   :  { %8802 = vst [vmem:[#allocation110_spill] sm:$0xff] %v6529_v15  ;;  %8804 = vst [vmem:[#allocation80_spill] sm:$0xff] %v6533_v60  ;;  %v6537_v52 = vpop.eup %4444  ;;  %4470 = vpow2.f32 %v2602_v42  ;;  %v8839_v60 = vld [vmem:[#allocation69_spill] sm:$0xff] }
 0x2ca   :  { %8805 = vst [vmem:[#allocation82_spill] sm:$0xff] %v6537_v52  ;;  %v6541_v28 = vpop.eup %4446  ;;  %4472 = vpow2.f32 %v2604_v48  ;;  %v6553_v42 = vpop.f32.mrf.mxu1  ;;  %v3195_v38 = vadd.f32 %v6537_v52, %v6529_v15  ;;  %v8819_v52 = vld [vmem:[#allocation78_spill] sm:$0xff]  ;;  %v2293_v61 = vsub.f32 %v8839_v60, %v6225_v63 }
 0x2cb   :  { %3190 = vadd.xlane.f32.xlu1 %v3189_v41  ;;  %v2760_v41 = vmul.f32 1.442695, %v2377_v18  ;;  %3100 = vadd.xlane.f32.xlu0 %v3099_v14  ;;  %8807 = vst [vmem:[#allocation75_spill] sm:$0xff] %v6541_v28  ;;  %v6547_v53 = vpop.eup %4448  ;;  %v2730_v18 = vmul.f32 1.442695, %v2362_v40  ;;  %4474 = vpow2.f32 %v2758_v27  ;;  %v6549_v14 = vpop.f32.mrf.mxu0  ;;  %8812 = vst [vmem:[#allocation226_spill] sm:$0xff] %v6553_v42  ;;  %v2361_v22 = vsub.f32 %v8819_v52, %v6321_v32 }
 0x2cc   :  { %8809 = vst [vmem:[#allocation77_spill] sm:$0xff] %v6547_v53  ;;  %8810 = vst [vmem:[#allocation224_spill] sm:$0xff] %v6549_v14  ;;  %v6551_v44 = vpop.eup %4450  ;;  %v6559_v48 = vpop.xlane.xlu0 %1915  ;;  %v2600_v27 = vmul.f32 1.442695, %v2297_v31  ;;  %v3105_v20 = vadd.f32 %v6547_v53, %v6541_v28  ;;  %v2294_v28 = vsub.f32 %v8821_v29, %v6263_v57  ;;  %v2592_v9 = vmul.f32 1.442695, %v2293_v61 }
 0x2cd   :  { %8811 = vst [vmem:[#allocation225_spill] sm:$0xff] %v6551_v44  ;;  %4476 = vpow2.f32 %v2760_v41  ;;  %v6557_v36 = vpop.eup %4452  ;;  %v6561_v3 = vpop.xlane.xlu1 %2014  ;;  %v8852_v61 = vld [vmem:[#allocation63_spill] sm:$0xff] }
 0x2ce   :  { %8813 = vst [vmem:[#allocation227_spill] sm:$0xff] %v6557_v36  ;;  %v6563_v40 = vpop.eup %4454  ;;  %4478 = vpow2.f32 %v2730_v18  ;;  %v6571_v15 = vpop.f32.mrf.mxu0  ;;  %v3198_v31 = vadd.f32 %v6557_v36, %v6551_v44  ;;  %v2728_v36 = vmul.f32 1.442695, %v2361_v22  ;;  %v8832_v22 = vld [vmem:[#allocation72_spill] sm:$0xff] }
 0x2cf   :  { %3193 = vadd.xlane.f32.xlu1 %v3192_v34  ;;  %3103 = vadd.xlane.f32.xlu0 %v3102_v39  ;;  %v2598_v34 = vmul.f32 1.442695, %v2296_v12  ;;  %8814 = vst [vmem:[#allocation228_spill] sm:$0xff] %v6563_v40  ;;  %v6567_v41 = vpop.eup %4456  ;;  %v8816_v39 = vld [vmem:[#allocation76_spill] sm:$0xff]  ;;  %4480 = vpow2.f32 %v2732_v5 }
 0x2d0   :  { %8815 = vst [vmem:[#allocation229_spill] sm:$0xff] %v6567_v41  ;;  %v2360_v10 = vsub.f32 %v8816_v39, %v6321_v32  ;;  %8817 = vst [vmem:[#allocation76_spill] sm:$0xff] %v6571_v15  ;;  %v6573_v12 = vpop.eup %4458  ;;  %v6583_v39 = vpop.f32.mrf.mxu1  ;;  %v2295_v32 = vsub.f32 %v8824_v25, %v6263_v57  ;;  %v3108_v52 = vadd.f32 %v6567_v41, %v6563_v40  ;;  %v2594_v25 = vmul.f32 1.442695, %v2294_v28 }
 0x2d1   :  { %8818 = vst [vmem:[#allocation230_spill] sm:$0xff] %v6573_v12  ;;  %4482 = vpow2.f32 %v2598_v34  ;;  %8822 = vst [vmem:[#allocation71_spill] sm:$0xff] %v6583_v39  ;;  %v6595_v44 = vpop.xlane.xlu1 %2011  ;;  %v6597_v29 = vpop.f32.mrf.mxu0 }
 0x2d2   :  { %4484 = vpow2.f32 %v2600_v27  ;;  %8826 = vst [vmem:[#allocation232_spill] sm:$0xff] %v6597_v29  ;;  %v6605_v27 = vpop.f32.mrf.mxu1 }
 0x2d3   :  { %3196 = vadd.xlane.f32.xlu1 %v3195_v38  ;;  %3106 = vadd.xlane.f32.xlu0 %v3105_v20  ;;  %v6579_v38 = vpop.eup %4460  ;;  %v2726_v20 = vmul.f32 1.442695, %v2360_v10  ;;  %8829 = vst [vmem:[#allocation235_spill] sm:$0xff] %v6605_v27  ;;  %v2596_v10 = vmul.f32 1.442695, %v2295_v32 }
 0x2d4   :  { %8820 = vst [vmem:[#allocation78_spill] sm:$0xff] %v6579_v38  ;;  %v6585_v18 = vpop.xlane.xlu0 %3022  ;;  %v6587_v53 = vpop.eup %4462  ;;  %v3201_v43 = vadd.f32 %v6579_v38, %v6573_v12 }
 0x2d5   :  { %8823 = vst [vmem:[#allocation231_spill] sm:$0xff] %v6587_v53  ;;  %v6593_v5 = vpop.eup %4464  ;;  %4486 = vpow2.f32 %v2726_v20  ;;  %v6617_v12 = vpop.f32.mrf.mxu0 }
 0x2d6   :  { %8825 = vst [vmem:[#allocation73_spill] sm:$0xff] %v6593_v5  ;;  %v6599_v34 = vpop.eup %4466  ;;  %v3111_v41 = vadd.f32 %v6593_v5, %v6587_v53  ;;  %8833 = vst [vmem:[#allocation72_spill] sm:$0xff] %v6617_v12  ;;  %4488 = vpow2.f32 %v2728_v36  ;;  %v8837_v53 = vld [vmem:[#allocation67_spill] sm:$0xff]  ;;  %v6631_v20 = vpop.f32.mrf.mxu1 }
 0x2d7   :  { %3199 = vadd.xlane.f32.xlu1 %v3198_v31  ;;  %8827 = vst [vmem:[#allocation233_spill] sm:$0xff] %v6599_v34  ;;  %3109 = vadd.xlane.f32.xlu0 %v3108_v52  ;;  %v6603_v57 = vpop.eup %4468  ;;  %v2358_v52 = vsub.f32 %v8832_v22, %v6293_v17  ;;  %v2292_v22 = vsub.f32 %v8837_v53, %v6225_v63  ;;  %4490 = vpow2.f32 %v2594_v25  ;;  %8838 = vst [vmem:[#allocation67_spill] sm:$0xff] %v6631_v20  ;;  %v6639_v36 = vpop.f32.mrf.mxu0 }
 0x2d8   :  { %8828 = vst [vmem:[#allocation234_spill] sm:$0xff] %v6603_v57  ;;  %v6607_v31 = vpop.xlane.xlu0 %3025  ;;  %v6609_v40 = vpop.eup %4470  ;;  %4492 = vpow2.f32 %v2596_v10  ;;  %8840 = vst [vmem:[#allocation69_spill] sm:$0xff] %v6639_v36  ;;  %v2724_v53 = vmul.f32 1.442695, %v2359_v54  ;;  %v8849_v54 = vld [vmem:[#allocation68_spill] sm:$0xff] }
 0x2d9   :  { %8830 = vst [vmem:[#allocation236_spill] sm:$0xff] %v6609_v40  ;;  %v6613_v26 = vpop.eup %4472  ;;  %v2722_v17 = vmul.f32 1.442695, %v2358_v52  ;;  %v2590_v63 = vmul.f32 1.442695, %v2292_v22  ;;  %v6649_v60 = vpop.f32.mrf.mxu1  ;;  %v8846_v52 = vld [vmem:[#allocation115_spill] sm:$0xff] }
 0x2da   :  { %8831 = vst [vmem:[#allocation237_spill] sm:$0xff] %v6613_v26  ;;  %v6621_v38 = vpop.eup %4474  ;;  %v3090_v1 = vadd.f32 %v6613_v26, %v6609_v40  ;;  %8843 = vst [vmem:[#allocation241_spill] sm:$0xff] %v6649_v60  ;;  %v8847_v40 = vld [vmem:[#allocation113_spill] sm:$0xff] }
 0x2db   :  { %3202 = vadd.xlane.f32.xlu1 %v3201_v43  ;;  %8834 = vst [vmem:[#allocation238_spill] sm:$0xff] %v6621_v38  ;;  %3112 = vadd.xlane.f32.xlu0 %v3111_v41  ;;  %v3204_v43 = vadd.f32 %v6603_v57, %v6599_v34  ;;  %v6627_v32 = vpop.eup %4476  ;;  %v2061_v26 = vmax.f32 %v8847_v40, %v8846_v52  ;;  %4494 = vpow2.f32 %v2722_v17  ;;  %v6671_v40 = vpop.f32.mrf.mxu1  ;;  %v8854_v17 = vld [vmem:[#allocation65_spill] sm:$0xff] }
 0x2dc   :  { %v6619_v28 = vpop.xlane.xlu1 %3118  ;;  %8836 = vst [vmem:[#allocation74_spill] sm:$0xff] %v6627_v32  ;;  %v6633_v5 = vpop.xlane.xlu0 %2089  ;;  %v3207_v25 = vadd.f32 %v6627_v32, %v6621_v38  ;;  %v8851_v32 = vld [vmem:[#allocation70_spill] sm:$0xff]  ;;  %4496 = vpow2.f32 %v2724_v53  ;;  %v2291_v30 = vsub.f32 %v8854_v17, %v6185_v35 }
 0x2dd   :  { %v6643_v34 = vpop.eup %4478  ;;  %v6661_v38 = vpop.f32.mrf.mxu0  ;;  %4498 = vpow2.f32 %v2590_v63  ;;  %8853 = vst [vmem:[#allocation70_spill] sm:$0xff] %v6671_v40  ;;  %v8858_v63 = vld [vmem:[#allocation120_spill] sm:$0xff] }
 0x2de   :  { %8841 = vst [vmem:[#allocation239_spill] sm:$0xff] %v6643_v34  ;;  %v6647_v57 = vpop.eup %4480  ;;  %8850 = vst [vmem:[#allocation68_spill] sm:$0xff] %v6661_v38  ;;  %4500 = vpow2.f32 %v2592_v9  ;;  %v6689_v9 = vpop.f32.mrf.mxu1 }
 0x2df   :  { %3205 = vadd.xlane.f32.xlu1 %v3204_v43  ;;  %3091 = vadd.xlane.f32.xlu0 %v3090_v1  ;;  %8842 = vst [vmem:[#allocation240_spill] sm:$0xff] %v6647_v57  ;;  %v6653_v43 = vpop.eup %4482  ;;  %v2356_v1 = vsub.f32 %v8849_v54, %v6261_v11  ;;  %v3186_v52 = vadd.f32 %v6647_v57, %v6643_v34  ;;  %8861 = vst [vmem:[#allocation247_spill] sm:$0xff] %v6689_v9 }
 0x2e0   :  { %v6641_v41 = vpop.xlane.xlu1 %3121  ;;  %v6651_v10 = vpop.xlane.xlu0 %3028  ;;  %8845 = vst [vmem:[#allocation243_spill] sm:$0xff] %v6653_v43 }
 0x2e1   :  { %8844 = vst [vmem:[#allocation242_spill] sm:$0xff] %v6651_v10  ;;  %v6657_v33 = vpop.eup %4484  ;;  %v2357_v10 = vsub.f32 %v8851_v32, %v6261_v11  ;;  %v6679_v32 = vpop.f32.mrf.mxu0 }
 0x2e2   :  { %8848 = vst [vmem:[#allocation244_spill] sm:$0xff] %v6657_v33  ;;  %v3087_v11 = vadd.f32 %v6657_v33, %v6653_v43  ;;  %8855 = vst [vmem:[#allocation63_spill] sm:$0xff] %v6679_v32  ;;  %v6683_v34 = vpop.eup %4486  ;;  %v8865_v43 = vld [vmem:[#allocation111_spill] sm:$0xff] }
 0x2e3   :  { %3208 = vadd.xlane.f32.xlu1 %v3207_v25  ;;  %2062 = vmax.xlane.f32.xlu0 %v2061_v26  ;;  %v2290_v25 = vsub.f32 %v8852_v61, %v6185_v35  ;;  %v2718_v26 = vmul.f32 1.442695, %v2356_v1  ;;  %8857 = vst [vmem:[#allocation245_spill] sm:$0xff] %v6683_v34  ;;  %v8859_v61 = vld [vmem:[#allocation118_spill] sm:$0xff]  ;;  %v2720_v0 = vmul.f32 1.442695, %v2357_v10  ;;  %v6687_v21 = vpop.eup %4488 }
 0x2e4   :  { %v6663_v22 = vpop.xlane.xlu1 %2185  ;;  %v6673_v54 = vpop.xlane.xlu0 %2092  ;;  %v2157_v57 = vmax.f32 %v8859_v61, %v8858_v63  ;;  %8860 = vst [vmem:[#allocation246_spill] sm:$0xff] %v6687_v21  ;;  %v8864_v1 = vld [vmem:[#allocation112_spill] sm:$0xff]  ;;  %v8869_v61 = vld [vmem:[#allocation66_spill] sm:$0xff] }
 0x2e5   :  { %v2586_v35 = vmul.f32 1.442695, %v2290_v25  ;;  %v6693_v17 = vpop.eup %4490  ;;  %v2058_v33 = vmax.f32 %v8865_v43, %v8864_v1  ;;  %v8867_v63 = vld [vmem:[#allocation64_spill] sm:$0xff]  ;;  %4502 = vpow2.f32 %v2718_v26  ;;  %v3183_v1 = vadd.f32 %v6687_v21, %v6683_v34  ;;  %v6711_v43 = vpop.f32.mrf.mxu1  ;;  %v8873_v26 = vld [vmem:[#allocation61_spill] sm:$0xff] }
 0x2e6   :  { %8863 = vst [vmem:[#allocation249_spill] sm:$0xff] %v6693_v17  ;;  %v6697_v7 = vpop.eup %4492  ;;  %v2354_v10 = vsub.f32 %v8867_v63, %v6223_v2  ;;  %4504 = vpow2.f32 %v2720_v0  ;;  %8871 = vst [vmem:[#allocation66_spill] sm:$0xff] %v6711_v43  ;;  %v2289_v50 = vsub.f32 %v8873_v26, %v6149_v13 }
 0x2e7   :  { %3187 = vadd.xlane.f32.xlu1 %v3186_v52  ;;  %3088 = vadd.xlane.f32.xlu0 %v3087_v11  ;;  %8866 = vst [vmem:[#allocation250_spill] sm:$0xff] %v6697_v7  ;;  %v6701_v11 = vpop.f32.mrf.mxu0  ;;  %4506 = vpow2.f32 %v2586_v35  ;;  %v8877_v35 = vld [vmem:[#allocation116_spill] sm:$0xff] }
 0x2e8   :  { %v6681_v53 = vpop.xlane.xlu1 %3124  ;;  %v6691_v52 = vpop.xlane.xlu0 %3031  ;;  %8868 = vst [vmem:[#allocation64_spill] sm:$0xff] %v6701_v11 }
 0x2e9   :  { %8856 = vst [vmem:[#allocation65_spill] sm:$0xff] %v6681_v53  ;;  %8862 = vst [vmem:[#allocation248_spill] sm:$0xff] %v6691_v52  ;;  %v2588_v53 = vmul.f32 1.442695, %v2291_v30  ;;  %v2355_v52 = vsub.f32 %v8869_v61, %v6223_v2  ;;  %v8870_v30 = vld [vmem:[#allocation59_spill] sm:$0xff]  ;;  %v3084_v2 = vadd.f32 %v6697_v7, %v6693_v17  ;;  %v6719_v0 = vpop.f32.mrf.mxu0  ;;  %v6723_v34 = vpop.eup %4494 }
 0x2ea   :  { %8874 = vst [vmem:[#allocation61_spill] sm:$0xff] %v6719_v0  ;;  %8876 = vst [vmem:[#allocation252_spill] sm:$0xff] %v6723_v34  ;;  %v2151_v17 = vmax.f32 %v6701_v11, %v6719_v0 }
 0x2eb   :  { %2158 = vmax.xlane.f32.xlu1 %v2157_v57  ;;  %2059 = vmax.xlane.f32.xlu0 %v2058_v33  ;;  %v2288_v57 = vsub.f32 %v8870_v30, %v6149_v13  ;;  %4508 = vpow2.f32 %v2588_v53  ;;  %v2714_v33 = vmul.f32 1.442695, %v2354_v10  ;;  %v8878_v30 = vld [vmem:[#allocation114_spill] sm:$0xff]  ;;  %v2716_v42 = vmul.f32 1.442695, %v2355_v52  ;;  %v6729_v53 = vpop.f32.mrf.mxu1 }
 0x2ec   :  { %v6703_v25 = vpop.xlane.xlu1 %2188  ;;  %v6713_v63 = vpop.xlane.xlu0 %2095  ;;  %v2154_v21 = vmax.f32 %v8878_v30, %v8877_v35  ;;  %8880 = vst [vmem:[#allocation254_spill] sm:$0xff] %v6729_v53  ;;  %v2584_v10 = vmul.f32 1.442695, %v2289_v50  ;;  %v8884_v35 = vld [vmem:[#allocation60_spill] sm:$0xff] }
 0x2ed   :  { %8872 = vst [vmem:[#allocation59_spill] sm:$0xff] %v6713_v63  ;;  %v6727_v63 = vpop.eup %4496  ;;  %v2582_v13 = vmul.f32 1.442695, %v2288_v57  ;;  %v2352_v52 = vsub.f32 %v8884_v35, %v6183_v56  ;;  %4510 = vpow2.f32 %v2714_v33  ;;  %v8885_v57 = vld [vmem:[#allocation62_spill] sm:$0xff]  ;;  %v8888_v33 = vld [vmem:[#allocation57_spill] sm:$0xff] }
 0x2ee   :  { %8879 = vst [vmem:[#allocation253_spill] sm:$0xff] %v6727_v63  ;;  %v6733_v26 = vpop.eup %4498  ;;  %v2353_v30 = vsub.f32 %v8885_v57, %v6183_v56  ;;  %4512 = vpow2.f32 %v2716_v42  ;;  %v3180_v50 = vadd.f32 %v6727_v63, %v6723_v34  ;;  %v2287_v35 = vsub.f32 %v8888_v33, %v6115_v51 }
 0x2ef   :  { %3184 = vadd.xlane.f32.xlu1 %v3183_v1  ;;  %3085 = vadd.xlane.f32.xlu0 %v3084_v2  ;;  %8882 = vst [vmem:[#allocation256_spill] sm:$0xff] %v6733_v26  ;;  %v6737_v7 = vpop.eup %4500  ;;  %4514 = vpow2.f32 %v2582_v13  ;;  %v2710_v42 = vmul.f32 1.442695, %v2352_v52  ;;  %v2148_v52 = vmax.f32 %v6661_v38, %v6679_v32 }
 0x2f0   :  { %v6721_v61 = vpop.xlane.xlu1 %3127  ;;  %v6731_v1 = vpop.xlane.xlu0 %3034  ;;  %8883 = vst [vmem:[#allocation257_spill] sm:$0xff] %v6737_v7  ;;  %4516 = vpow2.f32 %v2584_v10  ;;  %v3081_v56 = vadd.f32 %v6737_v7, %v6733_v26  ;;  %v2712_v34 = vmul.f32 1.442695, %v2353_v30  ;;  %v2580_v10 = vmul.f32 1.442695, %v2287_v35  ;;  %v8893_v30 = vld [vmem:[#allocation56_spill] sm:$0xff] }
 0x2f1   :  { %8875 = vst [vmem:[#allocation251_spill] sm:$0xff] %v6721_v61  ;;  %8881 = vst [vmem:[#allocation255_spill] sm:$0xff] %v6731_v1  ;;  %v8886_v61 = vld [vmem:[#allocation55_spill] sm:$0xff]  ;;  %4518 = vpow2.f32 %v2710_v42  ;;  %v2350_v33 = vsub.f32 %v8893_v30, %v6527_v4  ;;  %v8896_v42 = vld [vmem:[#allocation53_spill] sm:$0xff] }
 0x2f2   :  { %v2286_v0 = vsub.f32 %v8886_v61, %v6115_v51  ;;  %v6759_v57 = vpop.eup %4502  ;;  %4520 = vpow2.f32 %v2712_v34  ;;  %v8895_v7 = vld [vmem:[#allocation51_spill] sm:$0xff]  ;;  %v2285_v30 = vsub.f32 %v8896_v42, %v6525_v23 }
 0x2f3   :  { %2155 = vmax.xlane.f32.xlu1 %v2154_v21  ;;  %2152 = vmax.xlane.f32.xlu0 %v2151_v17  ;;  %v6749_v21 = vpop.f32.mrf.mxu1  ;;  %8889 = vst [vmem:[#allocation62_spill] sm:$0xff] %v6759_v57  ;;  %v6763_v13 = vpop.eup %4504  ;;  %v2706_v38 = vmul.f32 1.442695, %v2350_v33 }
 0x2f4   :  { %v6741_v2 = vpop.xlane.xlu1 %2191  ;;  %8887 = vst [vmem:[#allocation60_spill] sm:$0xff] %v6749_v21  ;;  %v6751_v11 = vpop.xlane.xlu0 %2098  ;;  %v2247_v61 = vmax.f32 %v6729_v53, %v6749_v21  ;;  %8890 = vst [vmem:[#allocation55_spill] sm:$0xff] %v6763_v13  ;;  %v2578_v63 = vmul.f32 1.442695, %v2286_v0  ;;  %v8894_v0 = vld [vmem:[#allocation58_spill] sm:$0xff]  ;;  %v3177_v35 = vadd.f32 %v6763_v13, %v6759_v57  ;;  %v8899_v57 = vld [vmem:[#allocation47_spill] sm:$0xff] }
 0x2f5   :  { %v6767_v51 = vpop.eup %4506  ;;  %v2576_v33 = vmul.f32 1.442695, %v2285_v30  ;;  %v8905_v30 = vld [vmem:[#allocation48_spill] sm:$0xff]  ;;  %v8999_v53 = vld [vmem:[#allocation214_spill] sm:$0xff] }
 0x2f6   :  { %8891 = vst [vmem:[#allocation57_spill] sm:$0xff] %v6767_v51  ;;  %4522 = vpow2.f32 %v2578_v63  ;;  %v2244_v63 = vmax.f32 %v6689_v9, %v6711_v43 }
 0x2f7   :  { %3181 = vadd.xlane.f32.xlu1 %v3180_v50  ;;  %3082 = vadd.xlane.f32.xlu0 %v3081_v56  ;;  %v2351_v56 = vsub.f32 %v8894_v0, %v6527_v4  ;;  %4524 = vpow2.f32 %v2580_v10 }
 0x2f8   :  { %v6757_v17 = vpop.xlane.xlu1 %3130  ;;  %v6765_v1 = vpop.xlane.xlu0 %3037  ;;  %4526 = vpow2.f32 %v2706_v38 }
 0x2f9   :  { %v6771_v50 = vpop.eup %4508  ;;  %v2708_v0 = vmul.f32 1.442695, %v2351_v56  ;;  %v2145_v56 = vmax.f32 %v6617_v12, %v6639_v36 }
 0x2fa   :  { %8892 = vst [vmem:[#allocation258_spill] sm:$0xff] %v6771_v50  ;;  %v3078_v34 = vadd.f32 %v6771_v50, %v6767_v51  ;;  %v8901_v51 = vld [vmem:[#allocation49_spill] sm:$0xff] }
 0x2fb   :  { %2248 = vmax.xlane.f32.xlu1 %v2247_v61  ;;  %2149 = vmax.xlane.f32.xlu0 %v2148_v52  ;;  %v2284_v61 = vsub.f32 %v8895_v7, %v6525_v23  ;;  %v6791_v52 = vpop.eup %4510  ;;  %v2282_v23 = vsub.f32 %v8899_v57, %v6559_v48  ;;  %v2283_v13 = vsub.f32 %v8901_v51, %v6559_v48  ;;  %4528 = vpow2.f32 %v2708_v0  ;;  %v8904_v57 = vld [vmem:[#allocation54_spill] sm:$0xff] }
 0x2fc   :  { %v6775_v26 = vpop.xlane.xlu1 %2194  ;;  %v6783_v32 = vpop.xlane.xlu0 %2101  ;;  %8897 = vst [vmem:[#allocation56_spill] sm:$0xff] %v6791_v52  ;;  %v2349_v9 = vsub.f32 %v8904_v57, %v6561_v3 }
 0x2fd   :  { %v6795_v7 = vpop.eup %4512  ;;  %v2574_v10 = vmul.f32 1.442695, %v2284_v61  ;;  %v8903_v61 = vld [vmem:[#allocation52_spill] sm:$0xff]  ;;  %v2570_v51 = vmul.f32 1.442695, %v2282_v23  ;;  %v2241_v23 = vmax.f32 %v6649_v60, %v6671_v40  ;;  %v8998_v60 = vld [vmem:[#allocation215_spill] sm:$0xff] }
 0x2fe   :  { %8898 = vst [vmem:[#allocation58_spill] sm:$0xff] %v6795_v7  ;;  %v6801_v42 = vpop.eup %4514  ;;  %v3174_v48 = vadd.f32 %v6795_v7, %v6791_v52  ;;  %v2572_v38 = vmul.f32 1.442695, %v2283_v13  ;;  %v8942_v52 = vld [vmem:[#allocation88_spill] sm:$0xff]  ;;  %v8981_v7 = vld [vmem:[#allocation142_spill] sm:$0xff] }
 0x2ff   :  { %3178 = vadd.xlane.f32.xlu1 %v3177_v35  ;;  %3079 = vadd.xlane.f32.xlu0 %v3078_v34  ;;  %8900 = vst [vmem:[#allocation51_spill] sm:$0xff] %v6801_v42  ;;  %v6807_v50 = vpop.eup %4516  ;;  %v2348_v34 = vsub.f32 %v8903_v61, %v6561_v3  ;;  %4530 = vpow2.f32 %v2574_v10  ;;  %v8906_v61 = vld [vmem:[#allocation50_spill] sm:$0xff]  ;;  %v2704_v10 = vmul.f32 1.442695, %v2349_v9  ;;  %v2398_v9 = vsub.f32 %v5937_v46, %v6633_v5 }
 0x300   :  { %v6789_v4 = vpop.xlane.xlu1 %3133  ;;  %v6799_v35 = vpop.xlane.xlu0 %3040  ;;  %8902 = vst [vmem:[#allocation53_spill] sm:$0xff] %v6807_v50  ;;  %4532 = vpow2.f32 %v2576_v33  ;;  %v2347_v12 = vsub.f32 %v8906_v61, %v6595_v44  ;;  %v3075_v0 = vadd.f32 %v6807_v50, %v6801_v42  ;;  %v8983_v42 = vld [vmem:[#allocation89_spill] sm:$0xff]  ;;  %v8988_v50 = vld [vmem:[#allocation42_spill] sm:$0xff] }
 0x301   :  { %v2702_v3 = vmul.f32 1.442695, %v2348_v34  ;;  %v6825_v57 = vpop.eup %4518  ;;  %4534 = vpow2.f32 %v2570_v51  ;;  %v2142_v34 = vmax.f32 %v6571_v15, %v6597_v29  ;;  %v2399_v51 = vsub.f32 %v5953_v47, %v6633_v5  ;;  %v8995_v15 = vld [vmem:[#allocation248_spill] sm:$0xff] }
 0x302   :  { %8907 = vst [vmem:[#allocation47_spill] sm:$0xff] %v6825_v57  ;;  %4536 = vpow2.f32 %v2572_v38  ;;  %v2462_v47 = vsub.f32 %v5973_v58, %v6663_v22  ;;  %v2400_v58 = vsub.f32 %v5975_v45, %v6673_v54 }
 0x303   :  { %2245 = vmax.xlane.f32.xlu1 %v2244_v63  ;;  %2146 = vmax.xlane.f32.xlu0 %v2145_v56  ;;  %v2346_v63 = vsub.f32 %v8905_v30, %v6595_v44  ;;  %v6829_v30 = vpop.eup %4520  ;;  %4538 = vpow2.f32 %v2702_v3 }
 0x304   :  { %v6811_v43 = vpop.xlane.xlu1 %2197  ;;  %v2105_v36 = vpop.xlane.xlu0 %2104  ;;  %8908 = vst [vmem:[#allocation49_spill] sm:$0xff] %v6829_v30  ;;  %4540 = vpow2.f32 %v2704_v10  ;;  %v2802_v10 = vmul.f32 1.442695, %v2398_v9 }
 0x305   :  { %v2698_v13 = vmul.f32 1.442695, %v2346_v63  ;;  %v6833_v44 = vpop.eup %4522  ;;  %v3171_v63 = vadd.f32 %v6829_v30, %v6825_v57  ;;  %v2409_v3 = vsub.f32 %v6109_v24, %v2105_v36  ;;  %v2804_v24 = vmul.f32 1.442695, %v2399_v51 }
 0x306   :  { %8909 = vst [vmem:[#allocation52_spill] sm:$0xff] %v6833_v44  ;;  %v6837_v61 = vpop.eup %4524 }
 0x307   :  { %3175 = vadd.xlane.f32.xlu1 %v3174_v48  ;;  %3076 = vadd.xlane.f32.xlu0 %v3075_v0  ;;  %v2700_v48 = vmul.f32 1.442695, %v2347_v12  ;;  %8910 = vst [vmem:[#allocation54_spill] sm:$0xff] %v6837_v61  ;;  %4542 = vpow2.f32 %v2698_v13  ;;  %v2408_v12 = vsub.f32 %v6093_v37, %v2105_v36  ;;  %v3072_v46 = vadd.f32 %v6837_v61, %v6833_v44  ;;  %v8930_v44 = vld [vmem:[#allocation23_spill] sm:$0xff] }
 0x308   :  { %v6823_v56 = vpop.xlane.xlu1 %3136  ;;  %v6831_v33 = vpop.xlane.xlu0 %3043  ;;  %v2238_v37 = vmax.f32 %v6605_v27, %v6631_v20  ;;  %v2463_v36 = vsub.f32 %v5989_v8, %v6663_v22  ;;  %v2401_v8 = vsub.f32 %v5991_v55, %v6673_v54  ;;  %v2824_v22 = vmul.f32 1.442695, %v2409_v3  ;;  %v8990_v20 = vld [vmem:[#allocation198_spill] sm:$0xff]  ;;  %v8994_v27 = vld [vmem:[#allocation220_spill] sm:$0xff] }
 0x309   :  { %4544 = vpow2.f32 %v2700_v48  ;;  %v2406_v55 = vsub.f32 %v6059_v62, %v6783_v32  ;;  %v2464_v62 = vsub.f32 %v5997_v49, %v6703_v25 }
 0x30a   :  { %4546 = vrcp.f32 %v6585_v18  ;;  %v2822_v18 = vmul.f32 1.442695, %v2408_v12 }
 0x30b   :  { %2242 = vmax.xlane.f32.xlu1 %v2241_v23  ;;  %2143 = vmax.xlane.f32.xlu0 %v2142_v34  ;;  %v6856_v23 = vpop.eup %4526  ;;  %4548 = vrcp.f32 %v6607_v31  ;;  %v2139_v31 = vmax.f32 %v6517_v16, %v6549_v14  ;;  %v8989_v16 = vld [vmem:[#allocation204_spill] sm:$0xff] }
 0x30c   :  { %v2201_v0 = vpop.xlane.xlu1 %2200  ;;  %v6846_v38 = vpop.xlane.xlu0 %3046  ;;  %8911 = vst [vmem:[#allocation48_spill] sm:$0xff] %v6856_v23  ;;  %4550 = vrcp.f32 %v6619_v28  ;;  %v2930_v28 = vmul.f32 1.442695, %v2462_v47 }
 0x30d   :  { %v6863_v13 = vpop.eup %4528  ;;  %4552 = vrcp.f32 %v6641_v41  ;;  %v2472_v45 = vsub.f32 %v6111_v6, %v2201_v0  ;;  %v2473_v12 = vsub.f32 %v6135_v19, %v2201_v0  ;;  %v2808_v6 = vmul.f32 1.442695, %v2401_v8  ;;  %v8921_v8 = vld [vmem:[#allocation59_spill] sm:$0xff] }
 0x30e   :  { %8912 = vst [vmem:[#allocation50_spill] sm:$0xff] %v6863_v13  ;;  %v6870_v34 = vpop.eup %4530  ;;  %4554 = vpow2.f32 %v2802_v10  ;;  %v3168_v41 = vadd.f32 %v6863_v13, %v6856_v23  ;;  %v2407_v10 = vsub.f32 %v6079_v59, %v6783_v32  ;;  %v8919_v59 = vld [vmem:[#allocation177_spill] sm:$0xff] }
 0x30f   :  { %3172 = vadd.xlane.f32.xlu1 %v3171_v63  ;;  %3073 = vadd.xlane.f32.xlu0 %v3072_v46  ;;  %8913 = vst [vmem:[#allocation259_spill] sm:$0xff] %v6870_v34  ;;  %v6877_v9 = vpop.eup %4532  ;;  %4556 = vpow2.f32 %v2804_v24  ;;  %v2932_v63 = vmul.f32 1.442695, %v2463_v36  ;;  %v2806_v46 = vmul.f32 1.442695, %v2400_v58  ;;  %v8918_v36 = vld [vmem:[#allocation226_spill] sm:$0xff]  ;;  %v2465_v32 = vsub.f32 %v8919_v59, %v6703_v25 }
 0x310   :  { %v6854_v5 = vpop.xlane.xlu1 %3139  ;;  %v6868_v48 = vpop.xlane.xlu0 %3049  ;;  %8914 = vst [vmem:[#allocation260_spill] sm:$0xff] %v6877_v9  ;;  %4558 = vpow2.f32 %v2822_v18  ;;  %v3069_v19 = vadd.f32 %v6877_v9, %v6870_v34  ;;  %v2950_v47 = vmul.f32 1.442695, %v2472_v45  ;;  %v2235_v58 = vmax.f32 %v8918_v36, %v6583_v39  ;;  %v8924_v34 = vld [vmem:[#allocation102_spill] sm:$0xff]  ;;  %v8925_v9 = vld [vmem:[#allocation101_spill] sm:$0xff]  ;;  %v8928_v59 = vld [vmem:[#allocation191_spill] sm:$0xff] }
 0x311   :  { %v6889_v3 = vpop.eup %4534  ;;  %4560 = vpow2.f32 %v2824_v22  ;;  %v2952_v18 = vmul.f32 1.442695, %v2473_v12  ;;  %v8922_v22 = vld [vmem:[#allocation174_spill] sm:$0xff]  ;;  %v2136_v23 = vmax.f32 %v8925_v9, %v8924_v34  ;;  %v2820_v12 = vmul.f32 1.442695, %v2407_v10  ;;  %v8987_v36 = vld [vmem:[#allocation19_spill] sm:$0xff] }
 0x312   :  { %8915 = vst [vmem:[#allocation261_spill] sm:$0xff] %v6889_v3  ;;  %v6895_v0 = vpop.eup %4536  ;;  %4562 = vpow2.f32 %v2930_v28  ;;  %v2402_v49 = vsub.f32 %v8922_v22, %v8921_v8  ;;  %v2818_v28 = vmul.f32 1.442695, %v2406_v55  ;;  %v2470_v22 = vsub.f32 %v8928_v59, %v6811_v43  ;;  %v8980_v9 = vld [vmem:[#allocation38_spill] sm:$0xff] }
 0x313   :  { %2239 = vmax.xlane.f32.xlu1 %v2238_v37  ;;  %2140 = vmax.xlane.f32.xlu0 %v2139_v31  ;;  %8916 = vst [vmem:[#allocation262_spill] sm:$0xff] %v6895_v0  ;;  %v6901_v24 = vpop.eup %4538  ;;  %4564 = vpow2.f32 %v2932_v63  ;;  %v8926_v63 = vld [vmem:[#allocation180_spill] sm:$0xff]  ;;  %v2936_v57 = vmul.f32 1.442695, %v2465_v32 }
 0x314   :  { %v6880_v51 = vpop.xlane.xlu1 %3142  ;;  %v6887_v54 = vpop.xlane.xlu0 %3052  ;;  %8917 = vst [vmem:[#allocation263_spill] sm:$0xff] %v6901_v24  ;;  %4566 = vpow2.f32 %v2806_v46  ;;  %v2404_v25 = vsub.f32 %v8926_v63, %v6751_v11  ;;  %v2934_v46 = vmul.f32 1.442695, %v2464_v62  ;;  %v2810_v62 = vmul.f32 1.442695, %v2402_v49  ;;  %v8931_v63 = vld [vmem:[#allocation186_spill] sm:$0xff] }
 0x315   :  { %v6907_v31 = vpop.eup %4540  ;;  %4568 = vpow2.f32 %v2808_v6  ;;  %v2471_v6 = vsub.f32 %v8930_v44, %v6811_v43  ;;  %v2405_v59 = vsub.f32 %v8931_v63, %v6751_v11  ;;  %v3066_v43 = vadd.f32 %v6895_v0, %v6889_v3  ;;  %v8935_v49 = vld [vmem:[#allocation80_spill] sm:$0xff]  ;;  %v8937_v63 = vld [vmem:[#allocation178_spill] sm:$0xff] }
 0x316   :  { %8920 = vst [vmem:[#allocation177_spill] sm:$0xff] %v6907_v31  ;;  %4570 = vpow2.f32 %v2950_v47  ;;  %v3165_v10 = vadd.f32 %v6907_v31, %v6901_v24  ;;  %v2814_v30 = vmul.f32 1.442695, %v2404_v25  ;;  %v8936_v11 = vld [vmem:[#allocation104_spill] sm:$0xff]  ;;  %v2403_v25 = vsub.f32 %v8937_v63, %v8921_v8  ;;  %v8941_v31 = vld [vmem:[#allocation95_spill] sm:$0xff] }
 0x317   :  { %3169 = vadd.xlane.f32.xlu1 %v3168_v41  ;;  %3070 = vadd.xlane.f32.xlu0 %v3069_v19  ;;  %v6913_v41 = vpop.eup %4542  ;;  %4572 = vpow2.f32 %v2952_v18  ;;  %v2816_v3 = vmul.f32 1.442695, %v2405_v59  ;;  %v2133_v34 = vmax.f32 %v8942_v52, %v8941_v31 }
 0x318   :  { %v6899_v37 = vpop.xlane.xlu1 %3145  ;;  %v6911_v45 = vpop.xlane.xlu0 %3055  ;;  %8923 = vst [vmem:[#allocation59_spill] sm:$0xff] %v6913_v41  ;;  %4574 = vpow2.f32 %v2818_v28  ;;  %v2232_v28 = vmax.f32 %v8936_v11, %v8935_v49  ;;  %v2812_v59 = vmul.f32 1.442695, %v2403_v25  ;;  %v8978_v11 = vld [vmem:[#allocation201_spill] sm:$0xff] }
 0x319   :  { %v6919_v19 = vpop.eup %4544  ;;  %4576 = vpow2.f32 %v2820_v12  ;;  %v2948_v12 = vmul.f32 1.442695, %v2471_v6 }
 0x31a   :  { %8927 = vst [vmem:[#allocation174_spill] sm:$0xff] %v6919_v19  ;;  %v6925_v13 = vpop.eup %4546  ;;  %4578 = vpow2.f32 %v2934_v46  ;;  %v8939_v46 = vld [vmem:[#allocation187_spill] sm:$0xff] }
 0x31b   :  { %2236 = vmax.xlane.f32.xlu1 %v2235_v58  ;;  %8929 = vst [vmem:[#allocation180_spill] sm:$0xff] %v6925_v13  ;;  %2137 = vmax.xlane.f32.xlu0 %v2136_v23  ;;  %v6931_v58 = vpop.eup %4548  ;;  %v2946_v23 = vmul.f32 1.442695, %v2470_v22  ;;  %4580 = vpow2.f32 %v2936_v57  ;;  %v2468_v22 = vsub.f32 %v8939_v46, %v6775_v26  ;;  %v8943_v57 = vld [vmem:[#allocation188_spill] sm:$0xff]  ;;  %v9003_v13 = vld [vmem:[#allocation210_spill] sm:$0xff] }
 0x31c   :  { %v6923_v55 = vpop.xlane.xlu1 %3148  ;;  %v3059_v47 = vpop.xlane.xlu0 %3058  ;;  %v2469_v49 = vsub.f32 %v8943_v57, %v6775_v26  ;;  %v8951_v57 = vld [vmem:[#allocation94_spill] sm:$0xff] }
 0x31d   :  { %v6935_v61 = vpop.eup %4550  ;;  %4582 = vpow2.f32 %v2810_v62 }
 0x31e   :  { %8932 = vst [vmem:[#allocation191_spill] sm:$0xff] %v6935_v61  ;;  %v6939_v44 = vpop.eup %4552  ;;  %4584 = vpow2.f32 %v2814_v30  ;;  %v2942_v30 = vmul.f32 1.442695, %v2468_v22  ;;  %v2944_v26 = vmul.f32 1.442695, %v2469_v49 }
 0x31f   :  { %3166 = vadd.xlane.f32.xlu1 %v3165_v10  ;;  %8933 = vst [vmem:[#allocation23_spill] sm:$0xff] %v6939_v44  ;;  %v6943_v18 = vpop.eup %4554  ;;  %3067 = vadd.xlane.f32.xlu0 %v3066_v43  ;;  %4586 = vpow2.f32 %v2946_v23  ;;  %v3162_v43 = vadd.f32 %v6919_v19, %v6913_v41  ;;  %v8957_v19 = vld [vmem:[#allocation183_spill] sm:$0xff]  ;;  %v9000_v44 = vld [vmem:[#allocation85_spill] sm:$0xff] }
 0x320   :  { %v6941_v32 = vpop.xlane.xlu1 %3151  ;;  %8934 = vst [vmem:[#allocation186_spill] sm:$0xff] %v6943_v18  ;;  %v6949_v10 = vpop.eup %4556  ;;  %4588 = vpow2.f32 %v2948_v12  ;;  %v8950_v12 = vld [vmem:[#allocation103_spill] sm:$0xff]  ;;  %v2467_v52 = vsub.f32 %v8957_v19, %v6741_v2 }
 0x321   :  { %8938 = vst [vmem:[#allocation178_spill] sm:$0xff] %v6949_v10  ;;  %v3062_v0 = vpop.xlane.xlu0 %3061  ;;  %v6953_v24 = vpop.eup %4558  ;;  %4590 = vpow2.f32 %v2816_v3  ;;  %v2229_v41 = vmax.f32 %v8951_v57, %v8950_v12  ;;  %v8952_v3 = vld [vmem:[#allocation179_spill] sm:$0xff] }
 0x322   :  { %8940 = vst [vmem:[#allocation187_spill] sm:$0xff] %v6953_v24  ;;  %v6959_v8 = vpop.eup %4560  ;;  %v2466_v22 = vsub.f32 %v8952_v3, %v6741_v2  ;;  %v2940_v19 = vmul.f32 1.442695, %v2467_v52 }
 0x323   :  { %2233 = vmax.xlane.f32.xlu1 %v2232_v28  ;;  %8944 = vst [vmem:[#allocation188_spill] sm:$0xff] %v6959_v8  ;;  %v6961_v62 = vpop.eup %4562  ;;  %2134 = vmax.xlane.f32.xlu0 %v2133_v34  ;;  %v3255_v23 = vadd.f32 %v6959_v8, %v6953_v24  ;;  %v8955_v24 = vld [vmem:[#allocation91_spill] sm:$0xff] }
 0x324   :  { %v3155_v6 = vpop.xlane.xlu1 %3154  ;;  %8945 = vst [vmem:[#allocation264_spill] sm:$0xff] %v6961_v62  ;;  %v6965_v63 = vpop.eup %4564  ;;  %v2938_v12 = vmul.f32 1.442695, %v2466_v22 }
 0x325   :  { %8946 = vst [vmem:[#allocation265_spill] sm:$0xff] %v6965_v63  ;;  %v3065_v46 = vpop.xlane.xlu0 %3064  ;;  %v6967_v31 = vpop.eup %4566 }
 0x326   :  { %8947 = vst [vmem:[#allocation266_spill] sm:$0xff] %v6967_v31  ;;  %4592 = vrcp.f32 %v3065_v46  ;;  %v6971_v28 = vpop.eup %4568 }
 0x327   :  { %3163 = vadd.xlane.f32.xlu1 %v3162_v43  ;;  %8948 = vst [vmem:[#allocation267_spill] sm:$0xff] %v6971_v28  ;;  %4594 = vrcp.f32 %v3062_v0  ;;  %v6973_v25 = vpop.eup %4570  ;;  %3256 = vadd.xlane.f32.xlu0 %v3255_v23  ;;  %v8956_v0 = vld [vmem:[#allocation84_spill] sm:$0xff] }
 0x328   :  { %v3158_v34 = vpop.xlane.xlu1 %3157  ;;  %8949 = vst [vmem:[#allocation268_spill] sm:$0xff] %v6973_v25  ;;  %4596 = vpow2.f32 %v2812_v59  ;;  %v6979_v49 = vpop.eup %4572  ;;  %v2130_v8 = vmax.f32 %v8956_v0, %v8955_v24 }
 0x329   :  { %8953 = vst [vmem:[#allocation179_spill] sm:$0xff] %v6979_v49  ;;  %4598 = vpow2.f32 %v2942_v30  ;;  %v6981_v43 = vpop.xlane.xlu0 %3019  ;;  %v6983_v46 = vpop.eup %4574  ;;  %v3351_v30 = vadd.f32 %v6979_v49, %v6973_v25 }
 0x32a   :  { %8954 = vst [vmem:[#allocation269_spill] sm:$0xff] %v6983_v46  ;;  %4600 = vpow2.f32 %v2944_v26  ;;  %v6989_v59 = vpop.eup %4576 }
 0x32b   :  { %2230 = vmax.xlane.f32.xlu1 %v2229_v41  ;;  %8958 = vst [vmem:[#allocation183_spill] sm:$0xff] %v6989_v59  ;;  %4602 = vrcp.f32 %v3059_v47  ;;  %v6991_v23 = vpop.eup %4578  ;;  %2131 = vmax.xlane.f32.xlu0 %v2130_v8  ;;  %v8962_v41 = vld [vmem:[#allocation255_spill] sm:$0xff]  ;;  %v3252_v47 = vadd.f32 %v6989_v59, %v6983_v46 }
 0x32c   :  { %v3161_v3 = vpop.xlane.xlu1 %3160  ;;  %8959 = vst [vmem:[#allocation270_spill] sm:$0xff] %v6991_v23  ;;  %v6995_v57 = vpop.eup %4580  ;;  %v8970_v46 = vld [vmem:[#allocation83_spill] sm:$0xff] }
 0x32d   :  { %4604 = vrcp.f32 %v3161_v3  ;;  %8960 = vst [vmem:[#allocation271_spill] sm:$0xff] %v6995_v57  ;;  %v6997_v24 = vpop.xlane.xlu0 %2086  ;;  %v6999_v2 = vpop.eup %4582  ;;  %v8966_v3 = vld [vmem:[#allocation93_spill] sm:$0xff] }
 0x32e   :  { %4606 = vrcp.f32 %v3158_v34  ;;  %8961 = vst [vmem:[#allocation272_spill] sm:$0xff] %v6999_v2  ;;  %v7004_v26 = vpop.eup %4584  ;;  %v8965_v34 = vld [vmem:[#allocation90_spill] sm:$0xff] }
 0x32f   :  { %4608 = vrcp.f32 %v8962_v41  ;;  %3352 = vadd.xlane.f32.xlu1 %v3351_v30  ;;  %8963 = vst [vmem:[#allocation255_spill] sm:$0xff] %v7004_v26  ;;  %v7009_v22 = vpop.eup %4586  ;;  %v2226_v25 = vmax.f32 %v8966_v3, %v8965_v34  ;;  %3253 = vadd.xlane.f32.xlu0 %v3252_v47  ;;  %v8969_v41 = vld [vmem:[#allocation87_spill] sm:$0xff]  ;;  %v8975_v3 = vld [vmem:[#allocation242_spill] sm:$0xff] }
 0x330   :  { %4610 = vrcp.f32 %v6911_v45  ;;  %v7007_v8 = vpop.xlane.xlu1 %3115  ;;  %8964 = vst [vmem:[#allocation273_spill] sm:$0xff] %v7009_v22  ;;  %v7013_v49 = vpop.eup %4588  ;;  %v2127_v59 = vmax.f32 %v8970_v46, %v8969_v41  ;;  %v8973_v41 = vld [vmem:[#allocation205_spill] sm:$0xff] }
 0x331   :  { %4612 = vpow2.f32 %v2938_v12  ;;  %8967 = vst [vmem:[#allocation274_spill] sm:$0xff] %v7013_v49  ;;  %v7015_v52 = vpop.xlane.xlu0 %2083  ;;  %v7017_v30 = vpop.eup %4590 }
 0x332   :  { %4614 = vrcp.f32 %v3155_v6  ;;  %8968 = vst [vmem:[#allocation275_spill] sm:$0xff] %v7017_v30  ;;  %v3348_v6 = vadd.f32 %v7013_v49, %v7009_v22 }
 0x333   :  { %4616 = vpow2.f32 %v2940_v19  ;;  %2227 = vmax.xlane.f32.xlu1 %v2226_v25  ;;  %v4593_v45 = vpop.eup %4592  ;;  %2128 = vmax.xlane.f32.xlu0 %v2127_v59  ;;  %v8972_v19 = vld [vmem:[#allocation206_spill] sm:$0xff] }
 0x334   :  { %4618 = vrcp.f32 %v6887_v54  ;;  %v7022_v0 = vpop.xlane.xlu1 %2182  ;;  %v4595_v34 = vpop.eup %4594  ;;  %v3561_v25 = vmul.f32 %v4593_v45, %v8972_v19  ;;  %v3560_v46 = vmul.f32 %v4593_v45, %v8973_v41  ;;  %v8979_v41 = vld [vmem:[#allocation195_spill] sm:$0xff] }
 0x335   :  { %4620 = vrcp.f32 %v6799_v35  ;;  %v7027_v12 = vpop.eup %4596  ;;  %v7030_v47 = vpop.xlane.xlu0 %2080  ;;  %v3249_v35 = vadd.f32 %v7017_v30, %v7004_v26  ;;  %v8984_v26 = vld [vmem:[#allocation65_spill] sm:$0xff]  ;;  %v8986_v30 = vld [vmem:[#allocation207_spill] sm:$0xff] }
 0x336   :  { %8971 = vst [vmem:[#allocation276_spill] sm:$0xff] %v7027_v12  ;;  %4622 = vrcp.f32 %v6941_v32  ;;  %v7034_v54 = vpop.eup %4598  ;;  %3786 = vmatprep.subr.mxu0 %v3561_v25  ;;  %v8977_v32 = vld [vmem:[#allocation200_spill] sm:$0xff]  ;;  %v8985_v25 = vld [vmem:[#allocation213_spill] sm:$0xff] }
 0x337   :  { %8974 = vst [vmem:[#allocation206_spill] sm:$0xff] %v7034_v54  ;;  %4624 = vrcp.f32 %v8975_v3  ;;  %3349 = vadd.xlane.f32.xlu1 %v3348_v6  ;;  %v7039_v59 = vpop.eup %4600  ;;  %v3559_v22 = vmul.f32 %v4595_v34, %v8977_v32  ;;  %v8982_v6 = vld [vmem:[#allocation86_spill] sm:$0xff]  ;;  %3787 = vmatpush1.xpose.msra.mxu0 %v3560_v46  ;;  %v8996_v32 = vld [vmem:[#allocation199_spill] sm:$0xff] }
 0x338   :  { %8976 = vst [vmem:[#allocation205_spill] sm:$0xff] %v7039_v59  ;;  %4626 = vrcp.f32 %v6868_v48  ;;  %v7043_v49 = vpop.xlane.xlu1 %2179  ;;  %v4603_v19 = vpop.eup %4602  ;;  %v2223_v39 = vmax.f32 %v8983_v42, %v8982_v6  ;;  %3250 = vadd.xlane.f32.xlu0 %v3249_v35  ;;  %v8991_v42 = vld [vmem:[#allocation221_spill] sm:$0xff]  ;;  %v8993_v35 = vld [vmem:[#allocation222_spill] sm:$0xff]  ;;  %v3558_v40 = vmul.f32 %v4595_v34, %v8996_v32 }
 0x339   :  { %4628 = vrcp.f32 %v8984_v26  ;;  %3788 = vmatprep.subr.mxu0 %v3559_v22  ;;  %v7059_v3 = vpop.xlane.xlu0 %2077  ;;  %v8992_v26 = vld [vmem:[#allocation217_spill] sm:$0xff]  ;;  %v2124_v29 = vmax.f32 %v8994_v27, %v8993_v35  ;;  %v9001_v35 = vld [vmem:[#allocation223_spill] sm:$0xff] }
 0x33a   :  { %v4605_v48 = vpop.eup %4604  ;;  %4630 = vrcp.f32 %v6923_v55  ;;  %v8997_v55 = vld [vmem:[#allocation194_spill] sm:$0xff]  ;;  %v2220_v27 = vmax.f32 %v9001_v35, %v9000_v44 }
 0x33b   :  { %v4607_v6 = vpop.eup %4606  ;;  %4632 = vrcp.f32 %v8995_v15  ;;  %2224 = vmax.xlane.f32.xlu1 %v2223_v39  ;;  %v3557_v22 = vmul.f32 %v4603_v19, %v8997_v55  ;;  %v3625_v21 = vmul.f32 %v4605_v48, %v8998_v60  ;;  %v3624_v46 = vmul.f32 %v4605_v48, %v8999_v53  ;;  %v9002_v15 = vld [vmem:[#allocation216_spill] sm:$0xff]  ;;  %v9004_v39 = vld [vmem:[#allocation251_spill] sm:$0xff]  ;;  %3789 = vmatpush1.xpose.msra.mxu0 %v3558_v40  ;;  %v9007_v55 = vld [vmem:[#allocation209_spill] sm:$0xff] }
 0x33c   :  { %v7067_v14 = vpop.eup %4608  ;;  %4634 = vrcp.f32 %v6846_v38  ;;  %v7071_v45 = vpop.xlane.xlu1 %2176  ;;  %v2121_v34 = vmax.f32 %v9003_v13, %v9002_v15  ;;  %2125 = vmax.xlane.f32.xlu0 %v2124_v29  ;;  %v3345_v38 = vadd.f32 %v7039_v59, %v7034_v54  ;;  %v9006_v60 = vld [vmem:[#allocation156_spill] sm:$0xff]  ;;  %v3623_v15 = vmul.f32 %v4607_v6, %v9007_v55 }
 0x33d   :  { %v4611_v61 = vpop.eup %4610  ;;  %4636 = vrcp.f32 %v9004_v39  ;;  %v2396_v53 = vsub.f32 %v9006_v60, %v6997_v24  ;;  %3790 = vmatprep.subr.mxu0 %v3557_v22  ;;  %v7087_v48 = vpop.xlane.xlu0 %2074  ;;  %3863 = vmatprep.subr.mxu1 %v3625_v21  ;;  %v7092_v40 = vadd.f32 %v6949_v10, %v6943_v18  ;;  %v9008_v39 = vld [vmem:[#allocation158_spill] sm:$0xff]  ;;  %v3246_v22 = vadd.f32 %v7027_v12, %v6999_v2  ;;  %v9011_v60 = vld [vmem:[#allocation20_spill] sm:$0xff] }
 0x33e   :  { %v7082_v32 = vpop.eup %4612  ;;  %4638 = vrcp.f32 %v6899_v37  ;;  %v2397_v54 = vsub.f32 %v9008_v39, %v6997_v24  ;;  %v9009_v37 = vld [vmem:[#allocation21_spill] sm:$0xff]  ;;  %3864 = vmatpush1.xpose.msra.mxu1 %v3624_v46  ;;  %v3555_v55 = vmul.f32 %v4611_v61, %v9011_v60  ;;  %v7112_v24 = vadd.f32 %v6965_v63, %v6961_v62  ;;  %v9012_v46 = vld [vmem:[#allocation208_spill] sm:$0xff] }
 0x33f   :  { %9005 = vst [vmem:[#allocation242_spill] sm:$0xff] %v7082_v32  ;;  %v4615_v29 = vpop.eup %4614  ;;  %4640 = vrcp.f32 %v6757_v17  ;;  %v3556_v59 = vmul.f32 %v4603_v19, %v9009_v37  ;;  %3346 = vadd.xlane.f32.xlu1 %v3345_v38  ;;  %3865 = vmatprep.subr.mxu1 %v3623_v15  ;;  %v7108_v17 = vadd.f32 %v6971_v28, %v6967_v31  ;;  %v9013_v38 = vld [vmem:[#allocation185_spill] sm:$0xff]  ;;  %v2798_v60 = vmul.f32 1.442695, %v2396_v53  ;;  %v9014_v62 = vld [vmem:[#allocation152_spill] sm:$0xff] }
 0x340   :  { %v7100_v21 = vpop.eup %4616  ;;  %4642 = vrcp.f32 %v6831_v33  ;;  %v7104_v18 = vpop.xlane.xlu1 %2173  ;;  %3247 = vadd.xlane.f32.xlu0 %v3246_v22  ;;  %v3622_v33 = vmul.f32 %v4607_v6, %v9012_v46  ;;  %v7118_v15 = vadd.f32 %v6995_v57, %v6991_v23  ;;  %v7122_v39 = vmul.f32 %v7067_v14, %v9013_v38  ;;  %v9015_v6 = vld [vmem:[#allocation203_spill] sm:$0xff]  ;;  %v9016_v38 = vld [vmem:[#allocation154_spill] sm:$0xff]  ;;  %v9024_v28 = vld [vmem:[#allocation197_spill] sm:$0xff] }
 0x341   :  { %9010 = vst [vmem:[#allocation200_spill] sm:$0xff] %v7100_v21  ;;  %v4619_v19 = vpop.eup %4618  ;;  %4644 = vrcp.f32 %v6765_v1  ;;  %3791 = vmatpush1.xpose.msra.mxu0 %v3556_v59  ;;  %v2394_v1 = vsub.f32 %v9014_v62, %v7015_v52  ;;  %v7129_v59 = vpop.xlane.xlu0 %2071  ;;  %v3621_v22 = vmul.f32 %v4615_v29, %v9015_v6  ;;  %v2800_v63 = vmul.f32 1.442695, %v2397_v54  ;;  %v9017_v23 = vld [vmem:[#allocation18_spill] sm:$0xff]  ;;  %v9022_v54 = vld [vmem:[#allocation29_spill] sm:$0xff] }
 0x342   :  { %v7124_v37 = vpop.eup %4620  ;;  %4646 = vrcp.f32 %v6880_v51  ;;  %3792 = vmatprep.subr.mxu0 %v3555_v55  ;;  %v2395_v10 = vsub.f32 %v9016_v38, %v7015_v52  ;;  %v3554_v57 = vmul.f32 %v4611_v61, %v9017_v23  ;;  %3866 = vmatpush1.xpose.msra.mxu1 %v3622_v33  ;;  %v9018_v62 = vld [vmem:[#allocation162_spill] sm:$0xff]  ;;  %v9019_v55 = vld [vmem:[#allocation43_spill] sm:$0xff] }
 0x343   :  { %v4623_v46 = vpop.eup %4622  ;;  %4648 = vrcp.f32 %v6789_v4  ;;  %2221 = vmax.xlane.f32.xlu1 %v2220_v27  ;;  %v2460_v53 = vsub.f32 %v9018_v62, %v7022_v0  ;;  %3867 = vmatprep.subr.mxu1 %v3621_v22  ;;  %v3553_v6 = vmul.f32 %v4619_v19, %v9019_v55  ;;  %v3342_v4 = vadd.f32 %v7100_v21, %v7082_v32  ;;  %v9020_v27 = vld [vmem:[#allocation165_spill] sm:$0xff]  ;;  %v9023_v62 = vld [vmem:[#allocation147_spill] sm:$0xff] }
 0x344   :  { %v7136_v51 = vpop.eup %4624  ;;  %4650 = vrcp.f32 %v6823_v56  ;;  %v7142_v31 = vpop.xlane.xlu1 %2170  ;;  %v2461_v61 = vsub.f32 %v9020_v27, %v7022_v0  ;;  %2122 = vmax.xlane.f32.xlu0 %v2121_v34  ;;  %v9021_v56 = vld [vmem:[#allocation202_spill] sm:$0xff]  ;;  %v7152_v33 = vmul.f32 %v7124_v37, %v9022_v54  ;;  %v2794_v38 = vmul.f32 1.442695, %v2394_v1 }
 0x345   :  { %v4627_v52 = vpop.eup %4626  ;;  %4652 = vrcp.f32 %v6854_v5  ;;  %3793 = vmatpush1.xpose.msra.mxu0 %v3554_v57  ;;  %v3620_v23 = vmul.f32 %v4615_v29, %v9021_v56  ;;  %v2392_v55 = vsub.f32 %v9023_v62, %v7030_v47  ;;  %v7158_v5 = vpop.xlane.xlu0 %2068  ;;  %v3619_v0 = vmul.f32 %v4623_v46, %v9024_v28  ;;  %v166_v57 = vld [vmem:[#allocation7 + $0x8] sm:$0xff]  ;;  %v9025_v27 = vld [vmem:[#allocation150_spill] sm:$0xff]  ;;  %v9028_v28 = vld [vmem:[#allocation41_spill] sm:$0xff] }
 0x346   :  { %v7154_v22 = vpop.eup %4628  ;;  %4654 = vpow2.f32 %v2798_v60  ;;  %3794 = vmatprep.subr.mxu0 %v3553_v6  ;;  %v2796_v29 = vmul.f32 1.442695, %v2395_v10  ;;  %v2393_v56 = vsub.f32 %v9025_v27, %v7030_v47  ;;  %v9026_v54 = vld [vmem:[#allocation146_spill] sm:$0xff]  ;;  %v2926_v1 = vmul.f32 1.442695, %v2460_v53  ;;  %v9027_v6 = vld [vmem:[#allocation157_spill] sm:$0xff]  ;;  %3850 = vmatprep.mubr.f32.mxu0 %v166_v57 }
 0x347   :  { %v4631_v34 = vpop.eup %4630  ;;  %4656 = vpow2.f32 %v2800_v63  ;;  %v3552_v32 = vmul.f32 %v4619_v19, %v9026_v54  ;;  %3868 = vmatpush1.xpose.msra.mxu1 %v3620_v23  ;;  %3343 = vadd.xlane.f32.xlu1 %v3342_v4  ;;  %v2458_v62 = vsub.f32 %v9027_v6, %v7043_v49  ;;  %v3551_v21 = vmul.f32 %v4627_v52, %v9028_v28  ;;  %v9029_v19 = vld [vmem:[#allocation159_spill] sm:$0xff] }
 0x348   :  { %v7164_v60 = vpop.eup %4632  ;;  %4658 = vrcp.f32 %v6981_v43  ;;  %3869 = vmatprep.subr.mxu1 %v3619_v0  ;;  %v7170_v63 = vpop.xlane.xlu1 %2167  ;;  %v2928_v47 = vmul.f32 1.442695, %v2461_v61  ;;  %v2459_v4 = vsub.f32 %v9029_v19, %v7043_v49  ;;  %3244 = vadd.xlane.f32.xlu0 %v7108_v17  ;;  %v9030_v43 = vld [vmem:[#allocation196_spill] sm:$0xff]  ;;  %v2790_v0 = vmul.f32 1.442695, %v2392_v55  ;;  %v9031_v27 = vld [vmem:[#allocation139_spill] sm:$0xff] }
 0x349   :  { %v4635_v10 = vpop.eup %4634  ;;  %4660 = vrcp.f32 %v7007_v8  ;;  %3795 = vmatpush1.xpose.msra.mxu0 %v3552_v32  ;;  %v3618_v53 = vmul.f32 %v4623_v46, %v9030_v43  ;;  %v2390_v54 = vsub.f32 %v9031_v27, %v7059_v3  ;;  %v7181_v57 = vpop.xlane.xlu0 %2065  ;;  %v9032_v8 = vld [vmem:[#allocation46_spill] sm:$0xff]  ;;  %v2792_v49 = vmul.f32 1.442695, %v2393_v56  ;;  %v9033_v32 = vld [vmem:[#allocation143_spill] sm:$0xff]  ;;  %v9036_v19 = vld [vmem:[#allocation153_spill] sm:$0xff] }
 0x34a   :  { %v7177_v23 = vpop.eup %4636  ;;  %4662 = vpow2.f32 %v2794_v38  ;;  %3796 = vmatprep.subr.mxu0 %v3551_v21  ;;  %v3617_v61 = vmul.f32 %v4631_v34, %v9032_v8  ;;  %v2391_v17 = vsub.f32 %v9033_v32, %v7059_v3  ;;  %v9034_v28 = vld [vmem:[#allocation39_spill] sm:$0xff]  ;;  %v9035_v38 = vmax.f32 %v8992_v26, %v8991_v42 }
 0x34b   :  { %v4639_v6 = vpop.eup %4638  ;;  %4664 = vpow2.f32 %v2796_v29  ;;  %v3550_v46 = vmul.f32 %v4627_v52, %v9034_v28  ;;  %3870 = vmatpush1.xpose.msra.mxu1 %v3618_v53  ;;  %v2922_v21 = vmul.f32 1.442695, %v2458_v62  ;;  %v2456_v43 = vsub.f32 %v9036_v19, %v7071_v45  ;;  %v9037_v29 = vld [vmem:[#allocation37_spill] sm:$0xff]  ;;  %v9038_v53 = vld [vmem:[#allocation155_spill] sm:$0xff] }
 0x34c   :  { %2218 = vmax.xlane.f32.xlu1 %v9035_v38  ;;  %v7190_v55 = vpop.eup %4640  ;;  %4666 = vpow2.f32 %v2926_v1  ;;  %3871 = vmatprep.subr.mxu1 %v3617_v61  ;;  %v3549_v56 = vmul.f32 %v4635_v10, %v9037_v29  ;;  %v7195_v27 = vpop.xlane.xlu1 %2164  ;;  %v2924_v52 = vmul.f32 1.442695, %v2459_v4  ;;  %v2457_v8 = vsub.f32 %v9038_v53, %v7071_v45  ;;  %v9040_v1 = vld [vmem:[#allocation44_spill] sm:$0xff]  ;;  %v170_v45 = vld [vmem:[#allocation7 + $0x28] sm:$0xff] }
 0x34d   :  { %v4643_v3 = vpop.eup %4642  ;;  %4668 = vpow2.f32 %v2928_v47  ;;  %3797 = vmatpush1.xpose.msra.mxu0 %v3550_v46  ;;  %v9039_v32 = vmax.f32 %v8990_v20, %v8989_v16  ;;  %v3616_v62 = vmul.f32 %v4631_v34, %v9040_v1  ;;  %v2786_v61 = vmul.f32 1.442695, %v2390_v54  ;;  %v9041_v38 = vld [vmem:[#allocation132_spill] sm:$0xff]  ;;  %v7207_v47 = vpop.xlane.xlu0 %3094  ;;  %v9044_v34 = vld [vmem:[#allocation35_spill] sm:$0xff]  ;;  %3927 = vmatprep.mubr.f32.mxu1 %v170_v45 }
 0x34e   :  { %v7203_v28 = vpop.eup %4644  ;;  %4670 = vpow2.f32 %v2790_v0  ;;  %v2388_v19 = vsub.f32 %v9041_v38, %v7087_v48  ;;  %3798 = vmatprep.subr.mxu0 %v3549_v56  ;;  %v9042_v4 = vld [vmem:[#allocation40_spill] sm:$0xff]  ;;  %v2788_v53 = vmul.f32 1.442695, %v2391_v17  ;;  %v3548_v1 = vmul.f32 %v4635_v10, %v9044_v34  ;;  %v9047_v10 = vld [vmem:[#allocation151_spill] sm:$0xff] }
 0x34f   :  { %2119 = vmax.xlane.f32.xlu0 %v9039_v32  ;;  %v3615_v29 = vmul.f32 %v4639_v6, %v9042_v4  ;;  %v4647_v46 = vpop.eup %4646  ;;  %4672 = vpow2.f32 %v2792_v49  ;;  %v9043_v32 = vld [vmem:[#allocation135_spill] sm:$0xff]  ;;  %3872 = vmatpush1.xpose.msra.mxu1 %v3616_v62  ;;  %v2918_v54 = vmul.f32 1.442695, %v2456_v43  ;;  %v9045_v56 = vld [vmem:[#allocation148_spill] sm:$0xff]  ;;  %v9046_v4 = vld [vmem:[#allocation130_spill] sm:$0xff] }
 0x350   :  { %v2389_v2 = vsub.f32 %v9043_v32, %v7087_v48  ;;  %3340 = vadd.xlane.f32.xlu1 %v7118_v15  ;;  %v7214_v0 = vpop.eup %4648  ;;  %4674 = vpow2.f32 %v2922_v21  ;;  %v2454_v38 = vsub.f32 %v9045_v56, %v7104_v18  ;;  %v3547_v12 = vmul.f32 %v4643_v3, %v9046_v4  ;;  %v7219_v49 = vpop.xlane.xlu1 %2161  ;;  %v9048_v21 = vld [vmem:[#allocation145_spill] sm:$0xff]  ;;  %v9050_v56 = vld [vmem:[#allocation36_spill] sm:$0xff] }
 0x351   :  { %3873 = vmatprep.subr.mxu1 %v3615_v29  ;;  %v7221_v17 = vpop.eup %4650  ;;  %4676 = vpow2.f32 %v2924_v52  ;;  %v2920_v48 = vmul.f32 1.442695, %v2457_v8  ;;  %v2455_v15 = vsub.f32 %v9047_v10, %v7104_v18  ;;  %3799 = vmatpush1.xpose.msra.mxu0 %v3548_v1  ;;  %v3614_v43 = vmul.f32 %v4639_v6, %v9048_v21  ;;  %v9049_v32 = vld [vmem:[#allocation125_spill] sm:$0xff]  ;;  %v7229_v45 = vpop.xlane.xlu0 %3097  ;;  %v9052_v1 = vld [vmem:[#allocation128_spill] sm:$0xff] }
 0x352   :  { %v4653_v62 = vpop.eup %4652  ;;  %4678 = vpow2.f32 %v2786_v61  ;;  %v2782_v29 = vmul.f32 1.442695, %v2388_v19  ;;  %v2386_v34 = vsub.f32 %v9049_v32, %v7129_v59  ;;  %3800 = vmatprep.subr.mxu0 %v3547_v12  ;;  %v3613_v52 = vmul.f32 %v4647_v46, %v9050_v56  ;;  %v9053_v4 = vld [vmem:[#allocation33_spill] sm:$0xff]  ;;  %v9056_v10 = vld [vmem:[#allocation140_spill] sm:$0xff] }
 0x353   :  { %3241 = vadd.xlane.f32.xlu0 %v7092_v40  ;;  %v7232_v8 = vpop.eup %4654  ;;  %4680 = vpow2.f32 %v2788_v53  ;;  %v2784_v18 = vmul.f32 1.442695, %v2389_v2  ;;  %v2387_v40 = vsub.f32 %v9052_v1, %v7129_v59  ;;  %v3546_v6 = vmul.f32 %v4643_v3, %v9053_v4  ;;  %3874 = vmatpush1.xpose.msra.mxu1 %v3614_v43  ;;  %v9057_v2 = vld [vmem:[#allocation27_spill] sm:$0xff]  ;;  %v9058_v43 = vld [vmem:[#allocation144_spill] sm:$0xff] }
 0x354   :  { %9051 = vst [vmem:[#allocation201_spill] sm:$0xff] %v7232_v8  ;;  %v9054_v61 = vmax.f32 %v8986_v30, %v8985_v25  ;;  %v7240_v19 = vpop.eup %4656  ;;  %4682 = vpow2.f32 %v2918_v54  ;;  %v2914_v12 = vmul.f32 1.442695, %v2454_v38  ;;  %v2452_v21 = vsub.f32 %v9056_v10, %v7142_v31  ;;  %3875 = vmatprep.subr.mxu1 %v3613_v52  ;;  %v7244_v53 = vpop.xlane.xlu1 %3190  ;;  %v9060_v38 = vld [vmem:[#allocation34_spill] sm:$0xff] }
 0x355   :  { %9055 = vst [vmem:[#allocation195_spill] sm:$0xff] %v7240_v19  ;;  %v3544_v59 = vmul.f32 %v7124_v37, %v9057_v2  ;;  %v7248_v32 = vpop.eup %4658  ;;  %4684 = vpow2.f32 %v2920_v48  ;;  %v2916_v3 = vmul.f32 1.442695, %v2455_v15  ;;  %v2453_v56 = vsub.f32 %v9058_v43, %v7142_v31  ;;  %3801 = vmatpush1.xpose.msra.mxu0 %v3546_v6  ;;  %v9061_v37 = vld [vmem:[#allocation121_spill] sm:$0xff]  ;;  %v7261_v48 = vpop.xlane.xlu0 %3100  ;;  %v9062_v15 = vld [vmem:[#allocation32_spill] sm:$0xff]  ;;  %v9064_v2 = vld [vmem:[#allocation123_spill] sm:$0xff] }
 0x356   :  { %2215 = vmax.xlane.f32.xlu1 %v9054_v61  ;;  %v9059_v54 = vmax.f32 %v8988_v50, %v8987_v36  ;;  %v3612_v1 = vmul.f32 %v4647_v46, %v9060_v38  ;;  %v7256_v52 = vpop.eup %4660  ;;  %4686 = vpow2.f32 %v2782_v29  ;;  %v2778_v4 = vmul.f32 1.442695, %v2386_v34  ;;  %3802 = vmatprep.subr.mxu0 %v7152_v33  ;;  %v9066_v43 = vld [vmem:[#allocation133_spill] sm:$0xff] }
 0x357   :  { %v2384_v61 = vsub.f32 %v9061_v37, %v7158_v5  ;;  %v3611_v31 = vmul.f32 %v4653_v62, %v9062_v15  ;;  %v7264_v6 = vpop.eup %4662  ;;  %4688 = vpow2.f32 %v2784_v18  ;;  %v2780_v10 = vmul.f32 1.442695, %v2387_v40  ;;  %v9067_v38 = vld [vmem:[#allocation193_spill] sm:$0xff] }
 0x358   :  { %2116 = vmax.xlane.f32.xlu0 %v9059_v54  ;;  %9063 = vst [vmem:[#allocation38_spill] sm:$0xff] %v7264_v6  ;;  %v2385_v46 = vsub.f32 %v9064_v2, %v7158_v5  ;;  %3876 = vmatpush1.xpose.msra.mxu1 %v3612_v1  ;;  %v3237_v29 = vadd.f32 %v7240_v19, %v7232_v8  ;;  %v7271_v34 = vpop.eup %4664  ;;  %4690 = vpow2.f32 %v2914_v12  ;;  %v2910_v33 = vmul.f32 1.442695, %v2452_v21  ;;  %v7277_v40 = vpop.xlane.xlu1 %3193  ;;  %v9069_v1 = vld [vmem:[#allocation136_spill] sm:$0xff]  ;;  %v9070_v12 = vld [vmem:[#allocation30_spill] sm:$0xff]  ;;  %v9073_v8 = vld [vmem:[#allocation137_spill] sm:$0xff] }
 0x359   :  { %9065 = vst [vmem:[#allocation142_spill] sm:$0xff] %v7271_v34  ;;  %v2450_v54 = vsub.f32 %v9066_v43, %v7170_v63  ;;  %v3543_v18 = vmul.f32 %v7203_v28, %v9067_v38  ;;  %3877 = vmatprep.subr.mxu1 %v3611_v31  ;;  %v7279_v5 = vpop.eup %4666  ;;  %4692 = vpow2.f32 %v2916_v3  ;;  %v2451_v37 = vsub.f32 %v9069_v1, %v7170_v63  ;;  %v9072_v43 = vld [vmem:[#allocation117_spill] sm:$0xff]  ;;  %v7288_v38 = vpop.xlane.xlu0 %3103 }
 0x35a   :  { %3337 = vadd.xlane.f32.xlu1 %v7112_v24  ;;  %9068 = vst [vmem:[#allocation65_spill] sm:$0xff] %v7279_v5  ;;  %v2912_v24 = vmul.f32 1.442695, %v2453_v56  ;;  %3803 = vmatpush1.xpose.msra.mxu0 %v3544_v59  ;;  %v3610_v21 = vmul.f32 %v4653_v62, %v9070_v12  ;;  %v7284_v15 = vpop.eup %4668  ;;  %4694 = vpow2.f32 %v2778_v4  ;;  %v2774_v2 = vmul.f32 1.442695, %v2384_v61  ;;  %v9075_v59 = vld [vmem:[#allocation119_spill] sm:$0xff] }
 0x35b   :  { %9071 = vst [vmem:[#allocation213_spill] sm:$0xff] %v7284_v15  ;;  %v2382_v31 = vsub.f32 %v9072_v43, %v7181_v57  ;;  %3804 = vmatprep.subr.mxu0 %v3543_v18  ;;  %v3609_v3 = vmul.f32 %v7221_v17, %v9073_v8  ;;  %v7292_v56 = vpop.eup %4670  ;;  %4696 = vpow2.f32 %v2780_v10  ;;  %v2776_v63 = vmul.f32 1.442695, %v2385_v46  ;;  %v9079_v8 = vld [vmem:[#allocation126_spill] sm:$0xff] }
 0x35c   :  { %3238 = vadd.xlane.f32.xlu0 %v3237_v29  ;;  %9074 = vst [vmem:[#allocation207_spill] sm:$0xff] %v7292_v56  ;;  %v2383_v62 = vsub.f32 %v9075_v59, %v7181_v57  ;;  %v9076_v29 = vld [vmem:[#allocation192_spill] sm:$0xff]  ;;  %3878 = vmatpush1.xpose.msra.mxu1 %v3610_v21  ;;  %v9077_v61 = vmax.f32 %v8979_v41, %v8978_v11  ;;  %v7301_v18 = vpop.eup %4672  ;;  %4698 = vpow2.f32 %v2910_v33  ;;  %v2906_v1 = vmul.f32 1.442695, %v2450_v54  ;;  %v7305_v10 = vpop.xlane.xlu1 %3196  ;;  %v9080_v46 = vld [vmem:[#allocation26_spill] sm:$0xff]  ;;  %v9082_v21 = vld [vmem:[#allocation129_spill] sm:$0xff] }
 0x35d   :  { %v3542_v4 = vmul.f32 %v7203_v28, %v9076_v29  ;;  %9078 = vst [vmem:[#allocation19_spill] sm:$0xff] %v7301_v18  ;;  %v2448_v12 = vsub.f32 %v9079_v8, %v7195_v27  ;;  %3879 = vmatprep.subr.mxu1 %v3609_v3  ;;  %v3608_v57 = vmul.f32 %v7221_v17, %v9080_v46  ;;  %v7309_v43 = vpop.eup %4674  ;;  %4700 = vpow2.f32 %v2912_v24  ;;  %v7321_v17 = vpop.xlane.xlu0 %3106  ;;  %v9085_v24 = vld [vmem:[#allocation22_spill] sm:$0xff]  ;;  %v9089_v46 = vld [vmem:[#allocation176_spill] sm:$0xff] }
 0x35e   :  { %2212 = vmax.xlane.f32.xlu1 %v9077_v61  ;;  %9081 = vst [vmem:[#allocation42_spill] sm:$0xff] %v7309_v43  ;;  %v2908_v28 = vmul.f32 1.442695, %v2451_v37  ;;  %v2449_v59 = vsub.f32 %v9082_v21, %v7195_v27  ;;  %v9083_v33 = vmax.f32 %v8981_v7, %v8980_v9  ;;  %v3333_v54 = vadd.f32 %v7284_v15, %v7279_v5  ;;  %v7318_v3 = vpop.eup %4676  ;;  %v9087_v61 = vld [vmem:[#allocation184_spill] sm:$0xff] }
 0x35f   :  { %3805 = vmatpush1.xpose.msra.mxu0 %v3542_v4  ;;  %9084 = vst [vmem:[#allocation204_spill] sm:$0xff] %v7318_v3  ;;  %4702 = vpow2.f32 %v2774_v2  ;;  %v2770_v29 = vmul.f32 1.442695, %v2382_v31  ;;  %v3607_v37 = vmul.f32 %v7214_v0, %v9085_v24  ;;  %v7325_v27 = vpop.eup %4678  ;;  %v2772_v4 = vmul.f32 1.442695, %v2383_v62  ;;  %v9091_v62 = vld [vmem:[#allocation149_spill] sm:$0xff] }
 0x360   :  { %2113 = vmax.xlane.f32.xlu0 %v9083_v33  ;;  %3806 = vmatprep.subr.mxu0 %v7122_v39  ;;  %9086 = vst [vmem:[#allocation198_spill] sm:$0xff] %v7325_v27  ;;  %4704 = vpow2.f32 %v2776_v63  ;;  %v3540_v8 = vmul.f32 %v7067_v14, %v9087_v61  ;;  %v3234_v2 = vadd.f32 %v7271_v34, %v7264_v6  ;;  %v7331_v31 = vpop.eup %4680  ;;  %v2902_v39 = vmul.f32 1.442695, %v2448_v12  ;;  %v7335_v33 = vpop.xlane.xlu1 %3199  ;;  %v9092_v24 = vld [vmem:[#allocation45_spill] sm:$0xff]  ;;  %v9095_v12 = vld [vmem:[#allocation122_spill] sm:$0xff] }
 0x361   :  { %3880 = vmatpush1.xpose.msra.mxu1 %v3608_v57  ;;  %9088 = vst [vmem:[#allocation221_spill] sm:$0xff] %v7331_v31  ;;  %4706 = vpow2.f32 %v2906_v1  ;;  %v3539_v21 = vmul.f32 %v7164_v60, %v9089_v46  ;;  %v7337_v63 = vpop.eup %4682  ;;  %v2208_v14 = vmax.f32 %v9092_v24, %v9091_v62  ;;  %v2904_v57 = vmul.f32 1.442695, %v2449_v59  ;;  %v3110_v46 = vpop.xlane.xlu0 %3109  ;;  %v9096_v6 = vld [vmem:[#allocation190_spill] sm:$0xff]  ;;  %v9099_v59 = vld [vmem:[#allocation31_spill] sm:$0xff] }
 0x362   :  { %3334 = vadd.xlane.f32.xlu1 %v3333_v54  ;;  %3881 = vmatprep.subr.mxu1 %v3607_v37  ;;  %9090 = vst [vmem:[#allocation217_spill] sm:$0xff] %v7337_v63  ;;  %4708 = vpow2.f32 %v2908_v28  ;;  %v9093_v54 = vld [vmem:[#allocation25_spill] sm:$0xff]  ;;  %v7343_v1 = vpop.eup %4684  ;;  %v2446_v37 = vsub.f32 %v9095_v12, %v7219_v49  ;;  %v3605_v34 = vmul.f32 %v7190_v55, %v9096_v6 }
 0x363   :  { %3807 = vmatpush1.xpose.msra.mxu0 %v3540_v8  ;;  %v3606_v61 = vmul.f32 %v7214_v0, %v9093_v54  ;;  %9094 = vst [vmem:[#allocation248_spill] sm:$0xff] %v7343_v1  ;;  %4710 = vpow2.f32 %v2770_v29  ;;  %v7349_v5 = vpop.eup %4686  ;;  %v9098_v28 = vld [vmem:[#allocation141_spill] sm:$0xff]  ;;  %v9101_v54 = vld [vmem:[#allocation175_spill] sm:$0xff] }
 0x364   :  { %3235 = vadd.xlane.f32.xlu0 %v3234_v2  ;;  %3808 = vmatprep.subr.mxu0 %v3539_v21  ;;  %9097 = vst [vmem:[#allocation199_spill] sm:$0xff] %v7349_v5  ;;  %v2109_v8 = vmax.f32 %v9099_v59, %v9098_v28  ;;  %4712 = vpow2.f32 %v2772_v4  ;;  %v9100_v2 = vld [vmem:[#allocation124_spill] sm:$0xff]  ;;  %v3538_v29 = vmul.f32 %v7164_v60, %v9101_v54  ;;  %v7357_v12 = vpop.eup %4688  ;;  %v9103_v21 = vld [vmem:[#allocation171_spill] sm:$0xff]  ;;  %v7361_v15 = vpop.xlane.xlu1 %3202 }
 0x365   :  { %v2447_v0 = vsub.f32 %v9100_v2, %v7219_v49  ;;  %3882 = vmatpush1.xpose.msra.mxu1 %v3606_v61  ;;  %9102 = vst [vmem:[#allocation194_spill] sm:$0xff] %v7357_v12  ;;  %4714 = vpow2.f32 %v2902_v39  ;;  %v3537_v6 = vmul.f32 %v7136_v51, %v9103_v21  ;;  %v7363_v19 = vpop.eup %4690  ;;  %v9105_v49 = vld [vmem:[#allocation189_spill] sm:$0xff]  ;;  %v3330_v60 = vadd.f32 %v7318_v3, %v7309_v43  ;;  %v3113_v39 = vpop.xlane.xlu0 %3112  ;;  %v9106_v61 = vld [vmem:[#allocation182_spill] sm:$0xff] }
 0x366   :  { %2209 = vmax.xlane.f32.xlu1 %v2208_v14  ;;  %3883 = vmatprep.subr.mxu1 %v3605_v34  ;;  %9104 = vst [vmem:[#allocation215_spill] sm:$0xff] %v7363_v19  ;;  %4716 = vpow2.f32 %v2904_v57  ;;  %v3604_v4 = vmul.f32 %v7190_v55, %v9105_v49  ;;  %v7369_v14 = vpop.eup %4692  ;;  %v2898_v34 = vmul.f32 1.442695, %v2446_v37  ;;  %v3603_v2 = vmul.f32 %v7177_v23, %v9106_v61 }
 0x367   :  { %3809 = vmatpush1.xpose.msra.mxu0 %v3538_v29  ;;  %4718 = vrcp.f32 %v7207_v47  ;;  %v7374_v54 = vpop.eup %4694  ;;  %v2900_v57 = vmul.f32 1.442695, %v2447_v0  ;;  %v3231_v29 = vadd.f32 %v7301_v18, %v7292_v56  ;;  %v9109_v47 = vld [vmem:[#allocation164_spill] sm:$0xff]  ;;  %v9110_v0 = vld [vmem:[#allocation138_spill] sm:$0xff]  ;;  %v9115_v56 = vld [vmem:[#allocation127_spill] sm:$0xff] }
 0x368   :  { %2110 = vmax.xlane.f32.xlu0 %v2109_v8  ;;  %3810 = vmatprep.subr.mxu0 %v3537_v6  ;;  %9107 = vst [vmem:[#allocation214_spill] sm:$0xff] %v7374_v54  ;;  %4720 = vrcp.f32 %v3113_v39  ;;  %v9108_v8 = vld [vmem:[#allocation170_spill] sm:$0xff]  ;;  %v7380_v21 = vpop.eup %4696  ;;  %v3535_v37 = vmul.f32 %v6931_v58, %v9109_v47  ;;  %v3206_v6 = vpop.xlane.xlu1 %3205  ;;  %v9116_v18 = vld [vmem:[#allocation131_spill] sm:$0xff] }
 0x369   :  { %v3536_v55 = vmul.f32 %v7136_v51, %v9108_v8  ;;  %3884 = vmatpush1.xpose.msra.mxu1 %v3604_v4  ;;  %4722 = vrcp.f32 %v3110_v46  ;;  %v7384_v49 = vpop.eup %4698  ;;  %v9111_v39 = vld [vmem:[#allocation134_spill] sm:$0xff]  ;;  %v9112_v51 = vld [vmem:[#allocation181_spill] sm:$0xff]  ;;  %v7393_v46 = vpop.xlane.xlu0 %3091  ;;  %v2106_v43 = vmax.f32 %v9116_v18, %v9115_v56 }
 0x36a   :  { %3331 = vadd.xlane.f32.xlu1 %v3330_v60  ;;  %3885 = vmatprep.subr.mxu1 %v3603_v2  ;;  %v2205_v61 = vmax.f32 %v9111_v39, %v9110_v0  ;;  %4724 = vrcp.f32 %v7229_v45  ;;  %v3602_v4 = vmul.f32 %v7177_v23, %v9112_v51  ;;  %v7391_v60 = vpop.eup %4700  ;;  %v9113_v2 = vld [vmem:[#allocation173_spill] sm:$0xff]  ;;  %v9117_v45 = vld [vmem:[#allocation163_spill] sm:$0xff] }
 0x36b   :  { %3811 = vmatpush1.xpose.msra.mxu0 %v3536_v55  ;;  %4726 = vpow2.f32 %v2898_v34  ;;  %v3601_v8 = vmul.f32 %v7154_v22, %v9113_v2  ;;  %v3534_v55 = vmul.f32 %v6931_v58, %v9117_v45  ;;  %v9119_v34 = vld [vmem:[#allocation161_spill] sm:$0xff]  ;;  %v3327_v58 = vadd.f32 %v7343_v1, %v7337_v63  ;;  %v9129_v63 = vld [vmem:[#allocation28_spill] sm:$0xff] }
 0x36c   :  { %3232 = vadd.xlane.f32.xlu0 %v3231_v29  ;;  %3812 = vmatprep.subr.mxu0 %v3535_v37  ;;  %v7397_v47 = vpop.eup %4702  ;;  %4728 = vpow2.f32 %v2900_v57  ;;  %v9120_v29 = vld [vmem:[#allocation180_spill] sm:$0xff]  ;;  %v3209_v51 = vpop.xlane.xlu1 %3208  ;;  %v9125_v45 = vld [vmem:[#allocation169_spill] sm:$0xff] }
 0x36d   :  { %9114 = vst [vmem:[#allocation85_spill] sm:$0xff] %v7397_v47  ;;  %3886 = vmatpush1.xpose.msra.mxu1 %v3602_v4  ;;  %v7403_v23 = vpop.eup %4704  ;;  %4730 = vrcp.f32 %v7321_v17  ;;  %v3533_v37 = vmul.f32 %v9120_v29, %v9119_v34  ;;  %v9122_v57 = vld [vmem:[#allocation172_spill] sm:$0xff]  ;;  %v2063_v17 = vpop.xlane.xlu0 %2062  ;;  %v9126_v34 = vld [vmem:[#allocation23_spill] sm:$0xff] }
 0x36e   :  { %2206 = vmax.xlane.f32.xlu1 %v2205_v61  ;;  %9118 = vst [vmem:[#allocation223_spill] sm:$0xff] %v7403_v23  ;;  %3887 = vmatprep.subr.mxu1 %v3601_v8  ;;  %v7408_v2 = vpop.eup %4706  ;;  %4732 = vrcp.f32 %v3209_v51  ;;  %v3600_v3 = vmul.f32 %v7154_v22, %v9122_v57  ;;  %v9124_v4 = vld [vmem:[#allocation160_spill] sm:$0xff]  ;;  %v3599_v56 = vmul.f32 %v9126_v34, %v9125_v45  ;;  %v9128_v51 = vld [vmem:[#allocation115_spill] sm:$0xff] }
 0x36f   :  { %9121 = vst [vmem:[#allocation210_spill] sm:$0xff] %v7408_v2  ;;  %3813 = vmatpush1.xpose.msra.mxu0 %v3534_v55  ;;  %v7414_v61 = vpop.eup %4708  ;;  %4734 = vrcp.f32 %v3206_v6  ;;  %v3532_v8 = vmul.f32 %v9120_v29, %v9124_v4  ;;  %v2381_v57 = vsub.f32 %v9128_v51, %v2063_v17  ;;  %v3228_v6 = vadd.f32 %v7331_v31, %v7325_v27  ;;  %v9130_v29 = vld [vmem:[#allocation24_spill] sm:$0xff] }
 0x370   :  { %2107 = vmax.xlane.f32.xlu0 %v2106_v43  ;;  %9123 = vst [vmem:[#allocation251_spill] sm:$0xff] %v7414_v61  ;;  %3814 = vmatprep.subr.mxu0 %v3533_v37  ;;  %v7420_v55 = vpop.eup %4710  ;;  %4736 = vrcp.f32 %v7244_v53  ;;  %v9127_v43 = vld [vmem:[#allocation113_spill] sm:$0xff]  ;;  %v2202_v4 = vmax.f32 %v9130_v29, %v9129_v63  ;;  %v9131_v45 = vld [vmem:[#allocation212_spill] sm:$0xff]  ;;  %v7434_v1 = vpop.xlane.xlu1 %3187 }
 0x371   :  { %v2380_v22 = vsub.f32 %v9127_v43, %v2063_v17  ;;  %3888 = vmatpush1.xpose.msra.mxu1 %v3600_v3  ;;  %v7427_v37 = vpop.eup %4712  ;;  %4738 = vrcp.f32 %v7288_v38  ;;  %v3531_v53 = vmul.f32 %v7248_v32, %v9131_v45  ;;  %v9132_v17 = vld [vmem:[#allocation168_spill] sm:$0xff]  ;;  %v7444_v38 = vpop.xlane.xlu0 %3088  ;;  %v9134_v45 = vld [vmem:[#allocation191_spill] sm:$0xff] }
 0x372   :  { %3328 = vadd.xlane.f32.xlu1 %v3327_v58  ;;  %3889 = vmatprep.subr.mxu1 %v3599_v56  ;;  %v7436_v43 = vpop.eup %4714  ;;  %4740 = vrcp.f32 %v7261_v48  ;;  %v2768_v58 = vmul.f32 1.442695, %v2381_v57  ;;  %v3598_v51 = vmul.f32 %v9126_v34, %v9132_v17  ;;  %v9133_v56 = vld [vmem:[#allocation167_spill] sm:$0xff]  ;;  %v3225_v34 = vadd.f32 %v7357_v12, %v7349_v5  ;;  %v9136_v57 = vld [vmem:[#allocation166_spill] sm:$0xff] }
 0x373   :  { %v2766_v3 = vmul.f32 1.442695, %v2380_v22  ;;  %3815 = vmatpush1.xpose.msra.mxu0 %v3532_v8  ;;  %v7441_v27 = vpop.eup %4716  ;;  %4742 = vrcp.f32 %v7361_v15  ;;  %v3597_v31 = vmul.f32 %v9134_v45, %v9133_v56  ;;  %v9135_v48 = vld [vmem:[#allocation211_spill] sm:$0xff] }
 0x374   :  { %3229 = vadd.xlane.f32.xlu0 %v3228_v6  ;;  %3816 = vmatprep.subr.mxu0 %v3531_v53  ;;  %v7448_v63 = vpop.eup %4718  ;;  %v3530_v8 = vmul.f32 %v7248_v32, %v9135_v48  ;;  %v2159_v15 = vpop.xlane.xlu1 %2158  ;;  %v3596_v6 = vmul.f32 %v9134_v45, %v9136_v57  ;;  %v9137_v53 = vld [vmem:[#allocation219_spill] sm:$0xff]  ;;  %v9138_v32 = vld [vmem:[#allocation118_spill] sm:$0xff]  ;;  %v9140_v48 = vld [vmem:[#allocation73_spill] sm:$0xff] }
 0x375   :  { %4744 = vpow2.f32 %v2766_v3  ;;  %3890 = vmatpush1.xpose.msra.mxu1 %v3598_v51  ;;  %v4721_v22 = vpop.eup %4720  ;;  %v3595_v17 = vmul.f32 %v7256_v52, %v9137_v53  ;;  %v9139_v3 = vld [vmem:[#allocation120_spill] sm:$0xff]  ;;  %v9141_v45 = vld [vmem:[#allocation231_spill] sm:$0xff]  ;;  %v3324_v53 = vadd.f32 %v7369_v14, %v7363_v19 }
 0x376   :  { %2203 = vmax.xlane.f32.xlu1 %v2202_v4  ;;  %4746 = vpow2.f32 %v2768_v58  ;;  %3891 = vmatprep.subr.mxu1 %v3597_v31  ;;  %v4723_v56 = vpop.eup %4722  ;;  %v2444_v4 = vsub.f32 %v9138_v32, %v2159_v15  ;;  %v2445_v51 = vsub.f32 %v9139_v3, %v2159_v15  ;;  %v3593_v5 = vmul.f32 %v4721_v22, %v9140_v48  ;;  %v2060_v31 = vpop.xlane.xlu0 %2059  ;;  %v9143_v15 = vld [vmem:[#allocation111_spill] sm:$0xff]  ;;  %v9144_v48 = vld [vmem:[#allocation112_spill] sm:$0xff] }
 0x377   :  { %4748 = vrcp.f32 %v7277_v40  ;;  %3817 = vmatpush1.xpose.msra.mxu0 %v3530_v8  ;;  %v7462_v58 = vpop.eup %4724  ;;  %v3592_v57 = vmul.f32 %v4721_v22, %v9141_v45  ;;  %v3222_v40 = vadd.f32 %v7380_v21, %v7374_v54  ;;  %v2378_v3 = vsub.f32 %v9143_v15, %v2060_v31  ;;  %v9145_v22 = vld [vmem:[#allocation229_spill] sm:$0xff]  ;;  %v9146_v15 = vld [vmem:[#allocation218_spill] sm:$0xff] }
 0x378   :  { %3226 = vadd.xlane.f32.xlu0 %v3225_v34  ;;  %4750 = vrcp.f32 %v7335_v33  ;;  %v7470_v8 = vpop.eup %4726  ;;  %v2894_v34 = vmul.f32 1.442695, %v2444_v4  ;;  %v2896_v32 = vmul.f32 1.442695, %v2445_v51  ;;  %v2379_v12 = vsub.f32 %v9144_v48, %v2060_v31  ;;  %3818 = vmatprep.subr.mxu0 %v3593_v5  ;;  %v7478_v19 = vpop.xlane.xlu1 %3184 }
 0x379   :  { %9142 = vst [vmem:[#allocation156_spill] sm:$0xff] %v7470_v8  ;;  %3892 = vmatpush1.xpose.msra.mxu1 %v3596_v6  ;;  %v7474_v33 = vpop.eup %4728  ;;  %4752 = vrcp.f32 %v7305_v10  ;;  %v3591_v45 = vmul.f32 %v4723_v56, %v9145_v22  ;;  %v2762_v4 = vmul.f32 1.442695, %v2378_v3  ;;  %v3594_v5 = vmul.f32 %v7256_v52, %v9146_v15  ;;  %v9149_v3 = vld [vmem:[#allocation238_spill] sm:$0xff] }
 0x37a   :  { %3893 = vmatprep.subr.mxu1 %v3595_v17  ;;  %3325 = vadd.xlane.f32.xlu1 %v3324_v53  ;;  %v4731_v54 = vpop.eup %4730  ;;  %4754 = vpow2.f32 %v2894_v34  ;;  %v2764_v51 = vmul.f32 1.442695, %v2379_v12  ;;  %v7482_v31 = vpop.xlane.xlu0 %3085  ;;  %v3321_v10 = vadd.f32 %v7391_v60, %v7384_v49  ;;  %v3219_v17 = vadd.f32 %v7403_v23, %v7397_v47  ;;  %v9147_v34 = vld [vmem:[#allocation228_spill] sm:$0xff]  ;;  %v9156_v23 = vld [vmem:[#allocation61_spill] sm:$0xff] }
 0x37b   :  { %3819 = vmatpush2.xpose.msra.mxu0 %v3592_v57  ;;  %v4733_v6 = vpop.eup %4732  ;;  %4756 = vpow2.f32 %v2896_v32  ;;  %v3590_v12 = vmul.f32 %v4723_v56, %v9147_v34  ;;  %v9148_v57 = vld [vmem:[#allocation74_spill] sm:$0xff]  ;;  %v9150_v32 = vld [vmem:[#allocation77_spill] sm:$0xff]  ;;  %v9152_v56 = vld [vmem:[#allocation116_spill] sm:$0xff]  ;;  %v3318_v34 = vadd.f32 %v7414_v61, %v7408_v2 }
 0x37c   :  { %3223 = vadd.xlane.f32.xlu0 %v3222_v40  ;;  %3820 = vmatprep.subr.mxu0 %v3591_v45  ;;  %v4735_v53 = vpop.eup %4734  ;;  %4758 = vpow2.f32 %v2762_v4  ;;  %v3657_v40 = vmul.f32 %v4733_v6, %v9148_v57  ;;  %v3656_v52 = vmul.f32 %v4733_v6, %v9149_v3  ;;  %v3589_v22 = vmul.f32 %v4731_v54, %v9150_v32  ;;  %v2156_v45 = vpop.xlane.xlu1 %2155  ;;  %v9151_v4 = vld [vmem:[#allocation114_spill] sm:$0xff] }
 0x37d   :  { %3894 = vmatpush1.xpose.msra.mxu1 %v3594_v5  ;;  %v7491_v48 = vpop.eup %4736  ;;  %4760 = vpow2.f32 %v2764_v51  ;;  %v2442_v47 = vsub.f32 %v9151_v4, %v2156_v45  ;;  %v2443_v5 = vsub.f32 %v9152_v56, %v2156_v45  ;;  %v9154_v3 = vld [vmem:[#allocation234_spill] sm:$0xff]  ;;  %v9155_v45 = vld [vmem:[#allocation64_spill] sm:$0xff] }
 0x37e   :  { %3322 = vadd.xlane.f32.xlu1 %v3321_v10  ;;  %v4739_v15 = vpop.eup %4738  ;;  %4762 = vrcp.f32 %v7393_v46  ;;  %v2153_v51 = vpop.xlane.xlu0 %2152  ;;  %3895 = vmatprep.subr.mxu1 %v3657_v40  ;;  %v9153_v10 = vld [vmem:[#allocation75_spill] sm:$0xff]  ;;  %v3655_v32 = vmul.f32 %v4735_v53, %v9154_v3  ;;  %v3216_v46 = vadd.f32 %v7427_v37, %v7420_v55 }
 0x37f   :  { %3821 = vmatpush2.xpose.msra.mxu0 %v3590_v12  ;;  %v4741_v6 = vpop.eup %4740  ;;  %4764 = vrcp.f32 %v7434_v1  ;;  %v3588_v57 = vmul.f32 %v4731_v54, %v9153_v10  ;;  %v2890_v12 = vmul.f32 1.442695, %v2442_v47  ;;  %v2892_v4 = vmul.f32 1.442695, %v2443_v5  ;;  %v9157_v1 = vld [vmem:[#allocation108_spill] sm:$0xff]  ;;  %v9158_v10 = vld [vmem:[#allocation233_spill] sm:$0xff] }
 0x380   :  { %3220 = vadd.xlane.f32.xlu0 %v3219_v17  ;;  %3822 = vmatprep.subr.mxu0 %v3589_v22  ;;  %v4743_v17 = vpop.eup %4742  ;;  %v2440_v56 = vsub.f32 %v9155_v45, %v2153_v51  ;;  %v2441_v2 = vsub.f32 %v9156_v23, %v2153_v51  ;;  %4766 = vrcp.f32 %v7444_v38  ;;  %v3587_v54 = vmul.f32 %v4739_v15, %v9157_v1  ;;  %v7510_v40 = vpop.xlane.xlu1 %3181  ;;  %v9159_v51 = vld [vmem:[#allocation78_spill] sm:$0xff]  ;;  %v9160_v45 = vld [vmem:[#allocation79_spill] sm:$0xff] }
 0x381   :  { %3896 = vmatpush2.xpose.msra.mxu1 %v3656_v52  ;;  %4768 = vpow2.f32 %v2890_v12  ;;  %v3654_v23 = vmul.f32 %v4735_v53, %v9158_v10  ;;  %v3653_v3 = vmul.f32 %v4743_v17, %v9159_v51  ;;  %v3586_v12 = vmul.f32 %v4739_v15, %v9160_v45  ;;  %v9161_v53 = vld [vmem:[#allocation107_spill] sm:$0xff]  ;;  %v9164_v15 = vld [vmem:[#allocation230_spill] sm:$0xff] }
 0x382   :  { %v7506_v61 = vpop.eup %4744  ;;  %3319 = vadd.xlane.f32.xlu1 %v3318_v34  ;;  %3897 = vmatprep.subr.mxu1 %v3655_v32  ;;  %v2886_v47 = vmul.f32 1.442695, %v2440_v56  ;;  %v2888_v5 = vmul.f32 1.442695, %v2441_v2  ;;  %4770 = vpow2.f32 %v2892_v4  ;;  %v3083_v38 = vpop.xlane.xlu0 %3082  ;;  %v3315_v34 = vadd.f32 %v7441_v27, %v7436_v43  ;;  %v9162_v56 = vld [vmem:[#allocation254_spill] sm:$0xff] }
 0x383   :  { %v7512_v22 = vpop.eup %4746  ;;  %3823 = vmatpush2.xpose.msra.mxu0 %v3588_v57  ;;  %v3585_v57 = vmul.f32 %v4741_v6, %v9161_v53  ;;  %v3652_v10 = vmul.f32 %v4743_v17, %v9164_v15  ;;  %v9169_v17 = vld [vmem:[#allocation63_spill] sm:$0xff] }
 0x384   :  { %3217 = vadd.xlane.f32.xlu0 %v3216_v46  ;;  %v7515_v52 = vpop.eup %4748  ;;  %3824 = vmatprep.subr.mxu0 %v3587_v54  ;;  %4772 = vpow2.f32 %v2886_v47  ;;  %v3213_v2 = vadd.f32 %v7512_v22, %v7506_v61  ;;  %v2249_v46 = vpop.xlane.xlu1 %2248  ;;  %v9163_v54 = vld [vmem:[#allocation60_spill] sm:$0xff] }
 0x385   :  { %v4751_v32 = vpop.eup %4750  ;;  %3898 = vmatpush2.xpose.msra.mxu1 %v3654_v23  ;;  %4774 = vpow2.f32 %v2888_v5  ;;  %v2504_v1 = vsub.f32 %v9162_v56, %v2249_v46  ;;  %v2505_v47 = vsub.f32 %v9163_v54, %v2249_v46  ;;  %v9168_v46 = vld [vmem:[#allocation68_spill] sm:$0xff] }
 0x386   :  { %3316 = vadd.xlane.f32.xlu1 %v3315_v34  ;;  %3899 = vmatprep.subr.mxu1 %v3653_v3  ;;  %v4753_v4 = vpop.eup %4752  ;;  %4776 = vrcp.f32 %v7478_v19  ;;  %v2150_v5 = vpop.xlane.xlu0 %2149  ;;  %v9166_v34 = vld [vmem:[#allocation100_spill] sm:$0xff]  ;;  %v3312_v3 = vadd.f32 %v7474_v33, %v7470_v8  ;;  %v9167_v19 = vld [vmem:[#allocation227_spill] sm:$0xff] }
 0x387   :  { %3825 = vmatpush2.xpose.msra.mxu0 %v3586_v12  ;;  %v7528_v23 = vpop.eup %4754  ;;  %4778 = vrcp.f32 %v7482_v31  ;;  %v3584_v51 = vmul.f32 %v4741_v6, %v9166_v34  ;;  %v3651_v45 = vmul.f32 %v4751_v32, %v9167_v19  ;;  %v3016_v53 = vmul.f32 1.442695, %v2505_v47  ;;  %v9170_v31 = vld [vmem:[#allocation96_spill] sm:$0xff]  ;;  %v9171_v47 = vld [vmem:[#allocation225_spill] sm:$0xff] }
 0x388   :  { %3214 = vadd.xlane.f32.xlu0 %v3213_v2  ;;  %9165 = vst [vmem:[#allocation209_spill] sm:$0xff] %v7528_v23  ;;  %3826 = vmatprep.subr.mxu0 %v3585_v57  ;;  %v7535_v12 = vpop.eup %4756  ;;  %v3014_v2 = vmul.f32 1.442695, %v2504_v1  ;;  %v2438_v56 = vsub.f32 %v9168_v46, %v2150_v5  ;;  %v2439_v54 = vsub.f32 %v9169_v17, %v2150_v5  ;;  %4780 = vrcp.f32 %v3083_v38  ;;  %v3179_v57 = vpop.xlane.xlu1 %3178  ;;  %v9172_v5 = vld [vmem:[#allocation82_spill] sm:$0xff] }
 0x389   :  { %3900 = vmatpush2.xpose.msra.mxu1 %v3652_v10  ;;  %v7539_v15 = vpop.eup %4758  ;;  %v3583_v6 = vmul.f32 %v7462_v58, %v9170_v31  ;;  %v3650_v46 = vmul.f32 %v4751_v32, %v9171_v47  ;;  %v9174_v32 = vld [vmem:[#allocation92_spill] sm:$0xff]  ;;  %v9175_v31 = vld [vmem:[#allocation247_spill] sm:$0xff]  ;;  %v9177_v47 = vld [vmem:[#allocation110_spill] sm:$0xff] }
 0x38a   :  { %3313 = vadd.xlane.f32.xlu1 %v3312_v3  ;;  %3901 = vmatprep.subr.mxu1 %v3651_v45  ;;  %v7543_v34 = vpop.eup %4760  ;;  %4782 = vpow2.f32 %v3014_v2  ;;  %v2882_v19 = vmul.f32 1.442695, %v2438_v56  ;;  %v2884_v1 = vmul.f32 1.442695, %v2439_v54  ;;  %v3080_v10 = vpop.xlane.xlu0 %3079  ;;  %v3649_v3 = vmul.f32 %v4753_v4, %v9172_v5  ;;  %v9173_v45 = vld [vmem:[#allocation99_spill] sm:$0xff] }
 0x38b   :  { %3827 = vmatpush2.xpose.msra.mxu0 %v3584_v51  ;;  %v4763_v8 = vpop.eup %4762  ;;  %4784 = vpow2.f32 %v3016_v53  ;;  %v3210_v38 = vadd.f32 %v7543_v34, %v7539_v15  ;;  %v3582_v2 = vmul.f32 %v7462_v58, %v9173_v45  ;;  %v3309_v51 = vadd.f32 %v7535_v12, %v7528_v23  ;;  %v9179_v45 = vld [vmem:[#allocation106_spill] sm:$0xff] }
 0x38c   :  { %3828 = vmatprep.subr.mxu0 %v3583_v6  ;;  %v7549_v17 = vpop.eup %4764  ;;  %4786 = vpow2.f32 %v2882_v19  ;;  %v3581_v53 = vmul.f32 %v7448_v63, %v9174_v32  ;;  %v2246_v56 = vpop.xlane.xlu1 %2245  ;;  %v9176_v19 = vld [vmem:[#allocation66_spill] sm:$0xff]  ;;  %v3647_v32 = vmul.f32 %v7515_v52, %v9179_v45  ;;  %v9185_v45 = vld [vmem:[#allocation109_spill] sm:$0xff] }
 0x38d   :  { %3902 = vmatpush2.xpose.msra.mxu1 %v3650_v46  ;;  %4788 = vpow2.f32 %v2884_v1  ;;  %3211 = vadd.xlane.f32.xlu0 %v3210_v38  ;;  %v4767_v54 = vpop.eup %4766  ;;  %v2502_v6 = vsub.f32 %v9175_v31, %v2246_v56  ;;  %v2503_v58 = vsub.f32 %v9176_v19, %v2246_v56  ;;  %v3648_v46 = vmul.f32 %v4753_v4, %v9177_v47  ;;  %v9178_v38 = vld [vmem:[#allocation97_spill] sm:$0xff]  ;;  %v9180_v31 = vld [vmem:[#allocation72_spill] sm:$0xff] }
 0x38e   :  { %3903 = vmatprep.subr.mxu1 %v3649_v3  ;;  %4790 = vrcp.f32 %v7510_v40  ;;  %3310 = vadd.xlane.f32.xlu1 %v3309_v51  ;;  %v7561_v5 = vpop.eup %4768  ;;  %v2147_v1 = vpop.xlane.xlu0 %2146  ;;  %v3580_v3 = vmul.f32 %v7448_v63, %v9178_v38  ;;  %v9181_v56 = vld [vmem:[#allocation69_spill] sm:$0xff] }
 0x38f   :  { %3829 = vmatpush2.xpose.msra.mxu0 %v3582_v2  ;;  %4792 = vrcp.f32 %v3179_v57  ;;  %v7567_v40 = vpop.eup %4770  ;;  %v3010_v2 = vmul.f32 1.442695, %v2502_v6  ;;  %v3012_v51 = vmul.f32 1.442695, %v2503_v58  ;;  %v2436_v23 = vsub.f32 %v9180_v31, %v2147_v1  ;;  %v9183_v57 = vld [vmem:[#allocation237_spill] sm:$0xff] }
 0x390   :  { %3830 = vmatprep.subr.mxu0 %v3581_v53  ;;  %v2437_v19 = vsub.f32 %v9181_v56, %v2147_v1  ;;  %4794 = vrcp.f32 %v3080_v10  ;;  %v3579_v53 = vmul.f32 %v4763_v8, %v9183_v57  ;;  %v3176_v47 = vpop.xlane.xlu1 %3175  ;;  %v3306_v63 = vadd.f32 %v7567_v40, %v7561_v5  ;;  %v9186_v31 = vld [vmem:[#allocation105_spill] sm:$0xff] }
 0x391   :  { %3904 = vmatpush2.xpose.msra.mxu1 %v3648_v46  ;;  %v7571_v4 = vpop.eup %4772  ;;  %4796 = vpow2.f32 %v3010_v2  ;;  %v2878_v6 = vmul.f32 1.442695, %v2436_v23  ;;  %v3646_v1 = vmul.f32 %v7515_v52, %v9185_v45  ;;  %v3645_v56 = vmul.f32 %v7491_v48, %v9186_v31  ;;  %v9187_v23 = vld [vmem:[#allocation236_spill] sm:$0xff]  ;;  %v9190_v45 = vld [vmem:[#allocation70_spill] sm:$0xff] }
 0x392   :  { %9182 = vst [vmem:[#allocation158_spill] sm:$0xff] %v7571_v4  ;;  %3905 = vmatprep.subr.mxu1 %v3647_v32  ;;  %v7576_v38 = vpop.eup %4774  ;;  %v2880_v58 = vmul.f32 1.442695, %v2437_v19  ;;  %4798 = vpow2.f32 %v3012_v51  ;;  %v3077_v10 = vpop.xlane.xlu0 %3076  ;;  %3307 = vadd.xlane.f32.xlu1 %v3306_v63  ;;  %v3578_v2 = vmul.f32 %v4763_v8, %v9187_v23  ;;  %v9188_v52 = vld [vmem:[#allocation244_spill] sm:$0xff] }
 0x393   :  { %9184 = vst [vmem:[#allocation21_spill] sm:$0xff] %v7576_v38  ;;  %3831 = vmatpush2.xpose.msra.mxu0 %v3580_v3  ;;  %v7580_v46 = vpop.eup %4776  ;;  %v3303_v32 = vadd.f32 %v7576_v38, %v7571_v4  ;;  %4800 = vpow2.f32 %v2878_v6  ;;  %v3577_v3 = vmul.f32 %v4767_v54, %v9188_v52  ;;  %v9191_v38 = vld [vmem:[#allocation98_spill] sm:$0xff]  ;;  %v9196_v52 = vld [vmem:[#allocation76_spill] sm:$0xff] }
 0x394   :  { %3832 = vmatprep.subr.mxu0 %v3579_v53  ;;  %v4779_v57 = vpop.eup %4778  ;;  %4802 = vpow2.f32 %v2880_v58  ;;  %v2243_v51 = vpop.xlane.xlu1 %2242  ;;  %v9189_v53 = vld [vmem:[#allocation241_spill] sm:$0xff]  ;;  %v3644_v31 = vmul.f32 %v7491_v48, %v9191_v38  ;;  %v9193_v58 = vld [vmem:[#allocation243_spill] sm:$0xff]  ;;  %v9199_v38 = vld [vmem:[#allocation250_spill] sm:$0xff] }
 0x395   :  { %3906 = vmatpush2.xpose.msra.mxu1 %v3646_v1  ;;  %3304 = vadd.xlane.f32.xlu0 %v3303_v32  ;;  %v4781_v19 = vpop.eup %4780  ;;  %4804 = vrcp.f32 %v3176_v47  ;;  %v2500_v63 = vsub.f32 %v9189_v53, %v2243_v51  ;;  %v2501_v4 = vsub.f32 %v9190_v45, %v2243_v51  ;;  %v3576_v1 = vmul.f32 %v4767_v54, %v9193_v58  ;;  %v9194_v32 = vld [vmem:[#allocation240_spill] sm:$0xff] }
 0x396   :  { %3907 = vmatprep.subr.mxu1 %v3645_v56  ;;  %4806 = vrcp.f32 %v3077_v10  ;;  %v2144_v8 = vpop.xlane.xlu0 %2143  ;;  %v3643_v56 = vmul.f32 %v7549_v17, %v9194_v32  ;;  %v9197_v51 = vld [vmem:[#allocation232_spill] sm:$0xff]  ;;  %v3575_v10 = vmul.f32 %v4779_v57, %v9199_v38 }
 0x397   :  { %3833 = vmatpush2.xpose.msra.mxu0 %v3578_v2  ;;  %v7592_v6 = vpop.eup %4782  ;;  %v3006_v47 = vmul.f32 1.442695, %v2500_v63  ;;  %v3008_v2 = vmul.f32 1.442695, %v2501_v4  ;;  %v2434_v53 = vsub.f32 %v9196_v52, %v2144_v8  ;;  %v2435_v45 = vsub.f32 %v9197_v51, %v2144_v8  ;;  %v9201_v4 = vld [vmem:[#allocation239_spill] sm:$0xff]  ;;  %v9202_v51 = vld [vmem:[#allocation246_spill] sm:$0xff] }
 0x398   :  { %9192 = vst [vmem:[#allocation20_spill] sm:$0xff] %v7592_v6  ;;  %3834 = vmatprep.subr.mxu0 %v3577_v3  ;;  %v7597_v23 = vpop.eup %4784  ;;  %v3173_v3 = vpop.xlane.xlu1 %3172  ;;  %v3642_v52 = vmul.f32 %v7549_v17, %v9201_v4  ;;  %v3641_v38 = vmul.f32 %v7580_v46, %v9202_v51  ;;  %v9206_v4 = vld [vmem:[#allocation67_spill] sm:$0xff] }
 0x399   :  { %9195 = vst [vmem:[#allocation208_spill] sm:$0xff] %v7597_v23  ;;  %3908 = vmatpush2.xpose.msra.mxu1 %v3644_v31  ;;  %v7601_v48 = vpop.eup %4786  ;;  %v3399_v54 = vadd.f32 %v7597_v23, %v7592_v6  ;;  %4808 = vpow2.f32 %v3006_v47  ;;  %v2874_v32 = vmul.f32 1.442695, %v2434_v53  ;;  %v2876_v63 = vmul.f32 1.442695, %v2435_v45  ;;  %v9203_v47 = vld [vmem:[#allocation249_spill] sm:$0xff] }
 0x39a   :  { %9198 = vst [vmem:[#allocation185_spill] sm:$0xff] %v7601_v48  ;;  %3909 = vmatprep.subr.mxu1 %v3643_v56  ;;  %v7606_v58 = vpop.eup %4788  ;;  %4810 = vpow2.f32 %v3008_v2  ;;  %v3074_v31 = vpop.xlane.xlu0 %3073  ;;  %v3574_v53 = vmul.f32 %v4779_v57, %v9203_v47  ;;  %v9213_v23 = vld [vmem:[#allocation224_spill] sm:$0xff] }
 0x39b   :  { %9200 = vst [vmem:[#allocation152_spill] sm:$0xff] %v7606_v58  ;;  %3835 = vmatpush2.xpose.msra.mxu0 %v3576_v1  ;;  %v4791_v8 = vpop.eup %4790  ;;  %3400 = vadd.xlane.f32.xlu1 %v3399_v54  ;;  %v3300_v56 = vadd.f32 %v7606_v58, %v7601_v48  ;;  %4812 = vpow2.f32 %v2874_v32  ;;  %v9204_v1 = vld [vmem:[#allocation257_spill] sm:$0xff] }
 0x39c   :  { %3836 = vmatprep.subr.mxu0 %v3575_v10  ;;  %v4793_v6 = vpop.eup %4792  ;;  %4814 = vpow2.f32 %v2876_v63  ;;  %v3573_v17 = vmul.f32 %v4781_v19, %v9204_v1  ;;  %v2240_v2 = vpop.xlane.xlu1 %2239  ;;  %v9205_v10 = vld [vmem:[#allocation235_spill] sm:$0xff]  ;;  %v9207_v58 = vld [vmem:[#allocation245_spill] sm:$0xff]  ;;  %v9209_v63 = vld [vmem:[#allocation256_spill] sm:$0xff] }
 0x39d   :  { %3910 = vmatpush2.xpose.msra.mxu1 %v3642_v52  ;;  %3301 = vadd.xlane.f32.xlu0 %v3300_v56  ;;  %v4795_v45 = vpop.eup %4794  ;;  %4816 = vrcp.f32 %v3173_v3  ;;  %v2498_v54 = vsub.f32 %v9205_v10, %v2240_v2  ;;  %v2499_v48 = vsub.f32 %v9206_v4, %v2240_v2  ;;  %v3640_v51 = vmul.f32 %v7580_v46, %v9207_v58  ;;  %v9210_v56 = vld [vmem:[#allocation253_spill] sm:$0xff]  ;;  %v9215_v46 = vld [vmem:[#allocation258_spill] sm:$0xff] }
 0x39e   :  { %3911 = vmatprep.subr.mxu1 %v3641_v38  ;;  %v7620_v32 = vpop.eup %4796  ;;  %4818 = vrcp.f32 %v3074_v31  ;;  %v2141_v57 = vpop.xlane.xlu0 %2140  ;;  %v3572_v52 = vmul.f32 %v4781_v19, %v9209_v63  ;;  %v3639_v38 = vmul.f32 %v4791_v8, %v9210_v56  ;;  %v9212_v1 = vld [vmem:[#allocation81_spill] sm:$0xff]  ;;  %v3571_v58 = vmul.f32 %v4795_v45, %v9215_v46 }
 0x39f   :  { %3837 = vmatpush2.xpose.msra.mxu0 %v3574_v53  ;;  %9208 = vst [vmem:[#allocation203_spill] sm:$0xff] %v7620_v32  ;;  %v7624_v47 = vpop.eup %4798  ;;  %v3002_v3 = vmul.f32 1.442695, %v2498_v54  ;;  %v3004_v53 = vmul.f32 1.442695, %v2499_v48  ;;  %v2432_v10 = vsub.f32 %v9212_v1, %v2141_v57  ;;  %v2433_v2 = vsub.f32 %v9213_v23, %v2141_v57  ;;  %v9216_v48 = vld [vmem:[#allocation252_spill] sm:$0xff] }
 0x3a0   :  { %3838 = vmatprep.subr.mxu0 %v3573_v17  ;;  %9211 = vst [vmem:[#allocation154_spill] sm:$0xff] %v7624_v47  ;;  %v7628_v4 = vpop.eup %4800  ;;  %v3170_v31 = vpop.xlane.xlu1 %3169  ;;  %v3396_v19 = vadd.f32 %v7624_v47, %v7620_v32  ;;  %v3638_v56 = vmul.f32 %v4791_v8, %v9216_v48  ;;  %v9217_v57 = vld [vmem:[#allocation55_spill] sm:$0xff]  ;;  %v9218_v32 = vld [vmem:[#allocation57_spill] sm:$0xff] }
 0x3a1   :  { %3912 = vmatpush2.xpose.msra.mxu1 %v3640_v51  ;;  %9214 = vst [vmem:[#allocation18_spill] sm:$0xff] %v7628_v4  ;;  %v7633_v17 = vpop.eup %4802  ;;  %4820 = vpow2.f32 %v3002_v3  ;;  %v2870_v63 = vmul.f32 1.442695, %v2432_v10  ;;  %v2872_v54 = vmul.f32 1.442695, %v2433_v2  ;;  %v3570_v47 = vmul.f32 %v4795_v45, %v9218_v32  ;;  %v9221_v2 = vld [vmem:[#allocation71_spill] sm:$0xff] }
 0x3a2   :  { %3913 = vmatprep.subr.mxu1 %v3639_v38  ;;  %v4805_v1 = vpop.eup %4804  ;;  %4822 = vpow2.f32 %v3004_v53  ;;  %v3071_v23 = vpop.xlane.xlu0 %3070  ;;  %3397 = vadd.xlane.f32.xlu1 %v3396_v19  ;;  %v3297_v51 = vadd.f32 %v7633_v17, %v7628_v4  ;;  %v3637_v38 = vmul.f32 %v4793_v6, %v9217_v57  ;;  %v9220_v53 = vld [vmem:[#allocation226_spill] sm:$0xff]  ;;  %v9223_v32 = vld [vmem:[#allocation51_spill] sm:$0xff] }
 0x3a3   :  { %3839 = vmatpush2.xpose.msra.mxu0 %v3572_v52  ;;  %v4807_v46 = vpop.eup %4806  ;;  %4824 = vpow2.f32 %v2870_v63  ;;  %v9219_v52 = vld [vmem:[#allocation53_spill] sm:$0xff]  ;;  %v9222_v19 = vld [vmem:[#allocation62_spill] sm:$0xff] }
 0x3a4   :  { %3840 = vmatprep.subr.mxu0 %v3571_v58  ;;  %4826 = vpow2.f32 %v2872_v54  ;;  %3298 = vadd.xlane.f32.xlu0 %v3297_v51  ;;  %v3569_v3 = vmul.f32 %v4807_v46, %v9219_v52  ;;  %v2237_v8 = vpop.xlane.xlu1 %2236  ;;  %v3636_v48 = vmul.f32 %v4793_v6, %v9222_v19  ;;  %v3568_v63 = vmul.f32 %v4807_v46, %v9223_v32  ;;  %v9224_v54 = vld [vmem:[#allocation58_spill] sm:$0xff] }
 0x3a5   :  { %3914 = vmatpush2.xpose.msra.mxu1 %v3638_v56  ;;  %4828 = vrcp.f32 %v3170_v31  ;;  %v2496_v10 = vsub.f32 %v9220_v53, %v2237_v8  ;;  %v2497_v58 = vsub.f32 %v9221_v2, %v2237_v8  ;;  %v3635_v56 = vmul.f32 %v4805_v1, %v9224_v54  ;;  %v9226_v53 = vld [vmem:[#allocation102_spill] sm:$0xff]  ;;  %v9230_v54 = vld [vmem:[#allocation49_spill] sm:$0xff] }
 0x3a6   :  { %3915 = vmatprep.subr.mxu1 %v3637_v38  ;;  %v7644_v57 = vpop.eup %4808  ;;  %4830 = vrcp.f32 %v3071_v23  ;;  %v2138_v45 = vpop.xlane.xlu0 %2137 }
 0x3a7   :  { %3841 = vmatpush2.xpose.msra.mxu0 %v3570_v47  ;;  %v7648_v51 = vpop.eup %4810  ;;  %v2998_v38 = vmul.f32 1.442695, %v2496_v10  ;;  %v3000_v31 = vmul.f32 1.442695, %v2497_v58  ;;  %v9225_v47 = vld [vmem:[#allocation101_spill] sm:$0xff]  ;;  %v2431_v4 = vsub.f32 %v9226_v53, %v2138_v45  ;;  %v9229_v10 = vld [vmem:[#allocation56_spill] sm:$0xff] }
 0x3a8   :  { %3842 = vmatprep.subr.mxu0 %v3569_v3  ;;  %v2430_v52 = vsub.f32 %v9225_v47, %v2138_v45  ;;  %v7652_v8 = vpop.eup %4812  ;;  %v3167_v6 = vpop.xlane.xlu1 %3166  ;;  %v3393_v23 = vadd.f32 %v7648_v51, %v7644_v57  ;;  %v3634_v58 = vmul.f32 %v4805_v1, %v9229_v10  ;;  %v9233_v1 = vld [vmem:[#allocation104_spill] sm:$0xff]  ;;  %v9235_v10 = vld [vmem:[#allocation47_spill] sm:$0xff] }
 0x3a9   :  { %3916 = vmatpush2.xpose.msra.mxu1 %v3636_v48  ;;  %9227 = vst [vmem:[#allocation162_spill] sm:$0xff] %v7652_v8  ;;  %v7656_v3 = vpop.eup %4814  ;;  %4832 = vpow2.f32 %v2998_v38  ;;  %v2868_v2 = vmul.f32 1.442695, %v2431_v4  ;;  %v9231_v38 = vld [vmem:[#allocation54_spill] sm:$0xff]  ;;  %v9232_v4 = vld [vmem:[#allocation52_spill] sm:$0xff] }
 0x3aa   :  { %3917 = vmatprep.subr.mxu1 %v3635_v56  ;;  %9228 = vst [vmem:[#allocation43_spill] sm:$0xff] %v7656_v3  ;;  %v2866_v46 = vmul.f32 1.442695, %v2430_v52  ;;  %v4817_v19 = vpop.eup %4816  ;;  %4834 = vpow2.f32 %v3000_v31  ;;  %v3068_v32 = vpop.xlane.xlu0 %3067  ;;  %3394 = vadd.xlane.f32.xlu1 %v3393_v23  ;;  %v3294_v48 = vadd.f32 %v7656_v3, %v7652_v8  ;;  %v9234_v53 = vld [vmem:[#allocation80_spill] sm:$0xff] }
 0x3ab   :  { %3843 = vmatpush2.xpose.msra.mxu0 %v3568_v63  ;;  %v4819_v45 = vpop.eup %4818  ;;  %v3633_v56 = vmul.f32 %v4817_v19, %v9230_v54  ;;  %v3632_v8 = vmul.f32 %v4817_v19, %v9235_v10  ;;  %v9243_v10 = vld [vmem:[#allocation48_spill] sm:$0xff] }
 0x3ac   :  { %4836 = vpow2.f32 %v2866_v46  ;;  %3295 = vadd.xlane.f32.xlu0 %v3294_v48  ;;  %v3567_v47 = vmul.f32 %v4819_v45, %v9231_v38  ;;  %v3566_v63 = vmul.f32 %v4819_v45, %v9232_v4  ;;  %v2234_v52 = vpop.xlane.xlu1 %2233  ;;  %v9238_v45 = vld [vmem:[#allocation88_spill] sm:$0xff] }
 0x3ad   :  { %3918 = vmatpush2.xpose.msra.mxu1 %v3634_v58  ;;  %4838 = vpow2.f32 %v2868_v2  ;;  %v2494_v31 = vsub.f32 %v9233_v1, %v2234_v52  ;;  %v2495_v23 = vsub.f32 %v9234_v53, %v2234_v52 }
 0x3ae   :  { %4840 = vrcp.f32 %v3167_v6  ;;  %3919 = vmatprep.subr.mxu1 %v3633_v56  ;;  %v7667_v3 = vpop.eup %4820  ;;  %3844 = vmatprep.subr.mxu0 %v3567_v47  ;;  %v2135_v46 = vpop.xlane.xlu0 %2134  ;;  %v9239_v6 = vld [vmem:[#allocation95_spill] sm:$0xff] }
 0x3af   :  { %9236 = vst [vmem:[#allocation165_spill] sm:$0xff] %v7667_v3  ;;  %4842 = vrcp.f32 %v3068_v32  ;;  %v7669_v2 = vpop.eup %4822  ;;  %3845 = vmatpush2.xpose.msra.mxu0 %v3566_v63  ;;  %v2994_v58 = vmul.f32 1.442695, %v2494_v31  ;;  %v2996_v48 = vmul.f32 1.442695, %v2495_v23  ;;  %v2428_v54 = vsub.f32 %v9238_v45, %v2135_v46  ;;  %v9244_v45 = vld [vmem:[#allocation260_spill] sm:$0xff] }
 0x3b0   :  { %9237 = vst [vmem:[#allocation202_spill] sm:$0xff] %v7669_v2  ;;  %v2429_v56 = vsub.f32 %v9239_v6, %v2135_v46  ;;  %v7673_v38 = vpop.eup %4824  ;;  %v3164_v4 = vpop.xlane.xlu1 %3163  ;;  %v3390_v19 = vadd.f32 %v7669_v2, %v7667_v3  ;;  %v9247_v3 = vld [vmem:[#allocation103_spill] sm:$0xff] }
 0x3b1   :  { %3920 = vmatpush2.xpose.msra.mxu1 %v3632_v8  ;;  %9240 = vst [vmem:[#allocation29_spill] sm:$0xff] %v7673_v38  ;;  %v7677_v52 = vpop.eup %4826  ;;  %4844 = vpow2.f32 %v2994_v58  ;;  %v2862_v32 = vmul.f32 1.442695, %v2428_v54  ;;  %v9242_v8 = vld [vmem:[#allocation50_spill] sm:$0xff]  ;;  %v9245_v58 = vld [vmem:[#allocation259_spill] sm:$0xff] }
 0x3b2   :  { %9241 = vst [vmem:[#allocation147_spill] sm:$0xff] %v7677_v52  ;;  %v2864_v47 = vmul.f32 1.442695, %v2429_v56  ;;  %v4829_v1 = vpop.eup %4828  ;;  %4846 = vpow2.f32 %v2996_v48  ;;  %v3257_v63 = vpop.xlane.xlu0 %3256  ;;  %3391 = vadd.xlane.f32.xlu1 %v3390_v19  ;;  %v3291_v31 = vadd.f32 %v7677_v52, %v7673_v38  ;;  %v9246_v48 = vld [vmem:[#allocation94_spill] sm:$0xff] }
 0x3b3   :  { %v4831_v53 = vpop.eup %4830  ;;  %4848 = vpow2.f32 %v2862_v32  ;;  %v3631_v23 = vmul.f32 %v4829_v1, %v9242_v8  ;;  %v3630_v46 = vmul.f32 %v4829_v1, %v9243_v10  ;;  %v9250_v8 = vld [vmem:[#allocation84_spill] sm:$0xff]  ;;  %v9251_v10 = vld [vmem:[#allocation91_spill] sm:$0xff] }
 0x3b4   :  { %4850 = vpow2.f32 %v2864_v47  ;;  %3292 = vadd.xlane.f32.xlu0 %v3291_v31  ;;  %v3565_v6 = vmul.f32 %v4831_v53, %v9244_v45  ;;  %v3564_v54 = vmul.f32 %v4831_v53, %v9245_v58  ;;  %v2231_v56 = vpop.xlane.xlu1 %2230 }
 0x3b5   :  { %4852 = vrcp.f32 %v3164_v4  ;;  %3921 = vmatprep.subr.mxu1 %v3631_v23  ;;  %v2492_v19 = vsub.f32 %v9246_v48, %v2231_v56  ;;  %v2493_v2 = vsub.f32 %v9247_v3, %v2231_v56  ;;  %v9254_v48 = vld [vmem:[#allocation177_spill] sm:$0xff] }
 0x3b6   :  { %v7687_v38 = vpop.eup %4832  ;;  %4854 = vrcp.f32 %v3257_v63  ;;  %3846 = vmatprep.subr.mxu0 %v3565_v6  ;;  %3922 = vmatpush2.xpose.msra.mxu1 %v3630_v46  ;;  %v2132_v32 = vpop.xlane.xlu0 %2131 }
 0x3b7   :  { %9248 = vst [vmem:[#allocation197_spill] sm:$0xff] %v7687_v38  ;;  %v7689_v1 = vpop.eup %4834  ;;  %3847 = vmatpush2.xpose.msra.mxu0 %v3564_v54  ;;  %v2990_v47 = vmul.f32 1.442695, %v2492_v19  ;;  %v2992_v31 = vmul.f32 1.442695, %v2493_v2  ;;  %v2426_v53 = vsub.f32 %v9250_v8, %v2132_v32  ;;  %v2427_v4 = vsub.f32 %v9251_v10, %v2132_v32  ;;  %v9255_v32 = vld [vmem:[#allocation263_spill] sm:$0xff] }
 0x3b8   :  { %9249 = vst [vmem:[#allocation150_spill] sm:$0xff] %v7689_v1  ;;  %v3353_v45 = vpop.xlane.xlu1 %3352  ;;  %v3387_v3 = vadd.f32 %v7689_v1, %v7687_v38  ;;  %v9256_v10 = vld [vmem:[#allocation262_spill] sm:$0xff] }
 0x3b9   :  { %v7693_v23 = vpop.eup %4836  ;;  %4856 = vpow2.f32 %v2990_v47  ;;  %v2858_v63 = vmul.f32 1.442695, %v2426_v53  ;;  %v2860_v46 = vmul.f32 1.442695, %v2427_v4  ;;  %v9257_v47 = vld [vmem:[#allocation261_spill] sm:$0xff]  ;;  %v9259_v1 = vld [vmem:[#allocation90_spill] sm:$0xff] }
 0x3ba   :  { %9252 = vst [vmem:[#allocation146_spill] sm:$0xff] %v7693_v23  ;;  %v7697_v58 = vpop.eup %4838  ;;  %4858 = vpow2.f32 %v2992_v31  ;;  %v3254_v54 = vpop.xlane.xlu0 %3253  ;;  %3388 = vadd.xlane.f32.xlu1 %v3387_v3  ;;  %v9258_v31 = vld [vmem:[#allocation93_spill] sm:$0xff] }
 0x3bb   :  { %9253 = vst [vmem:[#allocation157_spill] sm:$0xff] %v7697_v58  ;;  %v4841_v6 = vpop.eup %4840  ;;  %v3288_v2 = vadd.f32 %v7697_v58, %v7693_v23  ;;  %4860 = vpow2.f32 %v2858_v63  ;;  %v9270_v58 = vld [vmem:[#allocation86_spill] sm:$0xff] }
 0x3bc   :  { %v4843_v56 = vpop.eup %4842  ;;  %v3629_v19 = vmul.f32 %v4841_v6, %v9254_v48  ;;  %v3628_v8 = vmul.f32 %v4841_v6, %v9255_v32  ;;  %4862 = vpow2.f32 %v2860_v46  ;;  %v2228_v4 = vpop.xlane.xlu1 %2227  ;;  %v9262_v48 = vld [vmem:[#allocation83_spill] sm:$0xff] }
 0x3bd   :  { %3289 = vadd.xlane.f32.xlu0 %v3288_v2  ;;  %v3563_v38 = vmul.f32 %v4843_v56, %v9256_v10  ;;  %v3562_v53 = vmul.f32 %v4843_v56, %v9257_v47  ;;  %4864 = vrcp.f32 %v3353_v45  ;;  %v2490_v3 = vsub.f32 %v9258_v31, %v2228_v4  ;;  %v9263_v32 = vld [vmem:[#allocation87_spill] sm:$0xff] }
 0x3be   :  { %3923 = vmatprep.subr.mxu1 %v3629_v19  ;;  %v2491_v52 = vsub.f32 %v9259_v1, %v2228_v4  ;;  %v7707_v23 = vpop.eup %4844  ;;  %4866 = vrcp.f32 %v3254_v54  ;;  %v2129_v63 = vpop.xlane.xlu0 %2128  ;;  %v165_v19 = vld [vmem:[#allocation7] sm:$0xff] }
 0x3bf   :  { %9260 = vst [vmem:[#allocation41_spill] sm:$0xff] %v7707_v23  ;;  %3848 = vmatprep.subr.mxu0 %v3563_v38  ;;  %3924 = vmatpush2.xpose.msra.mxu1 %v3628_v8  ;;  %v7709_v6 = vpop.eup %4846  ;;  %v2986_v46 = vmul.f32 1.442695, %v2490_v3  ;;  %v2424_v56 = vsub.f32 %v9262_v48, %v2129_v63  ;;  %v2425_v45 = vsub.f32 %v9263_v32, %v2129_v63  ;;  %v9265_v3 = vld [vmem:[#allocation174_spill] sm:$0xff]  ;;  %v9266_v48 = vld [vmem:[#allocation59_spill] sm:$0xff] }
 0x3c0   :  { %9261 = vst [vmem:[#allocation159_spill] sm:$0xff] %v7709_v6  ;;  %3849 = vmatpush2.xpose.msra.mxu0 %v3562_v53  ;;  %v2988_v2 = vmul.f32 1.442695, %v2491_v52  ;;  %v7713_v10 = vpop.eup %4848  ;;  %v3350_v47 = vpop.xlane.xlu1 %3349  ;;  %v3384_v1 = vadd.f32 %v7709_v6, %v7707_v23  ;;  %v9267_v23 = vld [vmem:[#allocation188_spill] sm:$0xff] }
 0x3c1   :  { %9264 = vst [vmem:[#allocation196_spill] sm:$0xff] %v7713_v10  ;;  %v7717_v54 = vpop.eup %4850  ;;  %4868 = vpow2.f32 %v2986_v46  ;;  %v2854_v38 = vmul.f32 1.442695, %v2424_v56  ;;  %v2856_v8 = vmul.f32 1.442695, %v2425_v45  ;;  %v9268_v56 = vld [vmem:[#allocation187_spill] sm:$0xff] }
 0x3c2   :  { %v4853_v4 = vpop.eup %4852  ;;  %4870 = vpow2.f32 %v2988_v2  ;;  %v3251_v53 = vpop.xlane.xlu0 %3250  ;;  %3385 = vadd.xlane.f32.xlu1 %v3384_v1  ;;  %v3285_v52 = vadd.f32 %v7717_v54, %v7713_v10  ;;  %v9269_v2 = vld [vmem:[#allocation89_spill] sm:$0xff] }
 0x3c3   :  { %3851 = vmatmul.mubr.f32.vlgmr.msra.gmra.mxu0 %v165_v19  ;;  %v4855_v31 = vpop.eup %4854  ;;  %4872 = vpow2.f32 %v2854_v38  ;;  %v3627_v63 = vmul.f32 %v4853_v4, %v9265_v3  ;;  %v3626_v32 = vmul.f32 %v4853_v4, %v9266_v48  ;;  %v169_v4 = vld [vmem:[#allocation7 + $0x20] sm:$0xff] }
 0x3c4   :  { %4874 = vpow2.f32 %v2856_v8  ;;  %3286 = vadd.xlane.f32.xlu0 %v3285_v52  ;;  %v3689_v46 = vmul.f32 %v4855_v31, %v9267_v23  ;;  %v3688_v45 = vmul.f32 %v4855_v31, %v9268_v56  ;;  %v2225_v6 = vpop.xlane.xlu1 %2224  ;;  %v9272_v31 = vld [vmem:[#allocation220_spill] sm:$0xff] }
 0x3c5   :  { %4876 = vrcp.f32 %v3350_v47  ;;  %3925 = vmatprep.subr.mxu1 %v3627_v63  ;;  %v2488_v1 = vsub.f32 %v9269_v2, %v2225_v6  ;;  %v2489_v10 = vsub.f32 %v9270_v58, %v2225_v6  ;;  %v9273_v47 = vld [vmem:[#allocation222_spill] sm:$0xff] }
 0x3c6   :  { %v7727_v19 = vpop.eup %4856  ;;  %4878 = vrcp.f32 %v3251_v53  ;;  %3940 = vmatprep.subr.mxu0 %v3689_v46  ;;  %3926 = vmatpush2.xpose.msra.mxu1 %v3626_v32  ;;  %v2126_v38 = vpop.xlane.xlu0 %2125 }
 0x3c7   :  { %9271 = vst [vmem:[#allocation139_spill] sm:$0xff] %v7727_v19  ;;  %v7729_v8 = vpop.eup %4858  ;;  %3941 = vmatpush1.xpose.msra.mxu0 %v3688_v45  ;;  %v2982_v23 = vmul.f32 1.442695, %v2488_v1  ;;  %v2984_v52 = vmul.f32 1.442695, %v2489_v10  ;;  %v2422_v3 = vsub.f32 %v9272_v31, %v2126_v38  ;;  %v2423_v63 = vsub.f32 %v9273_v47, %v2126_v38  ;;  %v9275_v1 = vld [vmem:[#allocation179_spill] sm:$0xff] }
 0x3c8   :  { %v7733_v48 = vpop.eup %4860  ;;  %v3347_v56 = vpop.xlane.xlu1 %3346  ;;  %v3381_v58 = vadd.f32 %v7729_v8, %v7727_v19  ;;  %v9276_v31 = vld [vmem:[#allocation268_spill] sm:$0xff]  ;;  %v9277_v19 = vld [vmem:[#allocation183_spill] sm:$0xff] }
 0x3c9   :  { %9274 = vst [vmem:[#allocation46_spill] sm:$0xff] %v7733_v48  ;;  %v7737_v6 = vpop.eup %4862  ;;  %4880 = vpow2.f32 %v2982_v23  ;;  %v2850_v53 = vmul.f32 1.442695, %v2422_v3  ;;  %v2852_v32 = vmul.f32 1.442695, %v2423_v63  ;;  %3928 = vmatmul.mubr.f32.vlgmr.msra.gmra.mxu1 %v169_v4  ;;  %v9278_v3 = vld [vmem:[#allocation269_spill] sm:$0xff] }
 0x3ca   :  { %v4865_v46 = vpop.eup %4864  ;;  %4882 = vpow2.f32 %v2984_v52  ;;  %v3248_v45 = vpop.xlane.xlu0 %3247  ;;  %3382 = vadd.xlane.f32.xlu1 %v3381_v58  ;;  %v3282_v10 = vadd.f32 %v7737_v6, %v7733_v48 }
 0x3cb   :  { %v4867_v2 = vpop.eup %4866  ;;  %4884 = vpow2.f32 %v2850_v53  ;;  %v3753_v38 = vmul.f32 %v4865_v46, %v9275_v1  ;;  %v3752_v47 = vmul.f32 %v4865_v46, %v9276_v31 }
 0x3cc   :  { %4886 = vpow2.f32 %v2852_v32  ;;  %3283 = vadd.xlane.f32.xlu0 %v3282_v10  ;;  %v3687_v23 = vmul.f32 %v4867_v2, %v9277_v19  ;;  %v3686_v63 = vmul.f32 %v4867_v2, %v9278_v3  ;;  %v2222_v4 = vpop.xlane.xlu1 %2221  ;;  %v9279_v2 = vld [vmem:[#allocation216_spill] sm:$0xff] }
 0x3cd   :  { %4888 = vrcp.f32 %v3347_v56  ;;  %4017 = vmatprep.subr.mxu1 %v3753_v38  ;;  %v2486_v52 = vsub.f32 %v9001_v35, %v2222_v4  ;;  %v2487_v58 = vsub.f32 %v9000_v44, %v2222_v4 }
 0x3ce   :  { %v7747_v48 = vpop.eup %4868  ;;  %4890 = vrcp.f32 %v3248_v45  ;;  %3942 = vmatprep.subr.mxu0 %v3687_v23  ;;  %4018 = vmatpush1.xpose.msra.mxu1 %v3752_v47  ;;  %v2123_v53 = vpop.xlane.xlu0 %2122 }
 0x3cf   :  { %v7749_v46 = vpop.eup %4870  ;;  %3943 = vmatpush1.xpose.msra.mxu0 %v3686_v63  ;;  %v2978_v32 = vmul.f32 1.442695, %v2486_v52  ;;  %v2980_v19 = vmul.f32 1.442695, %v2487_v58  ;;  %v2420_v10 = vsub.f32 %v9003_v13, %v2123_v53  ;;  %v2421_v56 = vsub.f32 %v9279_v2, %v2123_v53  ;;  %v9281_v63 = vld [vmem:[#allocation274_spill] sm:$0xff]  ;;  %v9282_v52 = vld [vmem:[#allocation273_spill] sm:$0xff] }
 0x3d0   :  { %v7753_v1 = vpop.eup %4872  ;;  %v3344_v35 = vpop.xlane.xlu1 %3343  ;;  %v3378_v44 = vadd.f32 %v7749_v46, %v7747_v48  ;;  %v9283_v53 = vld [vmem:[#allocation275_spill] sm:$0xff] }
 0x3d1   :  { %9280 = vst [vmem:[#allocation143_spill] sm:$0xff] %v7753_v1  ;;  %v7757_v38 = vpop.eup %4874  ;;  %4892 = vpow2.f32 %v2978_v32  ;;  %v2846_v45 = vmul.f32 1.442695, %v2420_v10  ;;  %v2848_v31 = vmul.f32 1.442695, %v2421_v56  ;;  %v9284_v32 = vld [vmem:[#allocation255_spill] sm:$0xff] }
 0x3d2   :  { %v4877_v47 = vpop.eup %4876  ;;  %4894 = vpow2.f32 %v2980_v19  ;;  %v3245_v23 = vpop.xlane.xlu0 %3244  ;;  %3379 = vadd.xlane.f32.xlu1 %v3378_v44  ;;  %v3279_v13 = vadd.f32 %v7757_v38, %v7753_v1 }
 0x3d3   :  { %v4879_v3 = vpop.eup %4878  ;;  %4896 = vpow2.f32 %v2846_v45  ;;  %v3751_v4 = vmul.f32 %v4877_v47, %v9281_v63  ;;  %v3750_v58 = vmul.f32 %v4877_v47, %v9282_v52 }
 0x3d4   :  { %4898 = vpow2.f32 %v2848_v31  ;;  %3280 = vadd.xlane.f32.xlu0 %v3279_v13  ;;  %v3685_v2 = vmul.f32 %v4879_v3, %v9283_v53  ;;  %v3684_v10 = vmul.f32 %v4879_v3, %v9284_v32 }
 0x3d5   :  { %v2219_v56 = vpop.xlane.xlu1 %2218  ;;  %4900 = vrcp.f32 %v3344_v35  ;;  %4019 = vmatprep.subr.mxu1 %v3751_v4 }
 0x3d6   :  { %v2484_v19 = vsub.f32 %v8992_v26, %v2219_v56  ;;  %v2485_v44 = vsub.f32 %v8991_v42, %v2219_v56  ;;  %v7767_v1 = vpop.eup %4880  ;;  %4902 = vrcp.f32 %v3245_v23  ;;  %3944 = vmatprep.subr.mxu0 %v3685_v2  ;;  %4020 = vmatpush1.xpose.msra.mxu1 %v3750_v58 }
 0x3d7   :  { %v7769_v47 = vpop.eup %4882  ;;  %3945 = vmatpush1.xpose.msra.mxu0 %v3684_v10  ;;  %v9286_v10 = vld [vmem:[#allocation206_spill] sm:$0xff] }
 0x3d8   :  { %v2120_v45 = vpop.xlane.xlu0 %2119  ;;  %v2974_v31 = vmul.f32 1.442695, %v2484_v19  ;;  %v2976_v13 = vmul.f32 1.442695, %v2485_v44  ;;  %v7773_v63 = vpop.eup %4884  ;;  %v3375_v42 = vadd.f32 %v7769_v47, %v7767_v1  ;;  %v9287_v19 = vld [vmem:[#allocation276_spill] sm:$0xff] }
 0x3d9   :  { %v2418_v3 = vsub.f32 %v8990_v20, %v2120_v45  ;;  %v2419_v35 = vsub.f32 %v8989_v16, %v2120_v45  ;;  %v3341_v26 = vpop.xlane.xlu1 %3340  ;;  %v7777_v4 = vpop.eup %4886  ;;  %v9285_v16 = vld [vmem:[#allocation205_spill] sm:$0xff]  ;;  %v9288_v45 = vld [vmem:[#allocation272_spill] sm:$0xff] }
 0x3da   :  { %4904 = vpow2.f32 %v2974_v31  ;;  %v4889_v58 = vpop.eup %4888  ;;  %3376 = vadd.xlane.f32.xlu1 %v3375_v42  ;;  %v3276_v20 = vadd.f32 %v7777_v4, %v7773_v63 }
 0x3db   :  { %v2842_v23 = vmul.f32 1.442695, %v2418_v3  ;;  %v2844_v52 = vmul.f32 1.442695, %v2419_v35  ;;  %4906 = vpow2.f32 %v2976_v13  ;;  %v4891_v2 = vpop.eup %4890  ;;  %v3749_v32 = vmul.f32 %v4889_v58, %v9285_v16 }
 0x3dc   :  { %v3242_v53 = vpop.xlane.xlu0 %3241  ;;  %v3748_v56 = vmul.f32 %v4889_v58, %v9286_v10  ;;  %3277 = vadd.xlane.f32.xlu0 %v3276_v20  ;;  %v3683_v44 = vmul.f32 %v4891_v2, %v9287_v19  ;;  %v3682_v31 = vmul.f32 %v4891_v2, %v9288_v45 }
 0x3dd   :  { %4908 = vpow2.f32 %v2842_v23  ;;  %4021 = vmatprep.subr.mxu1 %v3749_v32 }
 0x3de   :  { %4910 = vpow2.f32 %v2844_v52  ;;  %v7787_v42 = vpop.eup %4892  ;;  %3946 = vmatprep.subr.mxu0 %v3683_v44  ;;  %4022 = vmatpush1.xpose.msra.mxu1 %v3748_v56 }
 0x3df   :  { %v2216_v3 = vpop.xlane.xlu1 %2215  ;;  %4912 = vrcp.f32 %v3341_v26  ;;  %v7789_v58 = vpop.eup %4894  ;;  %3947 = vmatpush1.xpose.msra.mxu0 %v3682_v31  ;;  %v9290_v31 = vld [vmem:[#allocation242_spill] sm:$0xff] }
 0x3e0   :  { %v2482_v13 = vsub.f32 %v8986_v30, %v2216_v3  ;;  %v2483_v35 = vsub.f32 %v8985_v25, %v2216_v3  ;;  %4914 = vrcp.f32 %v3242_v53  ;;  %v7793_v16 = vpop.eup %4896  ;;  %v3372_v25 = vadd.f32 %v7789_v58, %v7787_v42 }
 0x3e1   :  { %v2117_v23 = vpop.xlane.xlu0 %2116  ;;  %v7797_v32 = vpop.eup %4898 }
 0x3e2   :  { %v2970_v52 = vmul.f32 1.442695, %v2482_v13  ;;  %v2972_v20 = vmul.f32 1.442695, %v2483_v35  ;;  %v2416_v2 = vsub.f32 %v8988_v50, %v2117_v23  ;;  %v2417_v26 = vsub.f32 %v8987_v36, %v2117_v23  ;;  %v4901_v56 = vpop.eup %4900  ;;  %3373 = vadd.xlane.f32.xlu1 %v3372_v25  ;;  %v9289_v36 = vld [vmem:[#allocation200_spill] sm:$0xff]  ;;  %v9291_v13 = vld [vmem:[#allocation267_spill] sm:$0xff] }
 0x3e3   :  { %v3338_v30 = vpop.xlane.xlu1 %3337  ;;  %v3273_v50 = vadd.f32 %v7797_v32, %v7793_v16  ;;  %v4903_v44 = vpop.eup %4902  ;;  %v3747_v45 = vmul.f32 %v4901_v56, %v9289_v36  ;;  %v3746_v3 = vmul.f32 %v4901_v56, %v9290_v31  ;;  %v9292_v23 = vld [vmem:[#allocation266_spill] sm:$0xff] }
 0x3e4   :  { %4916 = vpow2.f32 %v2970_v52  ;;  %v2838_v53 = vmul.f32 1.442695, %v2416_v2  ;;  %v2840_v10 = vmul.f32 1.442695, %v2417_v26  ;;  %v3681_v35 = vmul.f32 %v4903_v44, %v9291_v13 }
 0x3e5   :  { %4918 = vpow2.f32 %v2972_v20  ;;  %v3239_v19 = vpop.xlane.xlu0 %3238  ;;  %3274 = vadd.xlane.f32.xlu0 %v3273_v50  ;;  %v3680_v52 = vmul.f32 %v4903_v44, %v9292_v23  ;;  %4023 = vmatprep.subr.mxu1 %v3747_v45 }
 0x3e6   :  { %4920 = vpow2.f32 %v2838_v53  ;;  %3948 = vmatprep.subr.mxu0 %v3681_v35  ;;  %4024 = vmatpush1.xpose.msra.mxu1 %v3746_v3 }
 0x3e7   :  { %4922 = vpow2.f32 %v2840_v10  ;;  %v2213_v2 = vpop.xlane.xlu1 %2212  ;;  %v7807_v25 = vpop.eup %4904  ;;  %3949 = vmatpush1.xpose.msra.mxu0 %v3680_v52  ;;  %v9294_v52 = vld [vmem:[#allocation270_spill] sm:$0xff] }
 0x3e8   :  { %4924 = vrcp.f32 %v3338_v30  ;;  %v2480_v20 = vsub.f32 %v8979_v41, %v2213_v2  ;;  %v2481_v26 = vsub.f32 %v8978_v11, %v2213_v2  ;;  %v7809_v56 = vpop.eup %4906 }
 0x3e9   :  { %4926 = vrcp.f32 %v3239_v19  ;;  %v2114_v53 = vpop.xlane.xlu0 %2113  ;;  %v3369_v11 = vadd.f32 %v7809_v56, %v7807_v25 }
 0x3ea   :  { %v2966_v10 = vmul.f32 1.442695, %v2480_v20  ;;  %v2968_v50 = vmul.f32 1.442695, %v2481_v26  ;;  %v2414_v44 = vsub.f32 %v8981_v7, %v2114_v53  ;;  %v2415_v30 = vsub.f32 %v8980_v9, %v2114_v53  ;;  %v7813_v36 = vpop.eup %4908  ;;  %v9293_v9 = vld [vmem:[#allocation271_spill] sm:$0xff]  ;;  %v9295_v20 = vld [vmem:[#allocation178_spill] sm:$0xff] }
 0x3eb   :  { %v3335_v41 = vpop.xlane.xlu1 %3334  ;;  %v7817_v45 = vpop.eup %4910  ;;  %3370 = vadd.xlane.f32.xlu1 %v3369_v11  ;;  %v9296_v53 = vld [vmem:[#allocation186_spill] sm:$0xff] }
 0x3ec   :  { %4928 = vpow2.f32 %v2966_v10  ;;  %v2834_v19 = vmul.f32 1.442695, %v2414_v44  ;;  %v2836_v31 = vmul.f32 1.442695, %v2415_v30  ;;  %v4913_v3 = vpop.eup %4912  ;;  %v3270_v7 = vadd.f32 %v7817_v45, %v7813_v36 }
 0x3ed   :  { %4930 = vpow2.f32 %v2968_v50  ;;  %v3236_v13 = vpop.xlane.xlu0 %3235  ;;  %v4915_v35 = vpop.eup %4914  ;;  %v3745_v23 = vmul.f32 %v4913_v3, %v9293_v9  ;;  %v3744_v2 = vmul.f32 %v4913_v3, %v9294_v52 }
 0x3ee   :  { %4932 = vpow2.f32 %v2834_v19  ;;  %3271 = vadd.xlane.f32.xlu0 %v3270_v7  ;;  %v3679_v26 = vmul.f32 %v4915_v35, %v9295_v20  ;;  %v3678_v10 = vmul.f32 %v4915_v35, %v9296_v53 }
 0x3ef   :  { %4934 = vpow2.f32 %v2836_v31  ;;  %v2210_v44 = vpop.xlane.xlu1 %2209  ;;  %4025 = vmatprep.subr.mxu1 %v3745_v23 }
 0x3f0   :  { %4936 = vrcp.f32 %v3335_v41  ;;  %v2478_v50 = vsub.f32 %v9092_v24, %v2210_v44  ;;  %v2479_v30 = vsub.f32 %v9091_v62, %v2210_v44  ;;  %3950 = vmatprep.subr.mxu0 %v3679_v26  ;;  %4026 = vmatpush1.xpose.msra.mxu1 %v3744_v2 }
 0x3f1   :  { %v7827_v11 = vpop.eup %4916  ;;  %4938 = vrcp.f32 %v3236_v13  ;;  %v2111_v19 = vpop.xlane.xlu0 %2110  ;;  %3951 = vmatpush1.xpose.msra.mxu0 %v3678_v10  ;;  %v9298_v10 = vld [vmem:[#allocation264_spill] sm:$0xff] }
 0x3f2   :  { %v7829_v3 = vpop.eup %4918  ;;  %v2962_v31 = vmul.f32 1.442695, %v2478_v50  ;;  %v2964_v7 = vmul.f32 1.442695, %v2479_v30  ;;  %v2412_v35 = vsub.f32 %v9099_v59, %v2111_v19  ;;  %v2413_v41 = vsub.f32 %v9098_v28, %v2111_v19  ;;  %v9297_v28 = vld [vmem:[#allocation265_spill] sm:$0xff]  ;;  %v9299_v50 = vld [vmem:[#allocation195_spill] sm:$0xff] }
 0x3f3   :  { %v7833_v9 = vpop.eup %4920  ;;  %v3332_v24 = vpop.xlane.xlu1 %3331  ;;  %v3366_v62 = vadd.f32 %v7829_v3, %v7827_v11  ;;  %v9300_v19 = vld [vmem:[#allocation201_spill] sm:$0xff] }
 0x3f4   :  { %v7837_v23 = vpop.eup %4922  ;;  %4940 = vpow2.f32 %v2962_v31  ;;  %v2830_v13 = vmul.f32 1.442695, %v2412_v35  ;;  %v2832_v52 = vmul.f32 1.442695, %v2413_v41 }
 0x3f5   :  { %v4925_v2 = vpop.eup %4924  ;;  %4942 = vpow2.f32 %v2964_v7  ;;  %v3233_v20 = vpop.xlane.xlu0 %3232  ;;  %3367 = vadd.xlane.f32.xlu1 %v3366_v62  ;;  %v3267_v59 = vadd.f32 %v7837_v23, %v7833_v9 }
 0x3f6   :  { %v4927_v26 = vpop.eup %4926  ;;  %4944 = vpow2.f32 %v2830_v13  ;;  %v3743_v53 = vmul.f32 %v4925_v2, %v9297_v28  ;;  %v3742_v44 = vmul.f32 %v4925_v2, %v9298_v10  ;;  %v9302_v28 = vld [vmem:[#allocation127_spill] sm:$0xff] }
 0x3f7   :  { %4946 = vpow2.f32 %v2832_v52  ;;  %3268 = vadd.xlane.f32.xlu0 %v3267_v59  ;;  %v3677_v30 = vmul.f32 %v4927_v26, %v9299_v50  ;;  %v3676_v31 = vmul.f32 %v4927_v26, %v9300_v19  ;;  %v2207_v35 = vpop.xlane.xlu1 %2206 }
 0x3f8   :  { %4948 = vrcp.f32 %v3332_v24  ;;  %4027 = vmatprep.subr.mxu1 %v3743_v53  ;;  %v2476_v7 = vsub.f32 %v9111_v39, %v2207_v35  ;;  %v2477_v41 = vsub.f32 %v9110_v0, %v2207_v35 }
 0x3f9   :  { %v7847_v62 = vpop.eup %4928  ;;  %4950 = vrcp.f32 %v3233_v20  ;;  %3952 = vmatprep.subr.mxu0 %v3677_v30  ;;  %4028 = vmatpush1.xpose.msra.mxu1 %v3742_v44  ;;  %v2108_v13 = vpop.xlane.xlu0 %2107 }
 0x3fa   :  { %9301 = vst [vmem:[#allocation39_spill] sm:$0xff] %v7847_v62  ;;  %v7849_v2 = vpop.eup %4930  ;;  %3953 = vmatpush1.xpose.msra.mxu0 %v3676_v31  ;;  %v2958_v52 = vmul.f32 1.442695, %v2476_v7  ;;  %v2960_v59 = vmul.f32 1.442695, %v2477_v41  ;;  %v2410_v26 = vsub.f32 %v9116_v18, %v2108_v13  ;;  %v2411_v24 = vsub.f32 %v9302_v28, %v2108_v13  ;;  %v9304_v31 = vld [vmem:[#allocation213_spill] sm:$0xff] }
 0x3fb   :  { %v7853_v53 = vpop.eup %4932  ;;  %v3329_v39 = vpop.xlane.xlu1 %3328  ;;  %v3363_v0 = vadd.f32 %v7849_v2, %v7847_v62  ;;  %v9305_v7 = vld [vmem:[#allocation65_spill] sm:$0xff]  ;;  %v9306_v13 = vld [vmem:[#allocation142_spill] sm:$0xff] }
 0x3fc   :  { %9303 = vst [vmem:[#allocation153_spill] sm:$0xff] %v7853_v53  ;;  %v7857_v10 = vpop.eup %4934  ;;  %4952 = vpow2.f32 %v2958_v52  ;;  %v2826_v20 = vmul.f32 1.442695, %v2410_v26  ;;  %v2828_v44 = vmul.f32 1.442695, %v2411_v24  ;;  %v9307_v52 = vld [vmem:[#allocation38_spill] sm:$0xff] }
 0x3fd   :  { %v4937_v50 = vpop.eup %4936  ;;  %4954 = vpow2.f32 %v2960_v59  ;;  %v3230_v30 = vpop.xlane.xlu0 %3229  ;;  %3364 = vadd.xlane.f32.xlu1 %v3363_v0  ;;  %v3264_v18 = vadd.f32 %v7857_v10, %v7853_v53  ;;  %v9308_v0 = vld [vmem:[#allocation28_spill] sm:$0xff] }
 0x3fe   :  { %v4939_v19 = vpop.eup %4938  ;;  %4956 = vpow2.f32 %v2826_v20  ;;  %v3741_v35 = vmul.f32 %v4937_v50, %v9304_v31  ;;  %v3740_v41 = vmul.f32 %v4937_v50, %v9305_v7 }
 0x3ff   :  { %4958 = vpow2.f32 %v2828_v44  ;;  %3265 = vadd.xlane.f32.xlu0 %v3264_v18  ;;  %v3675_v28 = vmul.f32 %v4939_v19, %v9306_v13  ;;  %v3674_v26 = vmul.f32 %v4939_v19, %v9307_v52  ;;  %v2204_v24 = vpop.xlane.xlu1 %2203 }
 0x400   :  { %4960 = vrcp.f32 %v3329_v39  ;;  %4029 = vmatprep.subr.mxu1 %v3741_v35  ;;  %v2474_v59 = vsub.f32 %v9130_v29, %v2204_v24  ;;  %v2475_v62 = vsub.f32 %v9308_v0, %v2204_v24 }
 0x401   :  { %v7867_v53 = vpop.eup %4940  ;;  %4962 = vrcp.f32 %v3230_v30  ;;  %3954 = vmatprep.subr.mxu0 %v3675_v28  ;;  %4030 = vmatpush1.xpose.msra.mxu1 %v3740_v41  ;;  %v3227_v20 = vpop.xlane.xlu0 %3226  ;;  %v9312_v28 = vld [vmem:[#allocation42_spill] sm:$0xff] }
 0x402   :  { %v7869_v50 = vpop.eup %4942  ;;  %3955 = vmatpush1.xpose.msra.mxu0 %v3674_v26  ;;  %v2954_v44 = vmul.f32 1.442695, %v2474_v59  ;;  %v2956_v18 = vmul.f32 1.442695, %v2475_v62  ;;  %4964 = vrcp.f32 %v3227_v20  ;;  %v9311_v62 = vld [vmem:[#allocation204_spill] sm:$0xff]  ;;  %v9313_v26 = vld [vmem:[#allocation19_spill] sm:$0xff] }
 0x403   :  { %v7871_v19 = vpop.eup %4944  ;;  %v3360_v39 = vadd.f32 %v7869_v50, %v7867_v53  ;;  %v3326_v31 = vpop.xlane.xlu1 %3325  ;;  %v9314_v59 = vld [vmem:[#allocation207_spill] sm:$0xff] }
 0x404   :  { %9309 = vst [vmem:[#allocation37_spill] sm:$0xff] %v7871_v19  ;;  %v7875_v29 = vpop.eup %4946  ;;  %4966 = vpow2.f32 %v2954_v44 }
 0x405   :  { %9310 = vst [vmem:[#allocation155_spill] sm:$0xff] %v7875_v29  ;;  %v4949_v35 = vpop.eup %4948  ;;  %4968 = vpow2.f32 %v2956_v18  ;;  %v3224_v30 = vpop.xlane.xlu0 %3223  ;;  %3361 = vadd.xlane.f32.xlu1 %v3360_v39  ;;  %v3261_v7 = vadd.f32 %v7875_v29, %v7871_v19 }
 0x406   :  { %v4951_v41 = vpop.eup %4950  ;;  %4970 = vrcp.f32 %v3326_v31  ;;  %v3739_v13 = vmul.f32 %v4949_v35, %v9311_v62  ;;  %v3738_v52 = vmul.f32 %v4949_v35, %v9312_v28 }
 0x407   :  { %4972 = vrcp.f32 %v3224_v30  ;;  %3262 = vadd.xlane.f32.xlu0 %v3261_v7  ;;  %v3673_v24 = vmul.f32 %v4951_v41, %v9313_v26  ;;  %v3672_v0 = vmul.f32 %v4951_v41, %v9314_v59  ;;  %v3323_v20 = vpop.xlane.xlu1 %3322 }
 0x408   :  { %4031 = vmatprep.subr.mxu1 %v3739_v13  ;;  %4974 = vrcp.f32 %v3323_v20  ;;  %v9320_v20 = vld [vmem:[#allocation221_spill] sm:$0xff] }
 0x409   :  { %v7883_v44 = vpop.eup %4952  ;;  %3956 = vmatprep.subr.mxu0 %v3673_v24  ;;  %4032 = vmatpush1.xpose.msra.mxu1 %v3738_v52  ;;  %v3221_v18 = vpop.xlane.xlu0 %3220  ;;  %v9318_v52 = vld [vmem:[#allocation248_spill] sm:$0xff]  ;;  %v9319_v24 = vld [vmem:[#allocation217_spill] sm:$0xff] }
 0x40a   :  { %9315 = vst [vmem:[#allocation44_spill] sm:$0xff] %v7883_v44  ;;  %v7885_v39 = vpop.eup %4954  ;;  %3957 = vmatpush1.xpose.msra.mxu0 %v3672_v0  ;;  %4976 = vrcp.f32 %v3221_v18 }
 0x40b   :  { %9316 = vst [vmem:[#allocation132_spill] sm:$0xff] %v7885_v39  ;;  %v7887_v31 = vpop.eup %4956  ;;  %v3357_v35 = vadd.f32 %v7885_v39, %v7883_v44  ;;  %v3320_v7 = vpop.xlane.xlu1 %3319  ;;  %v9321_v44 = vld [vmem:[#allocation198_spill] sm:$0xff] }
 0x40c   :  { %9317 = vst [vmem:[#allocation40_spill] sm:$0xff] %v7887_v31  ;;  %v7891_v30 = vpop.eup %4958  ;;  %4978 = vrcp.f32 %v3320_v7  ;;  %v9322_v7 = vld [vmem:[#allocation194_spill] sm:$0xff] }
 0x40d   :  { %v4961_v41 = vpop.eup %4960  ;;  %v3218_v62 = vpop.xlane.xlu0 %3217  ;;  %3358 = vadd.xlane.f32.xlu1 %v3357_v35  ;;  %v3258_v13 = vadd.f32 %v7891_v30, %v7887_v31 }
 0x40e   :  { %v4963_v28 = vpop.eup %4962  ;;  %4980 = vrcp.f32 %v3218_v62  ;;  %v3737_v26 = vmul.f32 %v4961_v41, %v9318_v52  ;;  %v3736_v59 = vmul.f32 %v4961_v41, %v9319_v24  ;;  %v9324_v41 = vld [vmem:[#allocation199_spill] sm:$0xff] }
 0x40f   :  { %v4965_v0 = vpop.eup %4964  ;;  %3259 = vadd.xlane.f32.xlu0 %v3258_v13  ;;  %v3671_v18 = vmul.f32 %v4963_v28, %v9320_v20  ;;  %v3670_v39 = vmul.f32 %v4963_v28, %v9321_v44  ;;  %v3317_v19 = vpop.xlane.xlu1 %3316  ;;  %v9325_v20 = vld [vmem:[#allocation215_spill] sm:$0xff] }
 0x410   :  { %4033 = vmatprep.subr.mxu1 %v3737_v26  ;;  %v3669_v29 = vmul.f32 %v4965_v0, %v9322_v7  ;;  %4982 = vrcp.f32 %v3317_v19  ;;  %v3668_v13 = vmul.f32 %v4965_v0, %v9324_v41 }
 0x411   :  { %v7900_v35 = vpop.eup %4966  ;;  %3958 = vmatprep.subr.mxu0 %v3671_v18  ;;  %4034 = vmatpush1.xpose.msra.mxu1 %v3736_v59  ;;  %v3215_v62 = vpop.xlane.xlu0 %3214 }
 0x412   :  { %9323 = vst [vmem:[#allocation135_spill] sm:$0xff] %v7900_v35  ;;  %v7902_v31 = vpop.eup %4968  ;;  %3959 = vmatpush1.xpose.msra.mxu0 %v3670_v39  ;;  %4984 = vrcp.f32 %v3215_v62  ;;  %v9326_v39 = vld [vmem:[#allocation214_spill] sm:$0xff] }
 0x413   :  { %v4971_v52 = vpop.eup %4970  ;;  %3960 = vmatprep.subr.mxu0 %v3669_v29  ;;  %v3354_v44 = vadd.f32 %v7902_v31, %v7900_v35  ;;  %v3314_v26 = vpop.xlane.xlu1 %3313 }
 0x414   :  { %v4973_v28 = vpop.eup %4972  ;;  %v3735_v24 = vmul.f32 %v4971_v52, %v7369_v14  ;;  %v3734_v18 = vmul.f32 %v4971_v52, %v9325_v20  ;;  %4986 = vrcp.f32 %v3314_v26  ;;  %v9327_v14 = vld [vmem:[#allocation223_spill] sm:$0xff]  ;;  %v9330_v20 = vld [vmem:[#allocation210_spill] sm:$0xff] }
 0x415   :  { %3355 = vadd.xlane.f32.xlu1 %v3354_v44  ;;  %v3667_v19 = vmul.f32 %v4973_v28, %v7380_v21  ;;  %v4975_v59 = vpop.eup %4974  ;;  %v3666_v0 = vmul.f32 %v4973_v28, %v9326_v39  ;;  %v9328_v21 = vld [vmem:[#allocation85_spill] sm:$0xff]  ;;  %v9329_v28 = vld [vmem:[#allocation251_spill] sm:$0xff] }
 0x416   :  { %3961 = vmatpush1.xpose.msra.mxu0 %v3668_v13  ;;  %4035 = vmatprep.subr.mxu1 %v3735_v24  ;;  %v3733_v29 = vmul.f32 %v4975_v59, %v7391_v60  ;;  %v3732_v62 = vmul.f32 %v4975_v59, %v7384_v49  ;;  %v3212_v41 = vpop.xlane.xlu0 %3211 }
 0x417   :  { %v4977_v7 = vpop.eup %4976  ;;  %3962 = vmatprep.subr.mxu0 %v3667_v19  ;;  %4036 = vmatpush1.xpose.msra.mxu1 %v3734_v18  ;;  %4988 = vrcp.f32 %v3212_v41  ;;  %v3311_v52 = vpop.xlane.xlu1 %3310  ;;  %v9331_v41 = vld [vmem:[#allocation156_spill] sm:$0xff] }
 0x418   :  { %v3665_v35 = vmul.f32 %v4977_v7, %v9327_v14  ;;  %4037 = vmatprep.subr.mxu1 %v3733_v29  ;;  %4990 = vrcp.f32 %v3311_v52  ;;  %v3664_v13 = vmul.f32 %v4977_v7, %v9328_v21 }
 0x419   :  { %v4979_v44 = vpop.eup %4978 }
 0x41a   :  { %3963 = vmatpush1.xpose.msra.mxu0 %v3666_v0  ;;  %v3731_v24 = vmul.f32 %v4979_v44, %v9329_v28  ;;  %v3730_v60 = vmul.f32 %v4979_v44, %v9330_v20  ;;  %v172_v28 = vld [vmem:[#allocation7 + $0x38] sm:$0xff]  ;;  %v171_v20 = vld [vmem:[#allocation7 + $0x30] sm:$0xff] }
 0x41b   :  { %v4981_v26 = vpop.eup %4980  ;;  %3964 = vmatprep.subr.mxu0 %v3665_v35  ;;  %4038 = vmatpush1.xpose.msra.mxu1 %v3732_v62  ;;  %v3308_v19 = vpop.xlane.xlu1 %3307 }
 0x41c   :  { %v3663_v49 = vmul.f32 %v4981_v26, %v7427_v37  ;;  %4039 = vmatprep.subr.mxu1 %v3731_v24  ;;  %v3662_v59 = vmul.f32 %v4981_v26, %v7420_v55  ;;  %4992 = vrcp.f32 %v3308_v19  ;;  %v167_v24 = vld [vmem:[#allocation7 + $0x10] sm:$0xff]  ;;  %3933 = vmatprep.mubr.f32.mxu1 %v172_v28 }
 0x41d   :  { %v4983_v18 = vpop.eup %4982  ;;  %3934 = vmatmul.mubr.f32.gmra.mxu1 %v171_v20  ;;  %v9341_v20 = vld [vmem:[#allocation18_spill] sm:$0xff] }
 0x41e   :  { %3965 = vmatpush1.xpose.msra.mxu0 %v3664_v13  ;;  %v3729_v0 = vmul.f32 %v4983_v18, %v7441_v27  ;;  %v3728_v35 = vmul.f32 %v4983_v18, %v7436_v43  ;;  %v3305_v7 = vpop.xlane.xlu0 %3304  ;;  %v9332_v13 = vld [vmem:[#allocation209_spill] sm:$0xff] }
 0x41f   :  { %v4985_v39 = vpop.eup %4984  ;;  %3966 = vmatprep.subr.mxu0 %v3663_v49  ;;  %4040 = vmatpush1.xpose.msra.mxu1 %v3730_v60  ;;  %4994 = vrcp.f32 %v3305_v7  ;;  %v9333_v18 = vld [vmem:[#allocation21_spill] sm:$0xff]  ;;  %v178_v7 = vld [vmem:[#allocation7 + $0x68] sm:$0xff] }
 0x420   :  { %v3661_v29 = vmul.f32 %v4985_v39, %v7512_v22  ;;  %4041 = vmatprep.subr.mxu1 %v3729_v0  ;;  %v3660_v62 = vmul.f32 %v4985_v39, %v7506_v61  ;;  %v174_v0 = vld [vmem:[#allocation7 + $0x48] sm:$0xff]  ;;  %4081 = vmatprep.mubr.f32.mxu1 %v178_v7 }
 0x421   :  { %v4987_v37 = vpop.eup %4986 }
 0x422   :  { %3967 = vmatpush1.xpose.msra.mxu0 %v3662_v59  ;;  %v3727_v55 = vmul.f32 %v4987_v37, %v7474_v33  ;;  %v3726_v14 = vmul.f32 %v4987_v37, %v9331_v41  ;;  %v168_v33 = vld [vmem:[#allocation7 + $0x18] sm:$0xff]  ;;  %v9334_v59 = vld [vmem:[#allocation158_spill] sm:$0xff]  ;;  %v9336_v37 = vld [vmem:[#allocation20_spill] sm:$0xff] }
 0x423   :  { %3968 = vmatprep.subr.mxu0 %v3661_v29  ;;  %4042 = vmatpush1.xpose.msra.mxu1 %v3728_v35 }
 0x424   :  { %4043 = vmatprep.subr.mxu1 %v3727_v55  ;;  %v4989_v52 = vpop.eup %4988  ;;  %v3401_v27 = vpop.xlane.xlu1 %3400  ;;  %3856 = vmatprep.mubr.f32.mxu0 %v168_v33 }
 0x425   :  { %v4991_v43 = vpop.eup %4990  ;;  %4996 = vrcp.f32 %v3401_v27  ;;  %v3659_v22 = vmul.f32 %v4989_v52, %v7543_v34  ;;  %v3658_v44 = vmul.f32 %v4989_v52, %v7539_v15  ;;  %3857 = vmatmul.mubr.f32.gmra.mxu0 %v167_v24  ;;  %v9338_v27 = vld [vmem:[#allocation185_spill] sm:$0xff] }
 0x426   :  { %3969 = vmatpush1.xpose.msra.mxu0 %v3660_v62  ;;  %v3302_v21 = vpop.xlane.xlu0 %3301  ;;  %v3725_v61 = vmul.f32 %v4991_v43, %v7535_v12  ;;  %v3724_v26 = vmul.f32 %v4991_v43, %v9332_v13  ;;  %4004 = vmatprep.mubr.f32.mxu0 %v174_v0  ;;  %v9340_v13 = vld [vmem:[#allocation203_spill] sm:$0xff] }
 0x427   :  { %4044 = vmatpush1.xpose.msra.mxu1 %v3726_v14  ;;  %4998 = vrcp.f32 %v3302_v21  ;;  %3970 = vmatprep.subr.mxu0 %v3659_v22  ;;  %v9337_v14 = vld [vmem:[#allocation152_spill] sm:$0xff]  ;;  %v9339_v21 = vld [vmem:[#allocation154_spill] sm:$0xff] }
 0x428   :  { %4045 = vmatprep.subr.mxu1 %v3725_v61 }
 0x429   :  { %v4993_v60 = vpop.eup %4992 }
 0x42a   :  { %3971 = vmatpush1.xpose.msra.mxu0 %v3658_v44  ;;  %v3723_v15 = vmul.f32 %v4993_v60, %v7567_v40  ;;  %v3722_v34 = vmul.f32 %v4993_v60, %v7561_v5  ;;  %v9335_v5 = vld [vmem:[#allocation208_spill] sm:$0xff] }
 0x42b   :  { %4046 = vmatpush1.xpose.msra.mxu1 %v3724_v26  ;;  %v3398_v49 = vpop.xlane.xlu1 %3397 }
 0x42c   :  { %v4995_v12 = vpop.eup %4994  ;;  %5000 = vrcp.f32 %v3398_v49  ;;  %4047 = vmatprep.subr.mxu1 %v3723_v15 }
 0x42d   :  { %v3721_v19 = vmul.f32 %v4995_v12, %v9333_v18  ;;  %v3720_v39 = vmul.f32 %v4995_v12, %v9334_v59  ;;  %v3299_v35 = vpop.xlane.xlu0 %3298  ;;  %v9342_v59 = vld [vmem:[#allocation43_spill] sm:$0xff] }
 0x42e   :  { %5002 = vrcp.f32 %v3299_v35 }
 0x42f   :  { %4048 = vmatpush1.xpose.msra.mxu1 %v3722_v34  ;;  %3972 = vmatprep.subr.mxu0 %v3721_v19 }
 0x430   :  { %3973 = vmatpush2.xpose.msra.mxu0 %v3720_v39 }
 0x432   :  { %v4997_v40 = vpop.eup %4996 }
 0x433   :  { %v3785_v29 = vmul.f32 %v4997_v40, %v9335_v5  ;;  %v3784_v62 = vmul.f32 %v4997_v40, %v9336_v37  ;;  %v3395_v41 = vpop.xlane.xlu1 %3394  ;;  %v9344_v40 = vld [vmem:[#allocation202_spill] sm:$0xff] }
 0x434   :  { %v4999_v55 = vpop.eup %4998  ;;  %5004 = vrcp.f32 %v3395_v41  ;;  %v9347_v41 = vld [vmem:[#allocation29_spill] sm:$0xff] }
 0x435   :  { %v3719_v52 = vmul.f32 %v4999_v55, %v9337_v14  ;;  %4049 = vmatprep.subr.mxu1 %v3785_v29  ;;  %v3718_v43 = vmul.f32 %v4999_v55, %v9338_v27  ;;  %v3296_v22 = vpop.xlane.xlu0 %3295  ;;  %v9345_v29 = vld [vmem:[#allocation165_spill] sm:$0xff] }
 0x436   :  { %4050 = vmatpush2.xpose.msra.mxu1 %v3784_v62  ;;  %5006 = vrcp.f32 %v3296_v22  ;;  %v9346_v62 = vld [vmem:[#allocation147_spill] sm:$0xff] }
 0x437   :  { %3974 = vmatprep.subr.mxu0 %v3719_v52 }
 0x438   :  { %3975 = vmatpush2.xpose.msra.mxu0 %v3718_v43  ;;  %v9348_v43 = vld [vmem:[#allocation150_spill] sm:$0xff] }
 0x439   :  { %v5001_v44 = vpop.eup %5000 }
 0x43a   :  { %v3783_v61 = vmul.f32 %v5001_v44, %v9339_v21  ;;  %v3782_v26 = vmul.f32 %v5001_v44, %v9340_v13  ;;  %v9349_v44 = vld [vmem:[#allocation197_spill] sm:$0xff] }
 0x43b   :  { %v5003_v33 = vpop.eup %5002  ;;  %v3392_v28 = vpop.xlane.xlu1 %3391 }
 0x43c   :  { %5008 = vrcp.f32 %v3392_v28  ;;  %v3717_v24 = vmul.f32 %v5003_v33, %v7633_v17  ;;  %4051 = vmatprep.subr.mxu1 %v3783_v61  ;;  %v3716_v60 = vmul.f32 %v5003_v33, %v9341_v20  ;;  %v9343_v17 = vld [vmem:[#allocation162_spill] sm:$0xff] }
 0x43d   :  { %v3293_v15 = vpop.xlane.xlu0 %3292  ;;  %4052 = vmatpush2.xpose.msra.mxu1 %v3782_v26  ;;  %v9350_v26 = vld [vmem:[#allocation157_spill] sm:$0xff]  ;;  %v9351_v28 = vld [vmem:[#allocation146_spill] sm:$0xff] }
 0x43e   :  { %5010 = vrcp.f32 %v3293_v15  ;;  %3976 = vmatprep.subr.mxu0 %v3717_v24  ;;  %v9352_v15 = vld [vmem:[#allocation159_spill] sm:$0xff] }
 0x43f   :  { %3977 = vmatpush2.xpose.msra.mxu0 %v3716_v60 }
 0x441   :  { %v5005_v34 = vpop.eup %5004 }
 0x442   :  { %v3781_v12 = vmul.f32 %v5005_v34, %v7648_v51  ;;  %v3780_v49 = vmul.f32 %v5005_v34, %v7644_v57 }
 0x443   :  { %v5007_v18 = vpop.eup %5006  ;;  %v3389_v19 = vpop.xlane.xlu1 %3388 }
 0x444   :  { %5012 = vrcp.f32 %v3389_v19  ;;  %v3715_v39 = vmul.f32 %v5007_v18, %v9342_v59  ;;  %4053 = vmatprep.subr.mxu1 %v3781_v12  ;;  %v3714_v0 = vmul.f32 %v5007_v18, %v9343_v17  ;;  %v9353_v12 = vld [vmem:[#allocation41_spill] sm:$0xff] }
 0x445   :  { %4054 = vmatpush2.xpose.msra.mxu1 %v3780_v49 }
 0x446   :  { %v3290_v35 = vpop.xlane.xlu0 %3289  ;;  %3978 = vmatprep.subr.mxu0 %v3715_v39  ;;  %v9354_v39 = vld [vmem:[#allocation196_spill] sm:$0xff] }
 0x447   :  { %5014 = vrcp.f32 %v3290_v35  ;;  %3979 = vmatpush2.xpose.msra.mxu0 %v3714_v0 }
 0x449   :  { %v5009_v7 = vpop.eup %5008 }
 0x44a   :  { %v3779_v5 = vmul.f32 %v5009_v7, %v9344_v40  ;;  %v3778_v51 = vmul.f32 %v5009_v7, %v9345_v29  ;;  %v9355_v40 = vld [vmem:[#allocation139_spill] sm:$0xff] }
 0x44b   :  { %v5011_v37 = vpop.eup %5010  ;;  %v3386_v57 = vpop.xlane.xlu1 %3385 }
 0x44c   :  { %5016 = vrcp.f32 %v3386_v57  ;;  %v3713_v55 = vmul.f32 %v5011_v37, %v9346_v62  ;;  %4055 = vmatprep.subr.mxu1 %v3779_v5  ;;  %v3712_v14 = vmul.f32 %v5011_v37, %v9347_v41 }
 0x44d   :  { %v3287_v52 = vpop.xlane.xlu0 %3286  ;;  %4056 = vmatpush2.xpose.msra.mxu1 %v3778_v51 }
 0x44e   :  { %5018 = vrcp.f32 %v3287_v52  ;;  %3980 = vmatprep.subr.mxu0 %v3713_v55 }
 0x44f   :  { %3981 = vmatpush2.xpose.msra.mxu0 %v3712_v14 }
 0x451   :  { %v5013_v27 = vpop.eup %5012 }
 0x452   :  { %v3777_v22 = vmul.f32 %v5013_v27, %v9348_v43  ;;  %v3776_v21 = vmul.f32 %v5013_v27, %v9349_v44 }
 0x453   :  { %v3383_v13 = vpop.xlane.xlu1 %3382 }
 0x454   :  { %v5015_v61 = vpop.eup %5014  ;;  %5020 = vrcp.f32 %v3383_v13  ;;  %4057 = vmatprep.subr.mxu1 %v3777_v22 }
 0x455   :  { %v3711_v33 = vmul.f32 %v5015_v61, %v9350_v26  ;;  %v3710_v24 = vmul.f32 %v5015_v61, %v9351_v28  ;;  %v3284_v20 = vpop.xlane.xlu0 %3283  ;;  %4058 = vmatpush2.xpose.msra.mxu1 %v3776_v21 }
 0x456   :  { %5022 = vrcp.f32 %v3284_v20 }
 0x457   :  { %3982 = vmatprep.subr.mxu0 %v3711_v33 }
 0x458   :  { %3983 = vmatpush2.xpose.msra.mxu0 %v3710_v24 }
 0x459   :  { %v5017_v60 = vpop.eup %5016 }
 0x45a   :  { %v3775_v34 = vmul.f32 %v5017_v60, %v9352_v15  ;;  %v3774_v49 = vmul.f32 %v5017_v60, %v9353_v12 }
 0x45b   :  { %v5019_v18 = vpop.eup %5018  ;;  %v3380_v19 = vpop.xlane.xlu1 %3379 }
 0x45c   :  { %5024 = vrcp.f32 %v3380_v19  ;;  %v3709_v59 = vmul.f32 %v5019_v18, %v7717_v54  ;;  %4059 = vmatprep.subr.mxu1 %v3775_v34  ;;  %v3708_v17 = vmul.f32 %v5019_v18, %v9354_v39  ;;  %v9356_v54 = vld [vmem:[#allocation46_spill] sm:$0xff] }
 0x45d   :  { %v3281_v0 = vpop.xlane.xlu0 %3280  ;;  %4060 = vmatpush2.xpose.msra.mxu1 %v3774_v49 }
 0x45e   :  { %5026 = vrcp.f32 %v3281_v0  ;;  %3984 = vmatprep.subr.mxu0 %v3709_v59 }
 0x45f   :  { %3985 = vmatpush2.xpose.msra.mxu0 %v3708_v17 }
 0x461   :  { %v5021_v35 = vpop.eup %5020 }
 0x462   :  { %v3773_v7 = vmul.f32 %v5021_v35, %v7729_v8  ;;  %v3772_v5 = vmul.f32 %v5021_v35, %v9355_v40 }
 0x463   :  { %v5023_v29 = vpop.eup %5022  ;;  %v3377_v51 = vpop.xlane.xlu1 %3376 }
 0x464   :  { %5028 = vrcp.f32 %v3377_v51  ;;  %v3707_v37 = vmul.f32 %v5023_v29, %v7737_v6  ;;  %4061 = vmatprep.subr.mxu1 %v3773_v7  ;;  %v3706_v57 = vmul.f32 %v5023_v29, %v9356_v54  ;;  %v9357_v6 = vld [vmem:[#allocation143_spill] sm:$0xff] }
 0x465   :  { %v3278_v62 = vpop.xlane.xlu0 %3277  ;;  %4062 = vmatpush2.xpose.msra.mxu1 %v3772_v5 }
 0x466   :  { %5030 = vrcp.f32 %v3278_v62  ;;  %3986 = vmatprep.subr.mxu0 %v3707_v37 }
 0x467   :  { %3987 = vmatpush2.xpose.msra.mxu0 %v3706_v57 }
 0x469   :  { %v5025_v55 = vpop.eup %5024 }
 0x46a   :  { %v3771_v41 = vmul.f32 %v5025_v55, %v7749_v46  ;;  %v3770_v8 = vmul.f32 %v5025_v55, %v7747_v48 }
 0x46b   :  { %v5027_v14 = vpop.eup %5026  ;;  %v3374_v52 = vpop.xlane.xlu1 %3373 }
 0x46c   :  { %5032 = vrcp.f32 %v3374_v52  ;;  %v3705_v27 = vmul.f32 %v5027_v14, %v7757_v38  ;;  %4063 = vmatprep.subr.mxu1 %v3771_v41  ;;  %v3704_v43 = vmul.f32 %v5027_v14, %v9357_v6  ;;  %v9360_v41 = vld [vmem:[#allocation155_spill] sm:$0xff] }
 0x46d   :  { %4064 = vmatpush2.xpose.msra.mxu1 %v3770_v8 }
 0x46e   :  { %v3275_v22 = vpop.xlane.xlu0 %3274  ;;  %3988 = vmatprep.subr.mxu0 %v3705_v27  ;;  %v9362_v27 = vld [vmem:[#allocation132_spill] sm:$0xff] }
 0x46f   :  { %5034 = vrcp.f32 %v3275_v22  ;;  %3989 = vmatpush2.xpose.msra.mxu0 %v3704_v43  ;;  %v9363_v43 = vld [vmem:[#allocation44_spill] sm:$0xff] }
 0x471   :  { %v5029_v44 = vpop.eup %5028 }
 0x472   :  { %v3769_v21 = vmul.f32 %v5029_v44, %v7769_v47  ;;  %v3768_v46 = vmul.f32 %v5029_v44, %v7767_v1 }
 0x473   :  { %v5031_v61 = vpop.eup %5030 }
 0x474   :  { %v3371_v48 = vpop.xlane.xlu1 %3370  ;;  %v3703_v13 = vmul.f32 %v5031_v61, %v7777_v4  ;;  %4065 = vmatprep.subr.mxu1 %v3769_v21  ;;  %v3702_v38 = vmul.f32 %v5031_v61, %v7773_v63  ;;  %v176_v61 = vld [vmem:[#allocation7 + $0x58] sm:$0xff] }
 0x475   :  { %5036 = vrcp.f32 %v3371_v48  ;;  %4066 = vmatpush2.xpose.msra.mxu1 %v3768_v46  ;;  %v173_v46 = vld [vmem:[#allocation7 + $0x40] sm:$0xff] }
 0x476   :  { %3990 = vmatprep.subr.mxu0 %v3703_v13 }
 0x477   :  { %v3272_v26 = vpop.xlane.xlu0 %3271  ;;  %3991 = vmatpush2.xpose.msra.mxu0 %v3702_v38  ;;  %v9365_v38 = vld [vmem:[#allocation135_spill] sm:$0xff] }
 0x478   :  { %5038 = vrcp.f32 %v3272_v26 }
 0x479   :  { %v5033_v33 = vpop.eup %5032 }
 0x47a   :  { %v3767_v28 = vmul.f32 %v5033_v33, %v7789_v58  ;;  %v3766_v47 = vmul.f32 %v5033_v33, %v7787_v42  ;;  %v175_v33 = vld [vmem:[#allocation7 + $0x50] sm:$0xff] }
 0x47c   :  { %v5035_v24 = vpop.eup %5034  ;;  %4067 = vmatprep.subr.mxu1 %v3767_v28  ;;  %v177_v28 = vld [vmem:[#allocation7 + $0x60] sm:$0xff] }
 0x47d   :  { %v3701_v20 = vmul.f32 %v5035_v24, %v7797_v32  ;;  %v3700_v4 = vmul.f32 %v5035_v24, %v7793_v16  ;;  %4068 = vmatpush2.xpose.msra.mxu1 %v3766_v47  ;;  %v179_v47 = vld [vmem:[#allocation7 + $0x70] sm:$0xff] }
 0x47e   :  { %v3368_v1 = vpop.xlane.xlu1 %3367 }
 0x47f   :  { %5040 = vrcp.f32 %v3368_v1  ;;  %3992 = vmatprep.subr.mxu0 %v3701_v20 }
 0x480   :  { %v3269_v60 = vpop.xlane.xlu0 %3268  ;;  %3993 = vmatpush2.xpose.msra.mxu0 %v3700_v4 }
 0x481   :  { %5042 = vrcp.f32 %v3269_v60 }
 0x482   :  { %v5037_v63 = vpop.eup %5036 }
 0x483   :  { %v3765_v15 = vmul.f32 %v5037_v63, %v7809_v56  ;;  %v3764_v58 = vmul.f32 %v5037_v63, %v7807_v25  ;;  %v3852_v34 = vpop.f32.mrf.mxu0 }
 0x484   :  { %4094 = vst [vmem:[#allocation8] sm:$0xff] %v3852_v34 }
 0x485   :  { %v5039_v42 = vpop.eup %5038  ;;  %4069 = vmatprep.subr.mxu1 %v3765_v15  ;;  %v3854_v49 = vpop.f32.mrf.mxu0 }
 0x486   :  { %v3365_v12 = vpop.xlane.xlu1 %3364  ;;  %v3699_v32 = vmul.f32 %v5039_v42, %v7817_v45  ;;  %v3698_v16 = vmul.f32 %v5039_v42, %v7813_v36  ;;  %4070 = vmatpush2.xpose.msra.mxu1 %v3764_v58  ;;  %4095 = vst [vmem:[#allocation8 + $0x8] sm:$0xff] %v3854_v49 }
 0x487   :  { %5044 = vrcp.f32 %v3365_v12 }
 0x488   :  { %v3266_v18 = vpop.xlane.xlu0 %3265  ;;  %3994 = vmatprep.subr.mxu0 %v3699_v32 }
 0x489   :  { %5046 = vrcp.f32 %v3266_v18  ;;  %3995 = vmatpush2.xpose.msra.mxu0 %v3698_v16  ;;  %v3929_v19 = vpop.f32.mrf.mxu1 }
 0x48a   :  { %4098 = vst [vmem:[#allocation8 + $0x20] sm:$0xff] %v3929_v19 }
 0x48b   :  { %v3931_v45 = vpop.f32.mrf.mxu1 }
 0x48c   :  { %v5041_v56 = vpop.eup %5040  ;;  %4099 = vst [vmem:[#allocation8 + $0x28] sm:$0xff] %v3931_v45 }
 0x48d   :  { %v3763_v25 = vmul.f32 %v5041_v56, %v7829_v3  ;;  %v3762_v59 = vmul.f32 %v5041_v56, %v7827_v11  ;;  %v9358_v11 = vld [vmem:[#allocation39_spill] sm:$0xff] }
 0x48e   :  { %v5043_v39 = vpop.eup %5042  ;;  %v3362_v17 = vpop.xlane.xlu1 %3361 }
 0x48f   :  { %5048 = vrcp.f32 %v3362_v17  ;;  %v3697_v36 = vmul.f32 %v5043_v39, %v7837_v23  ;;  %4071 = vmatprep.subr.mxu1 %v3763_v25  ;;  %v3696_v0 = vmul.f32 %v5043_v39, %v7833_v9  ;;  %v9359_v23 = vld [vmem:[#allocation153_spill] sm:$0xff] }
 0x490   :  { %v3263_v35 = vpop.xlane.xlu0 %3262  ;;  %4072 = vmatpush2.xpose.msra.mxu1 %v3762_v59 }
 0x491   :  { %5050 = vrcp.f32 %v3263_v35  ;;  %3996 = vmatprep.subr.mxu0 %v3697_v36 }
 0x492   :  { %3997 = vmatpush2.xpose.msra.mxu0 %v3696_v0 }
 0x494   :  { %v5045_v7 = vpop.eup %5044 }
 0x495   :  { %v3761_v3 = vmul.f32 %v5045_v7, %v7849_v2  ;;  %v3760_v40 = vmul.f32 %v5045_v7, %v9358_v11 }
 0x496   :  { %v5047_v5 = vpop.eup %5046  ;;  %v3359_v29 = vpop.xlane.xlu1 %3358 }
 0x497   :  { %5052 = vrcp.f32 %v3359_v29  ;;  %v3695_v51 = vmul.f32 %v5047_v5, %v7857_v10  ;;  %4073 = vmatprep.subr.mxu1 %v3761_v3  ;;  %v3694_v37 = vmul.f32 %v5047_v5, %v9359_v23  ;;  %v9361_v10 = vld [vmem:[#allocation37_spill] sm:$0xff] }
 0x498   :  { %v3260_v9 = vpop.xlane.xlu0 %3259  ;;  %4074 = vmatpush2.xpose.msra.mxu1 %v3760_v40 }
 0x499   :  { %5054 = vrcp.f32 %v3260_v9  ;;  %3998 = vmatprep.subr.mxu0 %v3695_v51 }
 0x49a   :  { %3999 = vmatpush2.xpose.msra.mxu0 %v3694_v37 }
 0x49c   :  { %v5049_v54 = vpop.eup %5048 }
 0x49d   :  { %v3759_v57 = vmul.f32 %v5049_v54, %v7869_v50  ;;  %v3758_v2 = vmul.f32 %v5049_v54, %v7867_v53  ;;  %v9364_v53 = vld [vmem:[#allocation40_spill] sm:$0xff] }
 0x49e   :  { %v5051_v62 = vpop.eup %5050  ;;  %v3356_v55 = vpop.xlane.xlu1 %3355 }
 0x49f   :  { %5056 = vrcp.f32 %v3356_v55  ;;  %v3693_v8 = vmul.f32 %v5051_v62, %v9360_v41  ;;  %4075 = vmatprep.subr.mxu1 %v3759_v57  ;;  %v3692_v14 = vmul.f32 %v5051_v62, %v9361_v10 }
 0x4a0   :  { %4076 = vmatpush2.xpose.msra.mxu1 %v3758_v2 }
 0x4a1   :  { %4000 = vmatprep.subr.mxu0 %v3693_v8 }
 0x4a2   :  { %4001 = vmatpush2.xpose.msra.mxu0 %v3692_v14 }
 0x4a4   :  { %v5053_v52 = vpop.eup %5052 }
 0x4a5   :  { %v3757_v6 = vmul.f32 %v5053_v52, %v9362_v27  ;;  %v3756_v22 = vmul.f32 %v5053_v52, %v9363_v43 }
 0x4a6   :  { %v5055_v44 = vpop.eup %5054 }
 0x4a7   :  { %v3691_v50 = vmul.f32 %v5055_v44, %v7891_v30  ;;  %4077 = vmatprep.subr.mxu1 %v3757_v6  ;;  %v3690_v21 = vmul.f32 %v5055_v44, %v9364_v53  ;;  %v180_v30 = vld [vmem:[#allocation7 + $0x78] sm:$0xff] }
 0x4a8   :  { %4078 = vmatpush2.xpose.msra.mxu1 %v3756_v22 }
 0x4a9   :  { %4002 = vmatprep.subr.mxu0 %v3691_v50 }
 0x4aa   :  { %4003 = vmatpush2.xpose.msra.mxu0 %v3690_v21 }
 0x4ac   :  { %v5057_v48 = vpop.eup %5056 }
 0x4ad   :  { %v3755_v13 = vmul.f32 %v5057_v48, %v7902_v31  ;;  %v3754_v26 = vmul.f32 %v5057_v48, %v9365_v38  ;;  %4005 = vmatmul.mubr.f32.vlgmr.msra.gmra.mxu0 %v173_v46 }
 0x4ae   :  { %4010 = vmatprep.mubr.f32.mxu0 %v176_v61 }
 0x4af   :  { %4079 = vmatprep.subr.mxu1 %v3755_v13 }
 0x4b0   :  { %4080 = vmatpush2.xpose.msra.mxu1 %v3754_v26 }
 0x4b1   :  { %4011 = vmatmul.mubr.f32.gmra.mxu0 %v175_v33 }
 0x4b3   :  { %4082 = vmatmul.mubr.f32.vlgmr.msra.gmra.mxu1 %v177_v28 }
 0x4b4   :  { %4087 = vmatprep.mubr.f32.mxu1 %v180_v30 }
 0x4b7   :  { %4088 = vmatmul.mubr.f32.gmra.mxu1 %v179_v47 }
 0x4dd   :  { %v3935_v1 = vpop.f32.mrf.mxu1 }
 0x4de   :  { %4100 = vst [vmem:[#allocation8 + $0x30] sm:$0xff] %v3935_v1 }
 0x4df   :  { %v3937_v31 = vpop.f32.mrf.mxu1 }
 0x4e0   :  { %4101 = vst [vmem:[#allocation8 + $0x38] sm:$0xff] %v3937_v31 }
 0x4e5   :  { %v3858_v24 = vpop.f32.mrf.mxu0 }
 0x4e6   :  { %4096 = vst [vmem:[#allocation8 + $0x10] sm:$0xff] %v3858_v24 }
 0x4e7   :  { %v3860_v20 = vpop.f32.mrf.mxu0 }
 0x4e8   :  { %4097 = vst [vmem:[#allocation8 + $0x18] sm:$0xff] %v3860_v20 }
 0x56d   :  { %v4006_v4 = vpop.f32.mrf.mxu0 }
 0x56e   :  { %4102 = vst [vmem:[#allocation8 + $0x40] sm:$0xff] %v4006_v4 }
 0x56f   :  { %v4008_v60 = vpop.f32.mrf.mxu0 }
 0x570   :  { %4103 = vst [vmem:[#allocation8 + $0x48] sm:$0xff] %v4008_v60 }
 0x571   :  { %v4012_v63 = vpop.f32.mrf.mxu0 }
 0x572   :  { %4104 = vst [vmem:[#allocation8 + $0x50] sm:$0xff] %v4012_v63 }
 0x573   :  { %v4083_v15 = vpop.f32.mrf.mxu1  ;;  %v4014_v58 = vpop.f32.mrf.mxu0 }
 0x574   :  { %4106 = vst [vmem:[#allocation8 + $0x60] sm:$0xff] %v4083_v15  ;;  %4105 = vst [vmem:[#allocation8 + $0x58] sm:$0xff] %v4014_v58 }
 0x575   :  { %v4085_v34 = vpop.f32.mrf.mxu1 }
 0x576   :  { %4107 = vst [vmem:[#allocation8 + $0x68] sm:$0xff] %v4085_v34 }
 0x577   :  { %v4089_v42 = vpop.f32.mrf.mxu1 }
 0x578   :  { %4108 = vst [vmem:[#allocation8 + $0x70] sm:$0xff] %v4089_v42 }
 0x579   :  { %v4091_v12 = vpop.f32.mrf.mxu1 }
 0x57a   :  { %4109 = vst [vmem:[#allocation8 + $0x78] sm:$0xff] %v4091_v12 }
 0x57b   :  { %5069 = shalt.err (!%p5066_p4)
}
 0x57c   :  { %s5110_s29 = smov 256   ;;  %s5111_s30 = smov 16  }
 0x57d   :  { %4121 = dma.vmem_to_hbm [thread:$0]  %s4116_s27, 2048, %s8001_s3, [#allocation4], %s5110_s29, %s5110_s29, %s5111_s30  }
 0x57e   :  { %5082 = dma.done.wait [#allocation4], 2048  }
 0x57f   :  { %5083 = vsyncadd [#allocation4], 4294965248 }
 0x580   :  { %4125 = vsyncpa [#allocation3], 1 }
 0x581   :  { %4126 = vsyncpa [#allocation6], 1 }
 0x582   :  { %4127 = vsyncpa [#allocation4], 1 }

</bundles_post_ra>
